<compile_context>
chip_gen: v5e
topology: v5e:2x2
jax: 0.10.0
libtpu: 0.0.40
codegen_flags: <defaults>
</compile_context>

<pallas_src>
import numpy as np
import jax
import jax.numpy as jnp
from jax import lax
from jax.experimental import pallas as pl
from jax.experimental.pallas import tpu as pltpu

SNN_TH = 0.8  # DescriptorMatcher('snn', 0.8)


# ----------------------------------------------------------------------------
# small helpers
# ----------------------------------------------------------------------------
def _round_up(x, m):
    return ((x + m - 1) // m) * m


def _pad_axis(x, axis, target, value=0.0):
    pad = target - x.shape[axis]
    if pad <= 0:
        return x
    widths = [(0, 0)] * x.ndim
    widths[axis] = (0, pad)
    return jnp.pad(x, widths, constant_values=value)


def _physical_vmem_bytes():
    try:
        return int(pltpu.get_tpu_info().vmem_capacity_bytes)
    except Exception:
        return 128 << 20  # v5e/v6e per-core VMEM; conservative fallback


# ----------------------------------------------------------------------------
# Pallas kernel: online (tiled-N1) second-nearest-neighbor ratio matching
# ----------------------------------------------------------------------------
def _snn_match_kernel(d0_ref, d1t_ref, sq0_ref, sq1_ref,      # inputs
                      ratio_ref, idx_ref,                     # outputs
                      m1_ref, m2_ref, a1_ref):                # scratch (running top-2)
    k = pl.program_id(2)
    tn1 = d1t_ref.shape[2]

    @pl.when(k == 0)
    def _init():
        m1_ref[...] = jnp.full(m1_ref.shape, jnp.inf, dtype=m1_ref.dtype)
        m2_ref[...] = jnp.full(m2_ref.shape, jnp.inf, dtype=m2_ref.dtype)
        a1_ref[...] = jnp.zeros(a1_ref.shape, dtype=a1_ref.dtype)

    # -2 * <d0_i, d1_j>: the -2 is already folded into the bf16 cast of d0 on the host.
    cross = jnp.einsum("bnd,bdm->bnm", d0_ref[...], d1t_ref[...],
                       preferred_element_type=jnp.float32)       # (bt, tn0, tn1) f32
    # Partial squared distance ||d1_j||^2 - 2<d0_i, d1_j>; the per-row ||d0_i||^2 is
    # added only at finalize (it does not change the top-2 ordering along j).
    # Padded N1 columns carry sq1 = +inf and fall out automatically.
    p = sq1_ref[...] + cross                                     # (bt, tn0, tn1)

    # Column indices as a (1, 1, tn1) iota, broadcast where needed (no full-tile i32).
    gcol = k * tn1 + lax.broadcasted_iota(jnp.int32, (1, 1, tn1), 2)
    big_idx = jnp.int32(jnp.iinfo(jnp.int32).max)

    # Per-tile top-2 (3 lane-reduction passes). TODO(synk): a fused value+index
    # reduction (jnp.argmin) could drop one pass; verify lowering + bundle dump first.
    t1 = jnp.min(p, axis=-1, keepdims=True)                                   # (bt,tn0,1)
    ta1 = jnp.min(jnp.where(p == t1, gcol, big_idx), axis=-1, keepdims=True)  # first occ.
    t2 = jnp.min(jnp.where(gcol == ta1, jnp.inf, p), axis=-1, keepdims=True)
    t1 = t1[..., 0]
    ta1 = ta1[..., 0]
    t2 = t2[..., 0]                                              # (bt, tn0) lane-dense

    m1 = m1_ref[...]
    m2 = m2_ref[...]
    a1 = a1_ref[...]
    # Online top-2 merge.  Strict '<' keeps first-occurrence tie-breaking across tiles.
    m1_ref[...] = jnp.minimum(m1, t1)
    a1_ref[...] = jnp.where(t1 < m1, ta1, a1)
    m2_ref[...] = jnp.minimum(jnp.maximum(m1, t1), jnp.minimum(m2, t2))

    @pl.when(k == pl.num_programs(2) - 1)
    def _finalize():
        sq0 = sq0_ref[:, 0, :]                                   # (bt, tn0) lane-dense
        min1 = jnp.maximum(sq0 + m1_ref[...], 0.0)
        min2 = jnp.maximum(sq0 + m2_ref[...], 0.0)
        # sqrt/divide only on the per-row winners (sqrt is monotone; ordering already
        # done on squared distances).  min2 == 0 -> nan/inf ratio which the <= 0.8 test
        # rejects, matching kornia's match_snn behavior.
        ratio_ref[:, 0, :] = jnp.sqrt(min1) / jnp.sqrt(min2)     # lane-dense stores
        idx_ref[:, 0, :] = a1_ref[...]


def snn_match(descs0, descs1, *, tile_n0=None, tile_n1=None, batch_tile=None):
    """Batched SNN matching.

    descs*: (B, N, D) float32.  Returns (ratio (B, N0) f32, nn_idx (B, N0) i32) where
    ratio = d(nearest)/d(second nearest) (torch.cdist / kornia match_snn semantics).
    Note: cross products use bf16 on the MXU with f32 accumulation; near-tied matches
    can differ from a pure-f32 torch.cdist.
    """
    B, N0, D = descs0.shape
    B1, N1, D1 = descs1.shape
    assert B == B1 and D == D1
    # kornia's match_snn requires at least 2 descriptors in the second set.
    assert N1 >= 2, "SNN matching requires at least two descriptors in descs1"

    # --- N0 tiling (rows of the distance matrix, 'parallel' axis) -----------
    tn0 = min(_round_up(N0, 128), int(tile_n0) if tile_n0 else 512)
    tn0 = max(128, (tn0 // 128) * 128)
    N0_pad = _round_up(N0, tn0)
    n0_tiles = N0_pad // tn0

    # --- batch tiling: target bt*tn0 ~ 512-1024 MXU rows ---------------------
    if batch_tile is None:
        bt = max(1, min(B, 1024 // tn0))
    else:
        bt = max(1, min(int(batch_tile), B))
    while B % bt:                                                # keep the grid exact
        bt -= 1
    # v7x has 2 TensorCores: keep >= 2 blocks on the parallel axes when possible.
    if bt > 1 and (B // bt) * n0_tiles < 2:
        bt = max(1, bt // 2)
        while B % bt:
            bt -= 1

    # --- N1 tiling (columns; online-reduced 'arbitrary' axis) ---------------
    tn1 = int(tile_n1) if tile_n1 else 1024
    tn1 = min(tn1, _round_up(N1, 128))
    tn1 = min(tn1, max(128, (4 << 20) // (4 * bt * tn0)))        # keep p tile <= ~4 MiB
    tn1 = max(128, (tn1 // 128) * 128)
    N1_pad = _round_up(N1, tn1)
    nk = N1_pad // tn1

    # --- host-side prep: f32 norms, padding, pre-transpose, bf16 for the MXU -
    d0f = descs0.astype(jnp.float32)
    d1f = descs1.astype(jnp.float32)
    sq0 = _pad_axis(jnp.sum(d0f * d0f, axis=-1)[:, None, :], 2, N0_pad, 0.0)   # (B,1,N0p)
    sq1 = _pad_axis(jnp.sum(d1f * d1f, axis=-1)[:, None, :], 2, N1_pad,
                    float("inf"))                                              # (B,1,N1p)
    d0s = _pad_axis((-2.0 * d0f).astype(jnp.bfloat16), 1, N0_pad, 0.0)         # (B,N0p,D)
    d1t = jnp.transpose(_pad_axis(d1f, 1, N1_pad, 0.0).astype(jnp.bfloat16),
                        (0, 2, 1))                                             # (B,D,N1p)

    # --- VMEM budget: actual footprint with margin, capped at half physical --
    blk_d0 = bt * tn0 * D * 2
    blk_d1 = bt * D * tn1 * 2
    blk_sq = bt * 8 * (tn0 + tn1) * 4          # (.,1,.) blocks pad sublanes to 8
    blk_out = bt * 8 * tn0 * 8
    scratch_b = 3 * max(bt, 8) * tn0 * 4
    interm = 3 * bt * tn0 * tn1 * 4            # cross / p / select temporaries
    footprint = 2 * (blk_d0 + blk_d1 + blk_sq + blk_out) + scratch_b + interm
    vmem_limit = int(min(_physical_vmem_bytes() // 2, max(2 * footprint, 16 << 20)))

    ratio, idx = pl.pallas_call(
        _snn_match_kernel,
        out_shape=(
            jax.ShapeDtypeStruct((B, 1, N0_pad), jnp.float32),
            jax.ShapeDtypeStruct((B, 1, N0_pad), jnp.int32),
        ),
        grid=(B // bt, n0_tiles, nk),
        in_specs=[
            pl.BlockSpec((bt, tn0, D), lambda b, i, k: (b, i, 0)),   # -2*d0 (bf16)
            pl.BlockSpec((bt, D, tn1), lambda b, i, k: (b, 0, k)),   # d1^T tile (bf16)
            pl.BlockSpec((bt, 1, tn0), lambda b, i, k: (b, 0, i)),   # ||d0||^2 lane-dense
            pl.BlockSpec((bt, 1, tn1), lambda b, i, k: (b, 0, k)),   # ||d1||^2 tile
        ],
        out_specs=(
            pl.BlockSpec((bt, 1, tn0), lambda b, i, k: (b, 0, i)),
            pl.BlockSpec((bt, 1, tn0), lambda b, i, k: (b, 0, i)),
        ),
        scratch_shapes=[
            pltpu.VMEM((bt, tn0), jnp.float32),   # running min1 (lane-dense)
            pltpu.VMEM((bt, tn0), jnp.float32),   # running min2
            pltpu.VMEM((bt, tn0), jnp.int32),     # running argmin
        ],
        compiler_params=pltpu.CompilerParams(
            dimension_semantics=("parallel", "parallel", "arbitrary"),
            vmem_limit_bytes=vmem_limit,
        ),
    )(d0s, d1t, sq0, sq1)
    return ratio[:, 0, :N0], idx[:, 0, :N0]


# ----------------------------------------------------------------------------
# LocalFeatureMatcher.forward equivalent (device matching + host output assembly)
# ----------------------------------------------------------------------------
def get_laf_center(lafs):
    # kornia.feature.get_laf_center: LAF (B, N, 2, 3) -> centers (B, N, 2)
    return lafs[..., :, 2]


@jax.jit
def _match_device(lafs0, descs0, lafs1, descs1):
    ratio, nn_idx = snn_match(descs0, descs1)
    mask = ratio <= SNN_TH                     # NaN/inf ratios compare False -> rejected
    return ratio, nn_idx, mask, get_laf_center(lafs0), get_laf_center(lafs1)


def local_feature_matcher_forward(data):
    """data: dict with 'image0','image1','lafs0','descriptors0','lafs1','descriptors1'."""
    lafs0, descs0 = data["lafs0"], data["descriptors0"]
    lafs1, descs1 = data["lafs1"], data["descriptors1"]
    num_image_pairs = int(data["image0"].shape[0])

    ratio_d, idx_d, mask_d, kp0_d, kp1_d = _match_device(lafs0, descs0, lafs1, descs1)
    # Single host transfer of everything the variable-length assembly needs.
    ratio, nn_idx, mask, kp0, kp1, lafs0_np, lafs1_np = jax.device_get(
        (ratio_d, idx_d, mask_d, kp0_d, kp1_d, lafs0, lafs1))

    out_kp0, out_kp1, out_conf, out_bidx, out_l0, out_l1 = [], [], [], [], [], []
    for b in range(num_image_pairs):
        idxs0 = np.nonzero(mask[b])[0]
        if idxs0.size == 0:
            continue
        idxs1 = nn_idx[b][idxs0]
        dists = ratio[b][idxs0]

        out_kp0.append(kp0[b, idxs0])
        out_kp1.append(kp1[b, idxs1])
        out_l0.append(lafs0_np[b, idxs0])
        out_l1.append(lafs1_np[b, idxs1])
        out_conf.append(1.0 - dists)
        out_bidx.append(np.full(idxs0.shape[0], b, dtype=np.int64))

    if len(out_bidx) == 0:
        dt = np.dtype(data["image0"].dtype)
        return {
            "keypoints0": np.empty((0, 2), dtype=dt),
            "keypoints1": np.empty((0, 2), dtype=dt),
            "lafs0": np.empty((0, 0, 2, 3), dtype=dt),
            "lafs1": np.empty((0, 0, 2, 3), dtype=dt),
            "confidence": np.empty((0,), dtype=dt),
            "batch_indexes": np.empty((0,), dtype=np.int64),
        }

    return {
        "keypoints0": np.concatenate(out_kp0, axis=0).reshape(-1, 2),
        "keypoints1": np.concatenate(out_kp1, axis=0).reshape(-1, 2),
        "lafs0": np.concatenate(out_l0, axis=0).reshape(1, -1, 2, 3),
        "lafs1": np.concatenate(out_l1, axis=0).reshape(1, -1, 2, 3),
        "confidence": np.concatenate(out_conf, axis=0).reshape(-1),
        "batch_indexes": np.concatenate(out_bidx, axis=0).reshape(-1),
    }


# ----------------------------------------------------------------------------
# Pure-JAX reference mirroring the kernel math (bf16 cross products, f32 norms)
# ----------------------------------------------------------------------------
def snn_match_ref(descs0, descs1):
    d0 = descs0.astype(jnp.bfloat16)
    d1 = descs1.astype(jnp.bfloat16)
    cross = jnp.einsum("bnd,bmd->bnm", d0, d1, preferred_element_type=jnp.float32)
    sq0 = jnp.sum(descs0.astype(jnp.float32) ** 2, -1, keepdims=True)   # (B, N0, 1)
    sq1 = jnp.sum(descs1.astype(jnp.float32) ** 2, -1)[:, None, :]      # (B, 1, N1)
    dm = jnp.sqrt(jnp.maximum(sq0 + sq1 - 2.0 * cross, 0.0))
    vals = jnp.sort(dm, axis=-1)[..., :2]
    idx = jnp.argmin(dm, axis=-1).astype(jnp.int32)
    return vals[..., 0] / vals[..., 1], idx, dm


def _check_against_ref(ratio, idx, descs0, descs1):
    ratio_exp, _idx_exp, dm_exp = snn_match_ref(descs0, descs1)
    ratio_np = np.asarray(ratio)
    idx_np = np.asarray(idx).astype(np.int64)
    dm_np = np.asarray(dm_exp)
    np.testing.assert_allclose(ratio_np, np.asarray(ratio_exp), rtol=1e-4, atol=1e-6)
    # idx must point at a row-minimum (robust to FP ties in the argmin).
    assert idx_np.min() >= 0 and idx_np.max() < descs1.shape[1]
    picked = np.take_along_axis(dm_np, idx_np[..., None], axis=-1)[..., 0]
    np.testing.assert_allclose(picked, dm_np.min(-1), rtol=1e-5, atol=1e-5)


if __name__ == "__main__":
    key = jax.random.PRNGKey(0)
    B, N, D = 2, 128, 128          # batch, keypoints per image, HardNet descriptor dim
    H, W = 16, 16                  # synthetic image size (only shape[0] is used)

    k_img0, k_img1, k_l0, k_l1, k_d0, k_d1, k_d1b = jax.random.split(key, 7)
    image0 = jax.random.uniform(k_img0, (B, 1, H, W), dtype=jnp.float32)
    image1 = jax.random.uniform(k_img1, (B, 1, H, W), dtype=jnp.float32)

    lafs0 = jax.random.normal(k_l0, (B, N, 2, 3), dtype=jnp.float32)
    lafs1 = jax.random.normal(k_l1, (B, N, 2, 3), dtype=jnp.float32)

    # L2-normalized synthetic HardNet-style descriptors
    d0 = jax.random.normal(k_d0, (B, N, D), dtype=jnp.float32)
    d1 = jax.random.normal(k_d1, (B, N, D), dtype=jnp.float32)
    descs0 = d0 / jnp.linalg.norm(d0, axis=-1, keepdims=True)
    descs1 = d1 / jnp.linalg.norm(d1, axis=-1, keepdims=True)

    # --- kernel vs reference: single-tile path ------------------------------
    ratio, idx = snn_match(descs0, descs1)
    jax.block_until_ready((ratio, idx))
    _check_against_ref(ratio, idx, descs0, descs1)

    # --- kernel vs reference: tiled-N1 online path (ragged -> padded N1) ----
    N1b = 320
    d1b = jax.random.normal(k_d1b, (B, N1b, D), dtype=jnp.float32)
    descs1b = d1b / jnp.linalg.norm(d1b, axis=-1, keepdims=True)
    ratio_b, idx_b = snn_match(descs0, descs1b, tile_n1=128)
    jax.block_until_ready((ratio_b, idx_b))
    _check_against_ref(ratio_b, idx_b, descs0, descs1b)

    # --- kernel vs reference: ragged N0 (padded rows sliced off) ------------
    descs0c = descs0[:, :96, :]
    ratio_c, idx_c = snn_match(descs0c, descs1b, tile_n1=128)
    jax.block_until_ready((ratio_c, idx_c))
    _check_against_ref(ratio_c, idx_c, descs0c, descs1b)

    # --- full forward (matching + output assembly) --------------------------
    data = {
        "image0": image0, "image1": image1,
        "lafs0": lafs0, "descriptors0": descs0,
        "lafs1": lafs1, "descriptors1": descs1,
    }
    out = local_feature_matcher_forward(data)
    assert out["keypoints0"].shape[1] == 2
    assert out["keypoints1"].shape[1] == 2
    assert out["lafs0"].shape[2:] == (2, 3)
    assert out["confidence"].shape[0] == out["keypoints0"].shape[0]
    assert out["batch_indexes"].shape[0] == out["keypoints0"].shape[0]

    print("KERNEL_OK")
</pallas_src>

<mosaic_0001>
module attributes {stable_mosaic.version = 11 : i64} {
  func.func @_snn_match_kernel(%arg0: i32, %arg1: i32, %arg2: i32, %arg3: memref<1x128x128xbf16, #tpu.memory_space<vmem>>, %arg4: memref<1x128x128xbf16, #tpu.memory_space<vmem>>, %arg5: memref<1x1x128xf32, #tpu.memory_space<vmem>>, %arg6: memref<1x1x128xf32, #tpu.memory_space<vmem>>, %arg7: memref<1x1x128xf32, #tpu.memory_space<vmem>>, %arg8: memref<1x1x128xi32, #tpu.memory_space<vmem>>, %arg9: memref<1x128xf32, #tpu.memory_space<vmem>>, %arg10: memref<1x128xf32, #tpu.memory_space<vmem>>, %arg11: memref<1x128xi32, #tpu.memory_space<vmem>>) attributes {dimension_semantics = [#tpu.dimension_semantics<parallel>, #tpu.dimension_semantics<parallel>, #tpu.dimension_semantics<arbitrary>], iteration_bounds = array<i64: 2, 1, 1>, scalar_prefetch = 0 : i64, scratch_operands = 3 : i64, tpu.core_type = #tpu.core_type<tc>, window_params = [{transform_indices = @transform_0, window_bounds = array<i64: 1, 128, 128>}, {transform_indices = @transform_1, window_bounds = array<i64: 1, 128, 128>}, {transform_indices = @transform_2, window_bounds = array<i64: 1, 1, 128>}, {transform_indices = @transform_3, window_bounds = array<i64: 1, 1, 128>}, {transform_indices = @transform_4, window_bounds = array<i64: 1, 1, 128>}, {transform_indices = @transform_5, window_bounds = array<i64: 1, 1, 128>}]} {
    %c0_i32 = arith.constant 0 : i32
    %0 = arith.cmpi eq, %arg2, %c0_i32 : i32
    %1 = arith.extui %0 : i1 to i32
    %c0_i32_0 = arith.constant 0 : i32
    %2 = arith.cmpi ne, %1, %c0_i32_0 : i32
    scf.if %2 {
      %cst_27 = arith.constant 0x7F800000 : f32
      %48 = vector.broadcast %cst_27 : f32 to vector<1x128xf32>
      %c0_28 = arith.constant 0 : index
      %c0_29 = arith.constant 0 : index
      %49 = vector.load %arg9[%c0_28, %c0_29] : memref<1x128xf32, #tpu.memory_space<vmem>>, vector<1x128xf32>
      tpu.vector_store %arg9[%c0_28, %c0_29], %48 {strides = array<i32>} : memref<1x128xf32, #tpu.memory_space<vmem>>, vector<1x128xf32>,
      %cst_30 = arith.constant 0x7F800000 : f32
      %50 = vector.broadcast %cst_30 : f32 to vector<1x128xf32>
      %c0_31 = arith.constant 0 : index
      %c0_32 = arith.constant 0 : index
      %51 = vector.load %arg10[%c0_31, %c0_32] : memref<1x128xf32, #tpu.memory_space<vmem>>, vector<1x128xf32>
      tpu.vector_store %arg10[%c0_31, %c0_32], %50 {strides = array<i32>} : memref<1x128xf32, #tpu.memory_space<vmem>>, vector<1x128xf32>,
      %c0_i32_33 = arith.constant 0 : i32
      %52 = vector.broadcast %c0_i32_33 : i32 to vector<1x128xi32>
      %c0_34 = arith.constant 0 : index
      %c0_35 = arith.constant 0 : index
      %53 = vector.load %arg11[%c0_34, %c0_35] : memref<1x128xi32, #tpu.memory_space<vmem>>, vector<1x128xi32>
      tpu.vector_store %arg11[%c0_34, %c0_35], %52 {strides = array<i32>} : memref<1x128xi32, #tpu.memory_space<vmem>>, vector<1x128xi32>,
    } else {
    }
    %c0 = arith.constant 0 : index
    %c0_1 = arith.constant 0 : index
    %c0_2 = arith.constant 0 : index
    %3 = vector.load %arg3[%c0, %c0_1, %c0_2] : memref<1x128x128xbf16, #tpu.memory_space<vmem>>, vector<1x128x128xbf16>
    %c0_3 = arith.constant 0 : index
    %c0_4 = arith.constant 0 : index
    %c0_5 = arith.constant 0 : index
    %4 = vector.load %arg4[%c0_3, %c0_4, %c0_5] : memref<1x128x128xbf16, #tpu.memory_space<vmem>>, vector<1x128x128xbf16>
    "tpu.trace_start"() <{level = 10 : i32, message = "bnd,bdm->bnm"}> : () -> ()
    %cst = arith.constant dense<0.000000e+00> : vector<1x128x128xf32>
    %5 = tpu.matmul %3, %4, %cst {dimension_numbers = #tpu.dot_dimension_numbers<[2], [1], [1], [2], [0, 0, 0, 1, 1, 2], [0], [0]>} : vector<1x128x128xbf16>, vector<1x128x128xbf16>, vector<1x128x128xf32> -> vector<1x128x128xf32>
    "tpu.trace_stop"() : () -> ()
    %c0_6 = arith.constant 0 : index
    %c0_7 = arith.constant 0 : index
    %c0_8 = arith.constant 0 : index
    %6 = vector.load %arg6[%c0_6, %c0_7, %c0_8] : memref<1x1x128xf32, #tpu.memory_space<vmem>>, vector<1x1x128xf32>
    %7 = vector.broadcast %6 : vector<1x1x128xf32> to vector<1x128x128xf32>
    %8 = arith.addf %7, %5 : vector<1x128x128xf32>
    %c128_i32 = arith.constant 128 : i32
    %9 = arith.muli %arg2, %c128_i32 : i32
    %10 = tpu.iota {dimensions = array<i32: 2>} : vector<1x1x128xi32>
    %11 = vector.broadcast %9 : i32 to vector<1x1x128xi32>
    %12 = arith.addi %11, %10 : vector<1x1x128xi32>
    %cst_9 = arith.constant dense<0x7F800000> : vector<1x128xf32>
    %13 = vector.multi_reduction <minimumf>, %8, %cst_9 [2] : vector<1x128x128xf32> to vector<1x128xf32>
    %14 = vector.shape_cast %13 : vector<1x128xf32> to vector<1x128x1xf32>
    %15 = vector.broadcast %14 : vector<1x128x1xf32> to vector<1x128x128xf32>
    %16 = arith.cmpf oeq, %8, %15 : vector<1x128x128xf32>
    %c2147483647_i32 = arith.constant 2147483647 : i32
    %17 = vector.shape_cast %12 : vector<1x1x128xi32> to vector<1x1x128xi32>
    %18 = vector.broadcast %17 : vector<1x1x128xi32> to vector<1x128x128xi32>
    %19 = vector.broadcast %c2147483647_i32 : i32 to vector<1x128x128xi32>
    %20 = arith.select %16, %18, %19 : vector<1x128x128xi1>, vector<1x128x128xi32>
    %cst_10 = arith.constant dense<2147483647> : vector<1x128xi32>
    %21 = vector.multi_reduction <minsi>, %20, %cst_10 [2] : vector<1x128x128xi32> to vector<1x128xi32>
    %22 = vector.shape_cast %21 : vector<1x128xi32> to vector<1x128x1xi32>
    %23 = vector.broadcast %12 : vector<1x1x128xi32> to vector<1x128x128xi32>
    %24 = vector.broadcast %22 : vector<1x128x1xi32> to vector<1x128x128xi32>
    %25 = arith.cmpi eq, %23, %24 : vector<1x128x128xi32>
    %cst_11 = arith.constant 0x7F800000 : f32
    %26 = vector.broadcast %cst_11 : f32 to vector<1x128x128xf32>
    %27 = arith.select %25, %26, %8 : vector<1x128x128xi1>, vector<1x128x128xf32>
    %cst_12 = arith.constant dense<0x7F800000> : vector<1x128xf32>
    %28 = vector.multi_reduction <minimumf>, %27, %cst_12 [2] : vector<1x128x128xf32> to vector<1x128xf32>
    %29 = vector.shape_cast %28 : vector<1x128xf32> to vector<1x128x1xf32>
    %30 = vector.shape_cast %14 : vector<1x128x1xf32> to vector<1x128xf32>
    %31 = vector.shape_cast %22 : vector<1x128x1xi32> to vector<1x128xi32>
    %32 = vector.shape_cast %29 : vector<1x128x1xf32> to vector<1x128xf32>
    %c0_13 = arith.constant 0 : index
    %c0_14 = arith.constant 0 : index
    %33 = vector.load %arg9[%c0_13, %c0_14] : memref<1x128xf32, #tpu.memory_space<vmem>>, vector<1x128xf32>
    %c0_15 = arith.constant 0 : index
    %c0_16 = arith.constant 0 : index
    %34 = vector.load %arg10[%c0_15, %c0_16] : memref<1x128xf32, #tpu.memory_space<vmem>>, vector<1x128xf32>
    %c0_17 = arith.constant 0 : index
    %c0_18 = arith.constant 0 : index
    %35 = vector.load %arg11[%c0_17, %c0_18] : memref<1x128xi32, #tpu.memory_space<vmem>>, vector<1x128xi32>
    %36 = arith.minimumf %33, %30 : vector<1x128xf32>
    %c0_19 = arith.constant 0 : index
    %c0_20 = arith.constant 0 : index
    %37 = vector.load %arg9[%c0_19, %c0_20] : memref<1x128xf32, #tpu.memory_space<vmem>>, vector<1x128xf32>
    tpu.vector_store %arg9[%c0_19, %c0_20], %36 {strides = array<i32>} : memref<1x128xf32, #tpu.memory_space<vmem>>, vector<1x128xf32>,
    %38 = arith.cmpf olt, %30, %33 : vector<1x128xf32>
    %39 = arith.select %38, %31, %35 : vector<1x128xi1>, vector<1x128xi32>
    %c0_21 = arith.constant 0 : index
    %c0_22 = arith.constant 0 : index
    %40 = vector.load %arg11[%c0_21, %c0_22] : memref<1x128xi32, #tpu.memory_space<vmem>>, vector<1x128xi32>
    tpu.vector_store %arg11[%c0_21, %c0_22], %39 {strides = array<i32>} : memref<1x128xi32, #tpu.memory_space<vmem>>, vector<1x128xi32>,
    %41 = arith.maximumf %33, %30 : vector<1x128xf32>
    %42 = arith.minimumf %34, %32 : vector<1x128xf32>
    %43 = arith.minimumf %41, %42 : vector<1x128xf32>
    %c0_23 = arith.constant 0 : index
    %c0_24 = arith.constant 0 : index
    %44 = vector.load %arg10[%c0_23, %c0_24] : memref<1x128xf32, #tpu.memory_space<vmem>>, vector<1x128xf32>
    tpu.vector_store %arg10[%c0_23, %c0_24], %43 {strides = array<i32>} : memref<1x128xf32, #tpu.memory_space<vmem>>, vector<1x128xf32>,
    %c0_i32_25 = arith.constant 0 : i32
    %45 = arith.cmpi eq, %arg2, %c0_i32_25 : i32
    %46 = arith.extui %45 : i1 to i32
    %c0_i32_26 = arith.constant 0 : i32
    %47 = arith.cmpi ne, %46, %c0_i32_26 : i32
    scf.if %47 {
      %c0_27 = arith.constant 0 : index
      %c0_28 = arith.constant 0 : index
      %c0_29 = arith.constant 0 : index
      %48 = vector.load %arg5[%c0_27, %c0_28, %c0_29] : memref<1x1x128xf32, #tpu.memory_space<vmem>>, vector<1x1x128xf32>
      %49 = vector.shape_cast %48 : vector<1x1x128xf32> to vector<1x128xf32>
      %c0_30 = arith.constant 0 : index
      %c0_31 = arith.constant 0 : index
      %50 = vector.load %arg9[%c0_30, %c0_31] : memref<1x128xf32, #tpu.memory_space<vmem>>, vector<1x128xf32>
      %51 = arith.addf %49, %50 : vector<1x128xf32>
      %cst_32 = arith.constant 0.000000e+00 : f32
      %52 = vector.broadcast %cst_32 : f32 to vector<1x128xf32>
      %53 = arith.maximumf %51, %52 : vector<1x128xf32>
      %c0_33 = arith.constant 0 : index
      %c0_34 = arith.constant 0 : index
      %54 = vector.load %arg10[%c0_33, %c0_34] : memref<1x128xf32, #tpu.memory_space<vmem>>, vector<1x128xf32>
      %55 = arith.addf %49, %54 : vector<1x128xf32>
      %cst_35 = arith.constant 0.000000e+00 : f32
      %56 = vector.broadcast %cst_35 : f32 to vector<1x128xf32>
      %57 = arith.maximumf %55, %56 : vector<1x128xf32>
      %58 = math.sqrt %53 : vector<1x128xf32>
      %59 = math.sqrt %57 : vector<1x128xf32>
      %60 = arith.divf %58, %59 : vector<1x128xf32>
      %c0_36 = arith.constant 0 : index
      %c0_37 = arith.constant 0 : index
      %c0_38 = arith.constant 0 : index
      %61 = vector.load %arg7[%c0_36, %c0_37, %c0_38] : memref<1x1x128xf32, #tpu.memory_space<vmem>>, vector<1x1x128xf32>
      %62 = vector.shape_cast %61 : vector<1x1x128xf32> to vector<1x128xf32>
      %63 = vector.shape_cast %60 : vector<1x128xf32> to vector<1x1x128xf32>
      tpu.vector_store %arg7[%c0_36, %c0_37, %c0_38], %63 {strides = array<i32>} : memref<1x1x128xf32, #tpu.memory_space<vmem>>, vector<1x1x128xf32>,
      %c0_39 = arith.constant 0 : index
      %c0_40 = arith.constant 0 : index
      %64 = vector.load %arg11[%c0_39, %c0_40] : memref<1x128xi32, #tpu.memory_space<vmem>>, vector<1x128xi32>
      %c0_41 = arith.constant 0 : index
      %c0_42 = arith.constant 0 : index
      %c0_43 = arith.constant 0 : index
      %65 = vector.load %arg8[%c0_41, %c0_42, %c0_43] : memref<1x1x128xi32, #tpu.memory_space<vmem>>, vector<1x1x128xi32>
      %66 = vector.shape_cast %65 : vector<1x1x128xi32> to vector<1x128xi32>
      %67 = vector.shape_cast %64 : vector<1x128xi32> to vector<1x1x128xi32>
      tpu.vector_store %arg8[%c0_41, %c0_42, %c0_43], %67 {strides = array<i32>} : memref<1x1x128xi32, #tpu.memory_space<vmem>>, vector<1x1x128xi32>,
    } else {
    }
    return
  }
  func.func @transform_0(%arg0: i32, %arg1: i32, %arg2: i32) -> (i32, i32, i32) {
    %c0_i32 = arith.constant 0 : i32
    %c0_i32_0 = arith.constant 0 : i32
    return %arg0, %arg1, %c0_i32 : i32, i32, i32
  }
  func.func @transform_1(%arg0: i32, %arg1: i32, %arg2: i32) -> (i32, i32, i32) {
    %c0_i32 = arith.constant 0 : i32
    %c0_i32_0 = arith.constant 0 : i32
    return %arg0, %c0_i32, %arg2 : i32, i32, i32
  }
  func.func @transform_2(%arg0: i32, %arg1: i32, %arg2: i32) -> (i32, i32, i32) {
    %c0_i32 = arith.constant 0 : i32
    %c0_i32_0 = arith.constant 0 : i32
    return %arg0, %c0_i32, %arg1 : i32, i32, i32
  }
  func.func @transform_3(%arg0: i32, %arg1: i32, %arg2: i32) -> (i32, i32, i32) {
    %c0_i32 = arith.constant 0 : i32
    %c0_i32_0 = arith.constant 0 : i32
    return %arg0, %c0_i32, %arg2 : i32, i32, i32
  }
  func.func @transform_4(%arg0: i32, %arg1: i32, %arg2: i32) -> (i32, i32, i32) {
    %c0_i32 = arith.constant 0 : i32
    %c0_i32_0 = arith.constant 0 : i32
    return %arg0, %c0_i32, %arg1 : i32, i32, i32
  }
  func.func @transform_5(%arg0: i32, %arg1: i32, %arg2: i32) -> (i32, i32, i32) {
    %c0_i32 = arith.constant 0 : i32
    %c0_i32_0 = arith.constant 0 : i32
    return %arg0, %c0_i32, %arg1 : i32, i32, i32
  }
}

</mosaic_0001>

<bundles_post_ra>
// kernel: tpu_custom_call.1
= control target key start
LH: loop header
LB: loop body
LE: loop exit
PB: predicated region body
PF: predicated region fallthrough
CT: control target
= control target key end

     0   :  { %s4914_s0 = inlined_call_operand.hbm [shape: bf16[2,128,128], index: 0, kind: input, shape index: {}]   ;;  %s4915_s1 = inlined_call_operand.hbm [shape: bf16[2,128,128], index: 1, kind: input, shape index: {}]   ;;  %s4916_s2 = inlined_call_operand.hbm [shape: f32[2,1,128], index: 2, kind: input, shape index: {}]   ;;  %s4917_s3 = inlined_call_operand.vmem [shape: f32[2,1,128], index: 3, kind: input, shape index: {}]   ;;  %s4918_s4 = inlined_call_operand.hbm [shape: f32[2,1,128], index: 4, kind: output, shape index: {0}]   ;;  %s4919_s5 = inlined_call_operand.hbm [shape: s32[2,1,128], index: 5, kind: output, shape index: {1}]  }
   0x1   :  { %5084 = sst [smem:[#allocation81_spill]] %s4915_s1 }
   0x2   :  { %5085 = sst [smem:[#allocation82_spill]] %s4918_s4 }
   0x3   :  { %11 = vsyncpa [#allocation6], 0 }
   0x4   :  { %13 = vsyncpa [#allocation6 + $0x1], 0 }
   0x5   :  { %14 = vsyncpa [#allocation9], 0 }
   0x6   :  { %16 = vsyncpa [#allocation9 + $0x1], 0 }
   0x7   :  { %17 = vsyncpa [#allocation7], 0 }
   0x8   :  { %19 = vsyncpa [#allocation7 + $0x1], 0 }
   0x9   :  { %20 = vsyncpa [#allocation13], 0 }
   0xa   :  { %22 = vsyncpa [#allocation13 + $0x1], 0  ;;  %s3030_s18 = smov 0   ;;  %s3032_s19 = smov 0  }
   0xb   :  { %s3034_s20 = smov 0   ;;  %s3036_s21 = smov 0  }
   0xc   :  { %s3038_s22 = smov 0   ;;  %s3040_s23 = smov 0  }
   0xd LB: > { %5086 = sst [smem:[#allocation18_spill]] %s2974_s18  ;;  %s3061_s24 = sadd.s32 4294967295, %s2994_s23   ;;  %s2994_s23 = sphi %s3040_s23, %s28_s23   ;;  %s2990_s22 = sphi %s3038_s22, %s5372_s22   ;;  %s2986_s21 = sphi %s3036_s21, %s5371_s21   ;;  %s2982_s20 = sphi %s3034_s20, %s5367_s20   ;;  %s2978_s19 = sphi %s3032_s19, %s5370_s19   ;;  %s2974_s18 = sphi %s3030_s18, %s5369_s18  }
   0xe   : > { %5087 = sst [smem:[#allocation19_spill]] %s2982_s20  ;;  %s2540_s25 = sadd.s32 4294967294, %s2994_s23  }
   0xf   : > { %5088 = sst [smem:[#allocation20_spill]] %s2994_s23  ;;  %s47_s26 = sadd.s32 1, %s2990_s22 }
  0x10   : > { %s56_s27 = sadd.s32 1, %s2982_s20  ;;  %p49_p0 = scmp.ge.s32.totalorder %s47_s26, 2 }
  0x11   : > { %p63_p1 = scmp.ne.s32.totalorder %s2982_s20, %s2978_s19  ;;  %p64_p2 = scmp.eq.s32.totalorder %s2994_s23, 0 }
  0x12   : > { %p69_p3 = scmp.ne.s32.totalorder %s2978_s19, %s2974_s18  ;;  %s5374_s26 = smov (%p49_p0, %s47_s26), 0 }
  0x13   : > { %5089 = sst [smem:[#allocation21_spill]] %s5374_s26  ;;  %p3073_p4 = por %p64_p2, %p63_p1 }
  0x14   : > { %p70_p5 = scmp.eq.s32.totalorder %s3061_s24, 0  ;;  %s51_s29 = ssub.s32 %s2990_s22, %s5374_s26 }
  0x15   : > { %p179_p6 = scmp.eq.s32.totalorder %s3061_s24, 1  ;;  %p54_p7 = scmp.eq.s32.totalorder %s51_s29, 0 }
  0x16   : > { %p3081_p8 = por %p70_p5, %p69_p3  ;;  %p185_p10 = scmp.eq.s32.totalorder %s2540_s25, 1 }
  0x17   : > { %p3085_p9 = por %p179_p6, %p63_p1  ;;  %p2542_p12 = scmp.ge.s32.totalorder %s2994_s23, 2 }
  0x18   : > { %s3090_s7 = scalar_select %p54_p7, %s2982_s20, %s56_s27  }
  0x19   : > { %p3092_p11 = por %p185_p10, %p69_p3  ;;  %p2687_p13 = scmp.lt.s32.totalorder %s2994_s23, 2 }
  0x1a   : > { %5093 = sst [smem:[#allocation22_spill]] %s3090_s7  ;;  %s3099_s9 = sand.u32 1, %s2982_s20  }
  0x1b   : > { %s5094_s8 = scalar_select %p3092_p11, 1, 0 }
  0x1c   : > { %s2543_s10 = sshll.u32 %s3099_s9, 6  ;;  %s2618_s11 = sshll.u32 %s2990_s22, 6 }
  0x1d   : > { %5095 = sst [smem:[#allocation23_spill]] %s5094_s8  ;;  %p3105_p0 = pnand %p2687_p13, %p3073_p4 }
  0x1e   : > { %s257_s13 = sand.u32 1, %s2994_s23   ;;  %s5097_s1 = sld [smem:[#allocation81_spill]] }
  0x1f   : > { %s261_s25 = scalar_lea.vmem [#allocation8], %s2543_s10  ;;  %s258_s29 = scalar_lea.sflag [#allocation9], %s257_s13 }
  0x20   : > { %s270_s27 = sshll.u32 %s261_s25, 4  ;;  %s2996_s28 = smov 64   ;;  %s271_s27 = int_to_ptr.vmem [resolvable:$true] %s270_s27 }
  0x21   : > { %s2997_s26 = smov 4   ;;  %p2549_p1 = scmp.ge.s32.totalorder %s2994_s23, 1 }
  0x22   : > { %p305_p2 = scmp.lt.s32.totalorder %s2994_s23, 3  ;;  %s244_s25 = scalar_lea.hbm %s4914_s0, %s2618_s11 }
  0x23   : > { %s237_s7 = scalar_lea.vmem [#allocation5], %s2543_s10  ;;  %s234_s13 = scalar_lea.sflag [#allocation6], %s3099_s9 }
  0x24   : > { %s267_s16 = scalar_lea.hbm %s5097_s1, %s2618_s11  ;;  %p3117_p3 = pnand %p2549_p1, %p305_p2 }
  0x25   : > { %s268_s17 = sshll.u32 %s267_s16, 4  ;;  %s245_s1 = sshll.u32 %s244_s25, 4  ;;  %s269_s17 = int_to_ptr.hbm [resolvable:$true] %s268_s17  ;;  %s246_s1 = int_to_ptr.hbm [resolvable:$true] %s245_s1 }
  0x26   : > { %2676 = dma.hbm_to_vmem [thread:$0]  (!%p3105_p0), %s269_s17, 1024, %s271_s27, %s258_s29, %s2996_s28, %s2996_s28, %s2997_s26  }
  0x27   : > { %s247_s20 = sshll.u32 %s237_s7, 4  ;;  %s287_s23 = scalar_lea.hbm %s4916_s2, %s2990_s22  ;;  %s248_s20 = int_to_ptr.vmem [resolvable:$true] %s247_s20 }
  0x28   : > { %2673 = dma.hbm_to_vmem [thread:$0]  (!%p3105_p0), %s246_s1, 1024, %s248_s20, %s234_s13, %s2996_s28, %s2996_s28, %s2997_s26  }
  0x29   : > { %s289_s8 = sshll.u32 %s287_s23, 4  ;;  %s283_s18 = scalar_lea.vmem [#allocation10], %s3099_s9  ;;  %s290_s8 = int_to_ptr.hbm [resolvable:$true] %s289_s8 }
  0x2a   : > { %s291_s4 = sshll.u32 %s283_s18, 4  ;;  %309 = sbr.rel (%p3117_p3) target bundleno = 1601 (0x641), region = 36  ;;  %s292_s4 = int_to_ptr.vmem [resolvable:$true] %s291_s4 }
  0x2b   : > { %2679 = dma.hbm_to_vmem [thread:$0]  (!%p3105_p0), %s290_s8, 16, %s292_s4, %s258_s29  }
  0x2f   : > { %s3137_s7 = sand.u32 1, %s2978_s19  }
  0x30   : > { %s2550_s1 = sshll.u32 %s3137_s7, 6  ;;  %s312_s20 = scalar_lea.sflag [#allocation6], %s3137_s7 }
  0x31   : > { %s3141_s26 = scalar_lea.vmem [#allocation5], %s2550_s1 }
  0x32   : > { %2957 = dma.done.wait (%p3081_p8), %s312_s20, 1024  }
  0x33   : > { %2959 = vsyncadd (%p3081_p8), %s312_s20, 4294966272  ;;  %s321_s4 = sand.u32 1, %s3061_s24   ;;  %s3148_s23 = scalar_lea.vmem [#allocation8], %s2550_s1 }
  0x34   : > { %s322_s18 = scalar_lea.sflag [#allocation9], %s321_s4 }
  0x35   : > { %2961 = dma.done.wait (%p3081_p8), %s322_s18, 1040  }
  0x36   : > { %2963 = vsyncadd (%p3081_p8), %s322_s18, 4294966256  ;;  %v592_v0 = vlaneseq  ;;  %v2998_v1 = vmov inf   ;;  %v2635_v5 = vld [vmem:[%s3148_s23 + $0x38] sm:$0xff]  ;;  %v2634_v7 = vld [vmem:[%s3148_s23 + $0x30] sm:$0xff]  ;;  %p381_p4 = scmp.lt.s32.totalorder %s2986_s21, 1  ;;  %v2999_v27 = vmov 0   ;;  %s2371_s14 = scalar_lea.hbm %s4919_s5, %s2986_s21 }
  0x37   : > { %391 = vst [vmem:[#allocation2] sm:$0x1] %v2998_v1  ;;  %522 = vmatpush.bf16.msra.mxu0 %v2635_v5  ;;  %2638 = vmatpush.bf16.msra.mxu3 %v2635_v5  ;;  %v2633_v8 = vld [vmem:[%s3148_s23 + $0x28] sm:$0xff]  ;;  %v2632_v10 = vld [vmem:[%s3148_s23 + $0x20] sm:$0xff]  ;;  %v2631_v13 = vld [vmem:[%s3148_s23 + $0x18] sm:$0xff]  ;;  %s379_s12 = scalar_lea.vmem [#allocation12], %s3137_s7 }
  0x38   : > { %v3155_v2 = vshrl.u32 %v592_v0, 7  ;;  %392 = vst [vmem:[#allocation3] sm:$0x1] %v2998_v1  ;;  %2637 = vmatpush.bf16.msra.mxu2 %v2635_v5  ;;  %2636 = vmatpush.bf16.msra.mxu1 %v2635_v5  ;;  %v2630_v14 = vld [vmem:[%s3148_s23 + $0x10] sm:$0xff]  ;;  %v2629_v15 = vld [vmem:[%s3148_s23 + $0x8] sm:$0xff]  ;;  %v2628_v17 = vld [vmem:[%s3148_s23] sm:$0xff] }
  0x39   : > { %s3199_s24 = scalar_select %p381_p4, %s2986_s21, 1  ;;  %v2620_v19 = vld [vmem:[%s3141_s26] sm:$0xff]  ;;  %v2626_v20 = vld [vmem:[%s3141_s26 + $0x30] sm:$0xff]  ;;  %v2627_v26 = vld [vmem:[%s3141_s26 + $0x38] sm:$0xff]  ;;  %393 = vst [vmem:[#allocation4] sm:$0x1] %v2999_v27 }
  0x3a   : > { %2741 = vset.pattern.permute.xlu2 %v3155_v2  ;;  %v3159_v3 = vadd.s32 8, %v3155_v2  ;;  %v3162_v4 = vadd.s32 16, %v3155_v2  ;;  %v3175_v9 = vadd.s32 24, %v3155_v2  ;;  %v3179_v11 = vadd.s32 32, %v3155_v2  ;;  %v2624_v22 = vld [vmem:[%s3141_s26 + $0x20] sm:$0xff]  ;;  %v2622_v23 = vld [vmem:[%s3141_s26 + $0x10] sm:$0xff] }
  0x3b   : > { %523 = vmatpush.bf16.msra.mxu0 %v2634_v7  ;;  %2641 = vmatpush.bf16.msra.mxu3 %v2634_v7  ;;  %v3183_v12 = vadd.s32 56, %v3155_v2  ;;  %v3195_v16 = vadd.s32 40, %v3155_v2  ;;  %v1398_v18 = vadd.s32 48, %v3155_v2  ;;  %s386_s9 = scalar_lea.vmem %s4917_s3, %s3199_s24  ;;  %v3210_v21 = vadd.s32 96, %v3155_v2  ;;  %v2623_v28 = vld [vmem:[%s3141_s26 + $0x18] sm:$0xff]  ;;  %v2621_v34 = vld [vmem:[%s3141_s26 + $0x8] sm:$0xff] }
  0x3c   : > { %2742 = vset.pattern.permute.xlu1 %v3159_v3  ;;  %2743 = vset.pattern.permute.xlu0 %v3162_v4  ;;  %v1410_v24 = vadd.s32 64, %v3155_v2  ;;  %v1416_v25 = vadd.s32 72, %v3155_v2  ;;  %v1422_v30 = vadd.s32 80, %v3155_v2  ;;  %v1428_v31 = vadd.s32 88, %v3155_v2  ;;  %v2625_v35 = vld [vmem:[%s3141_s26 + $0x28] sm:$0xff]  ;;  %s2373_s15 = sshll.u32 %s379_s12, 4  ;;  %s2374_s15 = int_to_ptr.vmem [resolvable:$true] %s2373_s15 }
  0x3d   : > { %2640 = vmatpush.bf16.msra.mxu2 %v2634_v7  ;;  %2639 = vmatpush.bf16.msra.mxu1 %v2634_v7  ;;  %v1440_v32 = vadd.s32 104, %v3155_v2  ;;  %v1446_v33 = vadd.s32 112, %v3155_v2  ;;  %v1452_v36 = vadd.s32 120, %v3155_v2  ;;  %v3262_v37 = vld [vmem:[%s386_s9] ss:$0 sm:$0xff]  ;;  %s2375_s16 = sshll.u32 %s2371_s14, 4  ;;  %s2376_s16 = int_to_ptr.hbm [resolvable:$true] %s2375_s16 }
  0x3e   : > { %v3167_v6 = vld [vmem:[#allocation2] ss:$0 sm:$0xff]  ;;  %s2348_s25 = scalar_lea.sflag [#allocation13], %s3137_s7  ;;  %s2890_s13 = sshra.s32 %s2376_s16, 4  ;;  %s2891_s13 = int_to_ptr.hbm [resolvable:$true] %s2890_s13 }
  0x3f   : > { %524 = vmatpush.bf16.msra.mxu0 %v2633_v8  ;;  %2644 = vmatpush.bf16.msra.mxu3 %v2633_v8  ;;  %s2892_s17 = scalar_lea.hbm %s2891_s13, 1  ;;  %s2896_s20 = scalar_lea.hbm %s4919_s5, 2 }
  0x40   : > { %v3225_v29 = vld [vmem:[#allocation4] ss:$0 sm:$0xff]  ;;  %p2893_p5 = scmp.ne.s32.totalorder %s2891_s13, %s2892_s17  ;;  %p2897_p8 = scmp.lt.s32.totalorder %s2891_s13, %s4919_s5 }
  0x41   : > { %2643 = vmatpush.bf16.msra.mxu2 %v2633_v8  ;;  %2642 = vmatpush.bf16.msra.mxu1 %v2633_v8  ;;  %p2898_p10 = scmp.lt.s32.totalorder %s2896_s20, %s2892_s17 }
  0x42   : > { %1364 = vperm.xlu2 %2741, %v3167_v6   ;;  %p2894_p6 = pnand %p2893_p5, %p3085_p9 }
  0x43   : > { %525 = vmatpush.bf16.msra.mxu0 %v2632_v10  ;;  %2647 = vmatpush.bf16.msra.mxu3 %v2632_v10  ;;  %p2899_p13 = por %p2898_p10, %p2897_p8 }
  0x44   : > { %1370 = vperm.xlu1 %2742, %v3167_v6   ;;  %1376 = vperm.xlu0 %2743, %v3167_v6   ;;  %p2895_p7 = pneg %p2894_p6 }
  0x45   : > { %2646 = vmatpush.bf16.msra.mxu2 %v2632_v10  ;;  %2645 = vmatpush.bf16.msra.mxu1 %v2632_v10 }
  0x46   : > { %p2900_p0 = pnand %p2899_p13, %p2895_p7 }
  0x47   : > { %526 = vmatpush.bf16.msra.mxu0 %v2631_v13  ;;  %2650 = vmatpush.bf16.msra.mxu3 %v2631_v13 }
  0x49   : > { %2649 = vmatpush.bf16.msra.mxu2 %v2631_v13  ;;  %2648 = vmatpush.bf16.msra.mxu1 %v2631_v13 }
  0x4a   : > { %2744 = vset.pattern.permute.xlu2 %v3175_v9 }
  0x4b   : > { %527 = vmatpush.bf16.msra.mxu0 %v2630_v14  ;;  %2653 = vmatpush.bf16.msra.mxu3 %v2630_v14 }
  0x4c   : > { %2745 = vset.pattern.permute.xlu1 %v3179_v11  ;;  %2748 = vset.pattern.permute.xlu0 %v3183_v12 }
  0x4d   : > { %2652 = vmatpush.bf16.msra.mxu2 %v2630_v14  ;;  %2651 = vmatpush.bf16.msra.mxu1 %v2630_v14 }
  0x4f   : > { %528 = vmatpush.bf16.msra.mxu0 %v2629_v15  ;;  %2656 = vmatpush.bf16.msra.mxu3 %v2629_v15 }
  0x51   : > { %2655 = vmatpush.bf16.msra.mxu2 %v2629_v15  ;;  %2654 = vmatpush.bf16.msra.mxu1 %v2629_v15 }
  0x52   : > { %1382 = vperm.xlu2 %2744, %v3167_v6  }
  0x53   : > { %529 = vmatpush.bf16.msra.mxu0 %v2628_v17  ;;  %2659 = vmatpush.bf16.msra.mxu3 %v2628_v17 }
  0x54   : > { %1388 = vperm.xlu1 %2745, %v3167_v6   ;;  %1406 = vperm.xlu0 %2748, %v3167_v6  }
  0x55   : > { %2658 = vmatpush.bf16.msra.mxu2 %v2628_v17  ;;  %2657 = vmatpush.bf16.msra.mxu1 %v2628_v17 }
  0x56   : > { %530 = vmatmul.bf16.vlgmr.msra.gmra.mxu0 %v2620_v19  ;;  %560 = vmatmul.bf16.vlgmr.msra.gmra.mxu3 %v2626_v20 }
  0x58   : > { %550 = vmatmul.bf16.vlgmr.msra.gmra.mxu2 %v2624_v22  ;;  %540 = vmatmul.bf16.vlgmr.msra.gmra.mxu1 %v2622_v23 }
  0x5a   : > { %2746 = vset.pattern.permute.xlu2 %v3195_v16 }
  0x5c   : > { %2747 = vset.pattern.permute.xlu1 %v1398_v18  ;;  %2753 = vset.pattern.permute.xlu0 %v3210_v21 }
  0x62   : > { %1394 = vperm.xlu2 %2746, %v3167_v6  }
  0x64   : > { %1400 = vperm.xlu1 %2747, %v3167_v6   ;;  %1436 = vperm.xlu0 %2753, %v3167_v6  }
  0x66   : > { %565 = vmatmul.bf16.gmra.mxu3 %v2627_v26  ;;  %535 = vmatmul.bf16.gmra.mxu0 %v2621_v34 }
  0x68   : > { %545 = vmatmul.bf16.gmra.mxu1 %v2623_v28  ;;  %555 = vmatmul.bf16.gmra.mxu2 %v2625_v35 }
  0x6a   : > { %2749 = vset.pattern.permute.xlu2 %v1410_v24 }
  0x6c   : > { %2750 = vset.pattern.permute.xlu1 %v1416_v25  ;;  %2758 = vset.pattern.permute.xlu0 %v3159_v3 }
  0x72   : > { %1412 = vperm.xlu2 %2749, %v3167_v6  }
  0x74   : > { %1418 = vperm.xlu1 %2750, %v3167_v6   ;;  %1499 = vperm.xlu0 %2758, %v3225_v29  }
  0x7a   : > { %2751 = vset.pattern.permute.xlu2 %v1422_v30 }
  0x7c   : > { %2752 = vset.pattern.permute.xlu1 %v1428_v31  ;;  %2763 = vset.pattern.permute.xlu0 %v1398_v18 }
  0x82   : > { %1424 = vperm.xlu2 %2751, %v3167_v6  }
  0x84   : > { %1430 = vperm.xlu1 %2752, %v3167_v6   ;;  %1529 = vperm.xlu0 %2763, %v3225_v29  }
  0x8a   : > { %2754 = vset.pattern.permute.xlu2 %v1440_v32 }
  0x8c   : > { %2755 = vset.pattern.permute.xlu1 %v1446_v33  ;;  %2768 = vset.pattern.permute.xlu0 %v1428_v31 }
  0x92   : > { %1442 = vperm.xlu2 %2754, %v3167_v6  }
  0x94   : > { %1448 = vperm.xlu1 %2755, %v3167_v6   ;;  %1559 = vperm.xlu0 %2768, %v3225_v29  }
  0x9a   : > { %2756 = vset.pattern.permute.xlu2 %v1452_v36 }
  0x9c   : > { %2757 = vset.pattern.permute.xlu1 %v3155_v2  ;;  %2775 = vset.pattern.permute.xlu0 %v2999_v27  ;;  %v3322_v2 = vpop.permute.xlu2 %1364 }
  0x9d   : > { %5114 = vst [vmem:[#allocation39_spill] sm:$0xff] %v3322_v2 }
  0xa2   : > { %1454 = vperm.xlu2 %2756, %v3167_v6  }
  0xa4   : > { %1493 = vperm.xlu1 %2757, %v3225_v29  }
  0xaa   : > { %2759 = vset.pattern.permute.xlu2 %v3162_v4 }
  0xac   : > { %2760 = vset.pattern.permute.xlu1 %v3175_v9  ;;  %v3336_v8 = vpop.permute.xlu2 %1382 }
  0xad   : > { %5118 = vst [vmem:[#allocation43_spill] sm:$0xff] %v3336_v8 }
  0xb2   : > { %1505 = vperm.xlu2 %2759, %v3225_v29  }
  0xb4   : > { %1511 = vperm.xlu1 %2760, %v3225_v29  }
  0xb6   : > { %v3297_v55 = vpop.permute.xlu0 %1376  ;;  %v3314_v62 = vpop.permute.xlu1 %1370 }
  0xb7   : > { %5105 = vst [vmem:[#allocation30_spill] sm:$0xff] %v3297_v55 }
  0xb8   : > { %5111 = vst [vmem:[#allocation36_spill] sm:$0xff] %v3314_v62 }
  0xba   : > { %2761 = vset.pattern.permute.xlu2 %v3179_v11 }
  0xbc   : > { %2762 = vset.pattern.permute.xlu1 %v3195_v16  ;;  %v3348_v14 = vpop.permute.xlu2 %1394 }
  0xbd   : > { %5122 = vst [vmem:[#allocation47_spill] sm:$0xff] %v3348_v14 }
  0xc2   : > { %1517 = vperm.xlu2 %2761, %v3225_v29  }
  0xc4   : > { %1523 = vperm.xlu1 %2762, %v3225_v29  }
  0xc6   : > { %v3299_v56 = vpop.permute.xlu0 %1406  ;;  %v3328_v5 = vpop.permute.xlu1 %1388 }
  0xc7   : > { %5106 = vst [vmem:[#allocation31_spill] sm:$0xff] %v3299_v56 }
  0xca   : > { %2764 = vset.pattern.permute.xlu2 %v3183_v12 }
  0xcc   : > { %2765 = vset.pattern.permute.xlu1 %v1410_v24  ;;  %v3362_v20 = vpop.permute.xlu2 %1412 }
  0xcd   : > { %5127 = vst [vmem:[#allocation52_spill] sm:$0xff] %v3362_v20 }
  0xd2   : > { %1535 = vperm.xlu2 %2764, %v3225_v29  }
  0xd3   : > { %v531_v38 = vpop.f32.mrf.mxu0 }
  0xd4   : > { %1541 = vperm.xlu1 %2765, %v3225_v29   ;;  %v3265_v39 = vadd.f32 %v3262_v37, %v531_v38 }
  0xd5   : > { %v541_v42 = vpop.f32.mrf.mxu1 }
  0xd6   : > { %5099 = vst [vmem:[#allocation24_spill] sm:$0xff] %v3265_v39  ;;  %596 = vmin.xlane.f32.xlu0 %v3265_v39  ;;  %v3302_v57 = vadd.f32 %v3262_v37, %v541_v42  ;;  %v3304_v58 = vpop.permute.xlu0 %1436  ;;  %v3342_v11 = vpop.permute.xlu1 %1400 }
  0xd7   : > { %5108 = vst [vmem:[#allocation33_spill] sm:$0xff] %v3304_v58 }
  0xd8   : > { %5107 = vst [vmem:[#allocation32_spill] sm:$0xff] %v3302_v57 }
  0xd9   : > { %v561_v40 = vpop.f32.mrf.mxu3  ;;  %5120 = vst [vmem:[#allocation45_spill] sm:$0xff] %v3342_v11 }
  0xda   : > { %2766 = vset.pattern.permute.xlu2 %v1416_v25  ;;  %v3270_v41 = vadd.f32 %v3262_v37, %v561_v40 }
  0xdb   : > { %v551_v43 = vpop.f32.mrf.mxu2  ;;  %v533_v44 = vpop.f32.mrf.mxu0 }
  0xdc   : > { %2767 = vset.pattern.permute.xlu1 %v1422_v30  ;;  %5100 = vst [vmem:[#allocation25_spill] sm:$0xff] %v3270_v41  ;;  %v3276_v45 = vadd.f32 %v3262_v37, %v533_v44  ;;  %v3312_v60 = vadd.f32 %v3262_v37, %v551_v43  ;;  %v3387_v30 = vpop.permute.xlu2 %1424 }
  0xdd   : > { %v543_v47 = vpop.f32.mrf.mxu1  ;;  %5129 = vst [vmem:[#allocation54_spill] sm:$0xff] %v3387_v30 }
  0xde   : > { %620 = vmin.xlane.f32.xlu0 %v3270_v41  ;;  %5101 = vst [vmem:[#allocation26_spill] sm:$0xff] %v3276_v45  ;;  %v3326_v4 = vadd.f32 %v3262_v37, %v543_v47 }
  0xdf   : > { %5110 = vst [vmem:[#allocation35_spill] sm:$0xff] %v3312_v60 }
  0xe0   : > { %5115 = vst [vmem:[#allocation40_spill] sm:$0xff] %v3326_v4 }
  0xe1   : > { %v563_v46 = vpop.f32.mrf.mxu3 }
  0xe2   : > { %1547 = vperm.xlu2 %2766, %v3225_v29   ;;  %v3307_v59 = vadd.f32 %v3262_v37, %v563_v46 }
  0xe3   : > { %v553_v48 = vpop.f32.mrf.mxu2  ;;  %v536_v61 = vpop.f32.mrf.mxu0 }
  0xe4   : > { %1553 = vperm.xlu1 %2767, %v3225_v29   ;;  %v3281_v49 = vadd.f32 %v3262_v37, %v553_v48  ;;  %5109 = vst [vmem:[#allocation34_spill] sm:$0xff] %v3307_v59  ;;  %v3317_v63 = vadd.f32 %v3262_v37, %v536_v61 }
  0xe5   : > { %v546_v51 = vpop.f32.mrf.mxu1 }
  0xe6   : > { %598 = vmin.xlane.f32.xlu0 %v3276_v45  ;;  %5102 = vst [vmem:[#allocation27_spill] sm:$0xff] %v3281_v49  ;;  %v3286_v52 = vadd.f32 %v3262_v37, %v546_v51  ;;  %v3320_v1 = vpop.permute.xlu0 %1499  ;;  %v3356_v18 = vpop.permute.xlu1 %1418 }
  0xe7   : > { %5112 = vst [vmem:[#allocation37_spill] sm:$0xff] %v3317_v63 }
  0xe8   : > { %5103 = vst [vmem:[#allocation28_spill] sm:$0xff] %v3286_v52 }
  0xe9   : > { %v566_v50 = vpop.f32.mrf.mxu3  ;;  %5113 = vst [vmem:[#allocation38_spill] sm:$0xff] %v3320_v1 }
  0xea   : > { %2769 = vset.pattern.permute.xlu2 %v3210_v21  ;;  %v3340_v9 = vadd.f32 %v3262_v37, %v566_v50  ;;  %5125 = vst [vmem:[#allocation50_spill] sm:$0xff] %v3356_v18  ;;  %v3366_v21 = vand.u32 127, %v592_v0 }
  0xeb   : > { %v556_v3 = vpop.f32.mrf.mxu2  ;;  %v538_v10 = vpop.f32.mrf.mxu0 }
  0xec   : > { %2770 = vset.pattern.permute.xlu1 %v1440_v32  ;;  %v3331_v6 = vadd.f32 %v3262_v37, %v556_v3  ;;  %5119 = vst [vmem:[#allocation44_spill] sm:$0xff] %v3340_v9  ;;  %v3345_v12 = vadd.f32 %v3262_v37, %v538_v10 }
  0xed   : > { %v548_v17 = vpop.f32.mrf.mxu1 }
  0xee   : > { %614 = vmin.xlane.f32.xlu0 %v3281_v49  ;;  %5116 = vst [vmem:[#allocation41_spill] sm:$0xff] %v3331_v6  ;;  %v3359_v19 = vadd.f32 %v3262_v37, %v548_v17 }
  0xef   : > { %5121 = vst [vmem:[#allocation46_spill] sm:$0xff] %v3345_v12 }
  0xf0   : > { %5126 = vst [vmem:[#allocation51_spill] sm:$0xff] %v3359_v19 }
  0xf1   : > { %v568_v53 = vpop.f32.mrf.mxu3 }
  0xf2   : > { %1565 = vperm.xlu2 %2769, %v3225_v29   ;;  %v3291_v54 = vadd.f32 %v3262_v37, %v568_v53 }
  0xf3   : > { %v558_v13 = vpop.f32.mrf.mxu2 }
  0xf4   : > { %1571 = vperm.xlu1 %2770, %v3225_v29   ;;  %5104 = vst [vmem:[#allocation29_spill] sm:$0xff] %v3291_v54  ;;  %v3352_v15 = vadd.f32 %v3262_v37, %v558_v13  ;;  %v3411_v37 = vpop.permute.xlu2 %1442 }
  0xf5   : > { %5131 = vst [vmem:[#allocation56_spill] sm:$0xff] %v3411_v37 }
  0xf6   : > { %608 = vmin.xlane.f32.xlu0 %v3286_v52  ;;  %v3334_v7 = vpop.permute.xlu0 %1529  ;;  %5123 = vst [vmem:[#allocation48_spill] sm:$0xff] %v3352_v15  ;;  %v3368_v22 = vpop.permute.xlu1 %1430 }
  0xf7   : > { %5117 = vst [vmem:[#allocation42_spill] sm:$0xff] %v3334_v7 }
  0xf8   : > { %5128 = vst [vmem:[#allocation53_spill] sm:$0xff] %v3368_v22 }
  0xfa   : > { %2771 = vset.pattern.permute.xlu2 %v1446_v33 }
  0xfc   : > { %2772 = vset.pattern.permute.xlu1 %v1452_v36  ;;  %v3427_v51 = vpop.permute.xlu2 %1454 }
  0xfd   : > { %5134 = vst [vmem:[#allocation59_spill] sm:$0xff] %v3427_v51 }
  0xfe   : > { %626 = vmin.xlane.f32.xlu0 %v3291_v54 }
 0x102   : > { %1577 = vperm.xlu2 %2771, %v3225_v29  }
 0x104   : > { %1583 = vperm.xlu1 %2772, %v3225_v29  }
 0x106   : > { %v3354_v16 = vpop.permute.xlu0 %1559  ;;  %v3400_v35 = vpop.permute.xlu1 %1448 }
 0x107   : > { %5124 = vst [vmem:[#allocation49_spill] sm:$0xff] %v3354_v16 }
 0x108   : > { %5130 = vst [vmem:[#allocation55_spill] sm:$0xff] %v3400_v35 }
 0x10a   : > { %2774 = vset.pattern.permute.xlu2 %v2999_v27 }
 0x10c   : > { %2773 = vset.pattern.permute.xlu1 %v2999_v27  ;;  %v3445_v10 = vpop.permute.xlu2 %1505 }
 0x10d   : > { %5136 = vst [vmem:[#allocation61_spill] sm:$0xff] %v3445_v10 }
 0x116   : > { %v3413_v38 = vpop.permute.xlu1 %1493 }
 0x117   : > { %5132 = vst [vmem:[#allocation57_spill] sm:$0xff] %v3413_v38 }
 0x11c   : > { %v3449_v17 = vpop.permute.xlu2 %1517 }
 0x126   : > { %v3437_v3 = vpop.permute.xlu1 %1511 }
 0x127   : > { %5135 = vst [vmem:[#allocation60_spill] sm:$0xff] %v3437_v3 }
 0x12b   : > { %604 = vmin.xlane.f32.xlu2 %v3302_v57 }
 0x12e   : > { %622 = vmin.xlane.f32.xlu1 %v3307_v59 }
 0x133   : > { %612 = vmin.xlane.f32.xlu2 %v3312_v60 }
 0x136   : > { %600 = vmin.xlane.f32.xlu1 %v3317_v63  ;;  %v3447_v13 = vpop.permute.xlu1 %1523 }
 0x137   : > { %5137 = vst [vmem:[#allocation62_spill] sm:$0xff] %v3447_v13 }
 0x13b   : > { %606 = vmin.xlane.f32.xlu2 %v3326_v4 }
 0x13e   : > { %616 = vmin.xlane.f32.xlu1 %v3331_v6 }
 0x143   : > { %624 = vmin.xlane.f32.xlu2 %v3340_v9 }
 0x146   : > { %602 = vmin.xlane.f32.xlu1 %v3345_v12 }
 0x149   : > { %v3370_v23 = vpop.xlane.xlu0 %596 }
 0x14a   : > { %v4942_v24 = vperm.slane %v3370_v23, 0  ;;  %v4941_v25 = vperm.slane %v3370_v23, 1  ;;  %v4940_v26 = vperm.slane %v3370_v23, 2  ;;  %v4939_v27 = vperm.slane %v3370_v23, 3 }
 0x14b   : > { %618 = vmin.xlane.f32.xlu2 %v3352_v15  ;;  %v4938_v28 = vperm.slane %v3370_v23, 4  ;;  %vm628_vm0 = vcmp.eq.f32.partialorder %v3265_v39, %v3370_v23  ;;  %v4937_v0 = vperm.slane %v3370_v23, 5  ;;  %v4936_v31 = vperm.slane %v3370_v23, 6 }
 0x14c   : > { %1095 = vst [vmem:[#allocation1] ss:$9 sm:$0xff] %v4942_v24  ;;  %v3385_v29 = vsel %vm628_vm0, %v3366_v21, 2147483647  ;;  %v4935_v33 = vperm.slane %v3370_v23, 7 }
 0x14d   : > { %1097 = vst [vmem:[#allocation1 + $0x1] ss:$9 sm:$0xff] %v4941_v25  ;;  %v661_v32 = vshra.s32 %v3385_v29, 16 }
 0x14e   : > { %610 = vmin.xlane.f32.xlu1 %v3359_v19  ;;  %1099 = vst [vmem:[#allocation1 + $0x2] ss:$9 sm:$0xff] %v4940_v26 }
 0x14f   : > { %1101 = vst [vmem:[#allocation1 + $0x3] ss:$9 sm:$0xff] %v4939_v27  ;;  %v3398_v34 = vcvt.s32.f32 %v661_v32  ;;  %v3451_v32 = vpop.permute.xlu1 %1541 }
 0x150   : > { %1103 = vst [vmem:[#allocation1 + $0x4] ss:$9 sm:$0xff] %v4938_v28 }
 0x151   : > { %1105 = vst [vmem:[#allocation1 + $0x5] ss:$9 sm:$0xff] %v4937_v0  ;;  %v3404_v36 = vpop.xlane.xlu0 %620 }
 0x152   : > { %1107 = vst [vmem:[#allocation1 + $0x6] ss:$9 sm:$0xff] %v4936_v31  ;;  %vm640_vm1 = vcmp.eq.f32.partialorder %v3270_v41, %v3404_v36 }
 0x153   : > { %1109 = vst [vmem:[#allocation1 + $0x7] ss:$9 sm:$0xff] %v4935_v33 }
 0x154   : > { %5138 = vst [vmem:[#allocation63_spill] sm:$0xff] %v3451_v32 }
 0x156   : > { %664 = vmin.xlane.f32.xlu1 %v3398_v34 }
 0x159   : > { %v3415_v40 = vpop.xlane.xlu0 %598 }
 0x15a   : > { %5133 = vst [vmem:[#allocation58_spill] sm:$0xff] %v3415_v40  ;;  %v4934_v42 = vperm.slane %v3415_v40, 0  ;;  %v4933_v43 = vperm.slane %v3415_v40, 1  ;;  %v4930_v44 = vperm.slane %v3415_v40, 2  ;;  %v1110_v46 = vld [vmem:[#allocation1] sm:$0xff]  ;;  %v4928_v47 = vperm.slane %v3415_v40, 3 }
 0x15b   : > { %v4927_v48 = vperm.slane %v3415_v40, 4  ;;  %v4929_v50 = vperm.slane %v3415_v40, 5  ;;  %v4931_v53 = vperm.slane %v3415_v40, 6  ;;  %v4932_v61 = vperm.slane %v3415_v40, 7 }
 0x15c   : > { %1111 = vst [vmem:[#allocation1] ss:$9 sm:$0xff] %v4934_v42  ;;  %vm629_vm5 = vcmp.eq.f32.partialorder %v3276_v45, %v3415_v40 }
 0x15d   : > { %1112 = vst [vmem:[#allocation1 + $0x1] ss:$9 sm:$0xff] %v4933_v43  ;;  %v3512_v3 = vsel %vm629_vm5, %v3366_v21, 2147483647  ;;  %vm1301_vm5 = vcmask 195712  }
 0x15e   : > { %1113 = vst [vmem:[#allocation1 + $0x2] ss:$9 sm:$0xff] %v4930_v44  ;;  %v675_v56 = vshra.s32 %v3512_v3, 16 }
 0x15f   : > { %1114 = vst [vmem:[#allocation1 + $0x3] ss:$9 sm:$0xff] %v4928_v47  ;;  %v3455_v47 = vpop.permute.xlu1 %1553 }
 0x160   : > { %1115 = vst [vmem:[#allocation1 + $0x4] ss:$9 sm:$0xff] %v4927_v48  ;;  %v3453_v48 = vpop.permute.xlu2 %1535 }
 0x161   : > { %1116 = vst [vmem:[#allocation1 + $0x5] ss:$9 sm:$0xff] %v4929_v50  ;;  %v3470_v43 = vpop.xlane.xlu0 %614 }
 0x162   : > { %1117 = vst [vmem:[#allocation1 + $0x6] ss:$9 sm:$0xff] %v4931_v53  ;;  %vm637_vm2 = vcmp.eq.f32.partialorder %v3281_v49, %v3470_v43 }
 0x163   : > { %1118 = vst [vmem:[#allocation1 + $0x7] ss:$9 sm:$0xff] %v4932_v61  ;;  %v3466_v61 = vsel %vm640_vm1, %v3366_v21, 2147483647  ;;  %v3480_v0 = vsel %vm637_vm2, %v3366_v21, 2147483647 }
 0x164   : > { %5139 = vst [vmem:[#allocation64_spill] sm:$0xff] %v3453_v48  ;;  %v829_v33 = vshra.s32 %v3466_v61, 16  ;;  %v787_v27 = vshra.s32 %v3480_v0, 16 }
 0x165   : > { %5140 = vst [vmem:[#allocation65_spill] sm:$0xff] %v3455_v47 }
 0x166   : > { %v3477_v31 = vcvt.s32.f32 %v829_v33  ;;  %v3494_v33 = vcvt.s32.f32 %v787_v27 }
 0x167   : > { %v3459_v44 = vpop.permute.xlu1 %1571 }
 0x168   : > { %v3457_v50 = vpop.permute.xlu2 %1547  ;;  %5142 = vst [vmem:[#allocation67_spill] sm:$0xff] %v3459_v44 }
 0x169   : > { %5141 = vst [vmem:[#allocation66_spill] sm:$0xff] %v3457_v50  ;;  %v3486_v26 = vpop.xlane.xlu0 %608 }
 0x16a   : > { %vm634_vm4 = vcmp.eq.f32.partialorder %v3286_v52, %v3486_v26  ;;  %v3514_v8 = vld [vmem:[#allocation1] sm:$0xff] }
 0x16b   : > { %v3500_v16 = vsel %vm634_vm4, %v3366_v21, 2147483647  ;;  %vm1297_vm4 = vcmask 130112  }
 0x16c   : > { %v745_v27 = vshra.s32 %v3500_v16, 16 }
 0x16e   : > { %v3525_v48 = vcvt.s32.f32 %v745_v27 }
 0x16f   : > { %1247 = vperm.xlu1 %2773, %v1110_v46  }
 0x170   : > { %v3461_v53 = vpop.permute.xlu2 %1565 }
 0x171   : > { %5143 = vst [vmem:[#allocation68_spill] sm:$0xff] %v3461_v53 }
 0x176   : > { %v3472_v42 = vpop.permute.xlu1 %1583 }
 0x177   : > { %5145 = vst [vmem:[#allocation70_spill] sm:$0xff] %v3472_v42 }
 0x178   : > { %v3468_v46 = vpop.permute.xlu2 %1577 }
 0x179   : > { %5144 = vst [vmem:[#allocation69_spill] sm:$0xff] %v3468_v46 }
 0x199   : > { %832 = vmin.xlane.f32.xlu1 %v3477_v31 }
 0x19e   : > { %v3483_v28 = vpop.xlane.xlu2 %604 }
 0x19f   : > { %vm632_vm3 = vcmp.eq.f32.partialorder %v3302_v57, %v3483_v28 }
 0x1a0   : > { %v3497_v24 = vsel %vm632_vm3, %v3366_v21, 2147483647 }
 0x1a1   : > { %v3488_v25 = vpop.xlane.xlu1 %622  ;;  %790 = vmin.xlane.f32.xlu1 %v3494_v33  ;;  %v717_v22 = vshra.s32 %v3497_v24, 16 }
 0x1a2   : > { %5146 = vst [vmem:[#allocation71_spill] sm:$0xff] %v3488_v25  ;;  %vm641_vm7 = vcmp.eq.f32.partialorder %v3307_v59, %v3488_v25  ;;  %v4977_v59 = vperm.slane %v3486_v26, 4  ;;  %v5041_v2 = vperm.slane %v3488_v25, 5 }
 0x1a3   : > { %v3508_v51 = vcvt.s32.f32 %v717_v22  ;;  %v3556_v14 = vsel %vm641_vm7, %v3366_v21, 2147483647 }
 0x1a5   : > { %720 = vmin.xlane.f32.xlu0 %v3508_v51 }
 0x1a6   : > { %v3506_v42 = vpop.xlane.xlu2 %612 }
 0x1a7   : > { %vm636_vm6 = vcmp.eq.f32.partialorder %v3312_v60, %v3506_v42  ;;  %v4999_v60 = vperm.slane %v3470_v43, 2 }
 0x1a8   : > { %v3532_v11 = vsel %vm636_vm6, %v3366_v21, 2147483647 }
 0x1a9   : > { %v3517_v46 = vpop.xlane.xlu1 %600  ;;  %748 = vmin.xlane.f32.xlu1 %v3525_v48  ;;  %v773_v27 = vshra.s32 %v3532_v11, 16 }
 0x1aa   : > { %5147 = vst [vmem:[#allocation72_spill] sm:$0xff] %v3517_v46  ;;  %v4945_v35 = vperm.slane %v3517_v46, 0  ;;  %v4946_v52 = vperm.slane %v3517_v46, 1  ;;  %v4947_v22 = vperm.slane %v3517_v46, 2  ;;  %v4950_v49 = vperm.slane %v3517_v46, 7 }
 0x1ab   : > { %v5148_v50 = vperm.slane %v3517_v46, 3  ;;  %v3551_v18 = vcvt.s32.f32 %v773_v27  ;;  %v5149_v13 = vperm.slane %v3517_v46, 4  ;;  %v5150_v7 = vperm.slane %v3517_v46, 5 }
 0x1ac   : > { %1120 = vst [vmem:[#allocation1] ss:$9 sm:$0xff] %v4945_v35  ;;  %vm630_vm11 = vcmp.eq.f32.partialorder %v3317_v63, %v3517_v46  ;;  %v5037_v63 = vperm.slane %v3488_v25, 3 }
 0x1ad   : > { %1121 = vst [vmem:[#allocation1 + $0x1] ss:$9 sm:$0xff] %v4946_v52  ;;  %v3549_v52 = vcvt.s32.f32 %v675_v56  ;;  %776 = vmin.xlane.f32.xlu2 %v3551_v18  ;;  %v5151_v56 = vperm.slane %v3517_v46, 6 }
 0x1ae   : > { %1122 = vst [vmem:[#allocation1 + $0x2] ss:$9 sm:$0xff] %v4947_v22  ;;  %v3544_v35 = vpop.xlane.xlu2 %606 }
 0x1af   : > { %1123 = vst [vmem:[#allocation1 + $0x3] ss:$9 sm:$0xff] %v5148_v50  ;;  %678 = vmin.xlane.f32.xlu0 %v3549_v52  ;;  %vm633_vm8 = vcmp.eq.f32.partialorder %v3326_v4, %v3544_v35  ;;  %v843_v50 = vshra.s32 %v3556_v14, 16 }
 0x1b0   : > { %1124 = vst [vmem:[#allocation1 + $0x4] ss:$9 sm:$0xff] %v5149_v13  ;;  %v3572_v13 = vsel %vm633_vm8, %v3366_v21, 2147483647 }
 0x1b1   : > { %1125 = vst [vmem:[#allocation1 + $0x5] ss:$9 sm:$0xff] %v5150_v7  ;;  %v3562_v22 = vpop.xlane.xlu1 %616  ;;  %v731_v7 = vshra.s32 %v3572_v13, 16  ;;  %v3575_v27 = vcvt.s32.f32 %v843_v50 }
 0x1b2   : > { %1126 = vst [vmem:[#allocation1 + $0x6] ss:$9 sm:$0xff] %v5151_v56  ;;  %v5012_v44 = vperm.slane %v3562_v22, 4  ;;  %v5013_v53 = vperm.slane %v3562_v22, 5  ;;  %vm638_vm12 = vcmp.eq.f32.partialorder %v3331_v6, %v3562_v22  ;;  %v5038_v6 = vperm.slane %v3488_v25, 4 }
 0x1b3   : > { %1127 = vst [vmem:[#allocation1 + $0x7] ss:$9 sm:$0xff] %v4950_v49  ;;  %v3577_v41 = vcvt.s32.f32 %v731_v7 }
 0x1b5   : > { %734 = vmin.xlane.f32.xlu2 %v3577_v41 }
 0x1b6   : > { %v3796_v37 = vpop.xlane.xlu2 %624 }
 0x1b7   : > { %846 = vmin.xlane.f32.xlu0 %v3575_v27  ;;  %vm642_vm13 = vcmp.eq.f32.partialorder %v3340_v9, %v3796_v37  ;;  %v5047_v9 = vperm.slane %v3796_v37, 1  ;;  %v5063_v57 = vperm.slane %v3796_v37, 5 }
 0x1b9   : > { %v3581_v4 = vpop.xlane.xlu1 %602 }
 0x1ba   : > { %v1128_v56 = vld [vmem:[#allocation1] sm:$0xff]  ;;  %v4951_v49 = vperm.slane %v3581_v4, 0  ;;  %v4953_v47 = vperm.slane %v3581_v4, 1  ;;  %vm631_vm9 = vcmp.eq.f32.partialorder %v3345_v12, %v3581_v4  ;;  %v4955_v30 = vperm.slane %v3581_v4, 6 }
 0x1bb   : > { %v3596_v55 = vsel %vm631_vm9, %v3366_v21, 2147483647  ;;  %v5152_v10 = vperm.slane %v3581_v4, 2  ;;  %v5153_v1 = vperm.slane %v3581_v4, 3  ;;  %v5154_v7 = vperm.slane %v3581_v4, 4 }
 0x1bc   : > { %1129 = vst [vmem:[#allocation1] ss:$9 sm:$0xff] %v4951_v49  ;;  %v703_v50 = vshra.s32 %v3596_v55, 16  ;;  %v4954_v49 = vperm.slane %v3581_v4, 7 }
 0x1bd   : > { %1130 = vst [vmem:[#allocation1 + $0x1] ss:$9 sm:$0xff] %v4953_v47  ;;  %v5155_v47 = vperm.slane %v3581_v4, 5 }
 0x1be   : > { %1131 = vst [vmem:[#allocation1 + $0x2] ss:$9 sm:$0xff] %v5152_v10  ;;  %v3607_v12 = vcvt.s32.f32 %v703_v50  ;;  %v4956_v10 = vperm.slane %v3483_v28, 0  ;;  %v4958_v50 = vperm.slane %v3483_v28, 2 }
 0x1bf   : > { %1132 = vst [vmem:[#allocation1 + $0x3] ss:$9 sm:$0xff] %v5153_v1  ;;  %v4967_v1 = vperm.slane %v3483_v28, 1 }
 0x1c0   : > { %1133 = vst [vmem:[#allocation1 + $0x4] ss:$9 sm:$0xff] %v5154_v7  ;;  %706 = vmin.xlane.f32.xlu1 %v3607_v12  ;;  %v4959_v7 = vperm.slane %v3483_v28, 4 }
 0x1c1   : > { %1134 = vst [vmem:[#allocation1 + $0x5] ss:$9 sm:$0xff] %v5155_v47  ;;  %v4957_v47 = vperm.slane %v3483_v28, 3 }
 0x1c2   : > { %1135 = vst [vmem:[#allocation1 + $0x6] ss:$9 sm:$0xff] %v4955_v30  ;;  %v4962_v30 = vperm.slane %v3483_v28, 6 }
 0x1c3   : > { %1136 = vst [vmem:[#allocation1 + $0x7] ss:$9 sm:$0xff] %v4954_v49  ;;  %v4960_v49 = vperm.slane %v3483_v28, 5 }
 0x1ca   : > { %v3618_v62 = vld [vmem:[#allocation1] sm:$0xff] }
 0x1cb   : > { %1138 = vst [vmem:[#allocation1] ss:$9 sm:$0xff] %v4956_v10  ;;  %1253 = vperm.xlu0 %2775, %v1128_v56   ;;  %v4961_v10 = vperm.slane %v3483_v28, 7  ;;  %v4963_v56 = vperm.slane %v3544_v35, 0 }
 0x1cc   : > { %1139 = vst [vmem:[#allocation1 + $0x1] ss:$9 sm:$0xff] %v4967_v1  ;;  %v4976_v1 = vperm.slane %v3486_v26, 3 }
 0x1cd   : > { %1140 = vst [vmem:[#allocation1 + $0x2] ss:$9 sm:$0xff] %v4958_v50  ;;  %1250 = vperm.xlu2 %2774, %v3514_v8   ;;  %v4968_v8 = vperm.slane %v3544_v35, 4 }
 0x1ce   : > { %1141 = vst [vmem:[#allocation1 + $0x3] ss:$9 sm:$0xff] %v4957_v47  ;;  %v4966_v47 = vperm.slane %v3544_v35, 1 }
 0x1cf   : > { %1142 = vst [vmem:[#allocation1 + $0x4] ss:$9 sm:$0xff] %v4959_v7  ;;  %v4964_v7 = vperm.slane %v3544_v35, 2 }
 0x1d0   : > { %1143 = vst [vmem:[#allocation1 + $0x5] ss:$9 sm:$0xff] %v4960_v49  ;;  %v4965_v49 = vperm.slane %v3544_v35, 3 }
 0x1d1   : > { %1144 = vst [vmem:[#allocation1 + $0x6] ss:$9 sm:$0xff] %v4962_v30  ;;  %v4970_v30 = vperm.slane %v3544_v35, 6 }
 0x1d2   : > { %1145 = vst [vmem:[#allocation1 + $0x7] ss:$9 sm:$0xff] %v4961_v10  ;;  %v4972_v10 = vperm.slane %v3544_v35, 5 }
 0x1d9   : > { %v3645_v50 = vld [vmem:[#allocation1] sm:$0xff] }
 0x1da   : > { %1147 = vst [vmem:[#allocation1] ss:$9 sm:$0xff] %v4963_v56  ;;  %v4971_v56 = vperm.slane %v3544_v35, 7 }
 0x1db   : > { %1148 = vst [vmem:[#allocation1 + $0x1] ss:$9 sm:$0xff] %v4966_v47  ;;  %v4974_v47 = vperm.slane %v3486_v26, 2 }
 0x1dc   : > { %1149 = vst [vmem:[#allocation1 + $0x2] ss:$9 sm:$0xff] %v4964_v7  ;;  %v4975_v7 = vperm.slane %v3486_v26, 0 }
 0x1dd   : > { %1150 = vst [vmem:[#allocation1 + $0x3] ss:$9 sm:$0xff] %v4965_v49  ;;  %v4973_v49 = vperm.slane %v3486_v26, 1 }
 0x1de   : > { %1151 = vst [vmem:[#allocation1 + $0x4] ss:$9 sm:$0xff] %v4968_v8 }
 0x1df   : > { %1152 = vst [vmem:[#allocation1 + $0x5] ss:$9 sm:$0xff] %v4972_v10  ;;  %v4980_v10 = vperm.slane %v3486_v26, 7 }
 0x1e0   : > { %1153 = vst [vmem:[#allocation1 + $0x6] ss:$9 sm:$0xff] %v4970_v30  ;;  %v4978_v30 = vperm.slane %v3486_v26, 5 }
 0x1e1   : > { %1154 = vst [vmem:[#allocation1 + $0x7] ss:$9 sm:$0xff] %v4971_v56  ;;  %v4979_v56 = vperm.slane %v3486_v26, 6 }
 0x1e8   : > { %v3673_v8 = vld [vmem:[#allocation1] sm:$0xff] }
 0x1e9   : > { %1156 = vst [vmem:[#allocation1] ss:$9 sm:$0xff] %v4975_v7 }
 0x1ea   : > { %1157 = vst [vmem:[#allocation1 + $0x1] ss:$9 sm:$0xff] %v4973_v49  ;;  %v3695_v49 = vpop.xlane.xlu1 %610 }
 0x1eb   : > { %1158 = vst [vmem:[#allocation1 + $0x2] ss:$9 sm:$0xff] %v4974_v47  ;;  %v4983_v47 = vperm.slane %v3695_v49, 0  ;;  %v4981_v7 = vperm.slane %v3695_v49, 1  ;;  %v4987_v20 = vperm.slane %v3695_v49, 7  ;;  %vm635_vm14 = vcmp.eq.f32.partialorder %v3359_v19, %v3695_v49 }
 0x1ec   : > { %1159 = vst [vmem:[#allocation1 + $0x3] ss:$9 sm:$0xff] %v4976_v1  ;;  %v4982_v1 = vperm.slane %v3695_v49, 2 }
 0x1ed   : > { %1160 = vst [vmem:[#allocation1 + $0x4] ss:$9 sm:$0xff] %v4977_v59  ;;  %v4984_v59 = vperm.slane %v3695_v49, 3 }
 0x1ee   : > { %1161 = vst [vmem:[#allocation1 + $0x5] ss:$9 sm:$0xff] %v4978_v30  ;;  %v4985_v30 = vperm.slane %v3695_v49, 4 }
 0x1ef   : > { %1162 = vst [vmem:[#allocation1 + $0x6] ss:$9 sm:$0xff] %v4979_v56  ;;  %v4988_v56 = vperm.slane %v3695_v49, 5 }
 0x1f0   : > { %1163 = vst [vmem:[#allocation1 + $0x7] ss:$9 sm:$0xff] %v4980_v10  ;;  %v4986_v10 = vperm.slane %v3695_v49, 6 }
 0x1f7   : > { %v3700_v32 = vld [vmem:[#allocation1] sm:$0xff] }
 0x1f8   : > { %1165 = vst [vmem:[#allocation1] ss:$9 sm:$0xff] %v4983_v47 }
 0x1f9   : > { %1166 = vst [vmem:[#allocation1 + $0x1] ss:$9 sm:$0xff] %v4981_v7  ;;  %v4989_v7 = vperm.slane %v3506_v42, 0 }
 0x1fa   : > { %1167 = vst [vmem:[#allocation1 + $0x2] ss:$9 sm:$0xff] %v4982_v1  ;;  %v4992_v1 = vperm.slane %v3506_v42, 1 }
 0x1fb   : > { %1168 = vst [vmem:[#allocation1 + $0x3] ss:$9 sm:$0xff] %v4984_v59  ;;  %v4990_v59 = vperm.slane %v3506_v42, 2 }
 0x1fc   : > { %1169 = vst [vmem:[#allocation1 + $0x4] ss:$9 sm:$0xff] %v4985_v30  ;;  %v4991_v30 = vperm.slane %v3506_v42, 3 }
 0x1fd   : > { %1170 = vst [vmem:[#allocation1 + $0x5] ss:$9 sm:$0xff] %v4988_v56  ;;  %v4995_v56 = vperm.slane %v3506_v42, 6 }
 0x1fe   : > { %1171 = vst [vmem:[#allocation1 + $0x6] ss:$9 sm:$0xff] %v4986_v10  ;;  %v4994_v10 = vperm.slane %v3506_v42, 4 }
 0x1ff   : > { %1172 = vst [vmem:[#allocation1 + $0x7] ss:$9 sm:$0xff] %v4987_v20  ;;  %v4997_v20 = vperm.slane %v3506_v42, 5 }
 0x206   : > { %v3725_v47 = vld [vmem:[#allocation1] sm:$0xff] }
 0x207   : > { %1174 = vst [vmem:[#allocation1] ss:$9 sm:$0xff] %v4989_v7  ;;  %v4996_v7 = vperm.slane %v3506_v42, 7 }
 0x208   : > { %1175 = vst [vmem:[#allocation1 + $0x1] ss:$9 sm:$0xff] %v4992_v1 }
 0x209   : > { %1176 = vst [vmem:[#allocation1 + $0x2] ss:$9 sm:$0xff] %v4990_v59  ;;  %v4998_v59 = vperm.slane %v3470_v43, 0 }
 0x20a   : > { %1177 = vst [vmem:[#allocation1 + $0x3] ss:$9 sm:$0xff] %v4991_v30  ;;  %v5002_v30 = vperm.slane %v3470_v43, 1 }
 0x20b   : > { %1178 = vst [vmem:[#allocation1 + $0x4] ss:$9 sm:$0xff] %v4994_v10  ;;  %v5000_v10 = vperm.slane %v3470_v43, 3 }
 0x20c   : > { %1179 = vst [vmem:[#allocation1 + $0x5] ss:$9 sm:$0xff] %v4997_v20  ;;  %v5005_v20 = vperm.slane %v3470_v43, 6 }
 0x20d   : > { %1180 = vst [vmem:[#allocation1 + $0x6] ss:$9 sm:$0xff] %v4995_v56  ;;  %v5001_v56 = vperm.slane %v3470_v43, 4 }
 0x20e   : > { %1181 = vst [vmem:[#allocation1 + $0x7] ss:$9 sm:$0xff] %v4996_v7  ;;  %v5003_v7 = vperm.slane %v3470_v43, 5 }
 0x215   : > { %v3751_v1 = vld [vmem:[#allocation1] sm:$0xff] }
 0x216   : > { %1183 = vst [vmem:[#allocation1] ss:$9 sm:$0xff] %v4998_v59  ;;  %v5006_v59 = vperm.slane %v3470_v43, 7 }
 0x217   : > { %1184 = vst [vmem:[#allocation1 + $0x1] ss:$9 sm:$0xff] %v5002_v30 }
 0x218   : > { %1185 = vst [vmem:[#allocation1 + $0x2] ss:$9 sm:$0xff] %v4999_v60  ;;  %v3775_v60 = vpop.xlane.xlu0 %626 }
 0x219   : > { %1186 = vst [vmem:[#allocation1 + $0x3] ss:$9 sm:$0xff] %v5000_v10  ;;  %vm643_vm10 = vcmp.eq.f32.partialorder %v3291_v54, %v3775_v60  ;;  %v5010_v54 = vperm.slane %v3562_v22, 3 }
 0x21a   : > { %1187 = vst [vmem:[#allocation1 + $0x4] ss:$9 sm:$0xff] %v5001_v56  ;;  %v3780_v10 = vsel %vm643_vm10, %v3366_v21, 2147483647  ;;  %v5011_v56 = vperm.slane %v3562_v22, 0 }
 0x21b   : > { %1188 = vst [vmem:[#allocation1 + $0x5] ss:$9 sm:$0xff] %v5003_v7  ;;  %v871_v30 = vshra.s32 %v3780_v10, 16  ;;  %v5008_v7 = vperm.slane %v3562_v22, 1 }
 0x21c   : > { %1189 = vst [vmem:[#allocation1 + $0x6] ss:$9 sm:$0xff] %v5005_v20  ;;  %v5009_v20 = vperm.slane %v3562_v22, 2 }
 0x21d   : > { %1190 = vst [vmem:[#allocation1 + $0x7] ss:$9 sm:$0xff] %v5006_v59  ;;  %v3790_v59 = vcvt.s32.f32 %v871_v30  ;;  %v5015_v30 = vperm.slane %v3562_v22, 6 }
 0x21f   : > { %874 = vmin.xlane.f32.xlu1 %v3790_v59 }
 0x224   : > { %v3785_v39 = vld [vmem:[#allocation1] sm:$0xff] }
 0x225   : > { %1192 = vst [vmem:[#allocation1] ss:$9 sm:$0xff] %v5011_v56 }
 0x226   : > { %1193 = vst [vmem:[#allocation1 + $0x1] ss:$9 sm:$0xff] %v5008_v7  ;;  %v5014_v7 = vperm.slane %v3562_v22, 7 }
 0x227   : > { %1194 = vst [vmem:[#allocation1 + $0x2] ss:$9 sm:$0xff] %v5009_v20  ;;  %v3814_v20 = vpop.xlane.xlu2 %618 }
 0x228   : > { %1195 = vst [vmem:[#allocation1 + $0x3] ss:$9 sm:$0xff] %v5010_v54  ;;  %v5016_v54 = vperm.slane %v3814_v20, 0  ;;  %v5019_v56 = vperm.slane %v3814_v20, 1  ;;  %v5022_v38 = vperm.slane %v3814_v20, 6  ;;  %vm639_vm15 = vcmp.eq.f32.partialorder %v3352_v15, %v3814_v20 }
 0x229   : > { %1196 = vst [vmem:[#allocation1 + $0x4] ss:$9 sm:$0xff] %v5012_v44  ;;  %v5018_v44 = vperm.slane %v3814_v20, 2  ;;  %v5178_v15 = vperm.slane %v3517_v46, 6 }
 0x22a   : > { %1197 = vst [vmem:[#allocation1 + $0x5] ss:$9 sm:$0xff] %v5013_v53  ;;  %v5017_v53 = vperm.slane %v3814_v20, 3 }
 0x22b   : > { %1198 = vst [vmem:[#allocation1 + $0x6] ss:$9 sm:$0xff] %v5015_v30  ;;  %v5021_v30 = vperm.slane %v3814_v20, 5 }
 0x22c   : > { %1199 = vst [vmem:[#allocation1 + $0x7] ss:$9 sm:$0xff] %v5014_v7  ;;  %v5020_v7 = vperm.slane %v3814_v20, 4 }
 0x233   : > { %v3818_v58 = vld [vmem:[#allocation1] sm:$0xff] }
 0x234   : > { %1201 = vst [vmem:[#allocation1] ss:$9 sm:$0xff] %v5016_v54  ;;  %v5023_v54 = vperm.slane %v3814_v20, 7 }
 0x235   : > { %1202 = vst [vmem:[#allocation1 + $0x1] ss:$9 sm:$0xff] %v5019_v56 }
 0x236   : > { %1203 = vst [vmem:[#allocation1 + $0x2] ss:$9 sm:$0xff] %v5018_v44  ;;  %v5024_v44 = vperm.slane %v3404_v36, 1 }
 0x237   : > { %1204 = vst [vmem:[#allocation1 + $0x3] ss:$9 sm:$0xff] %v5017_v53  ;;  %v5030_v53 = vperm.slane %v3404_v36, 0 }
 0x238   : > { %1205 = vst [vmem:[#allocation1 + $0x4] ss:$9 sm:$0xff] %v5020_v7  ;;  %1259 = vperm.xlu1 %2773, %v3645_v50   ;;  %v5025_v7 = vperm.slane %v3404_v36, 2  ;;  %v5028_v50 = vperm.slane %v3404_v36, 5 }
 0x239   : > { %1206 = vst [vmem:[#allocation1 + $0x5] ss:$9 sm:$0xff] %v5021_v30  ;;  %v5026_v30 = vperm.slane %v3404_v36, 3 }
 0x23a   : > { %1207 = vst [vmem:[#allocation1 + $0x6] ss:$9 sm:$0xff] %v5022_v38  ;;  %v5027_v38 = vperm.slane %v3404_v36, 4 }
 0x23b   : > { %1208 = vst [vmem:[#allocation1 + $0x7] ss:$9 sm:$0xff] %v5023_v54  ;;  %v5029_v54 = vperm.slane %v3404_v36, 6 }
 0x240   : > { %1265 = vperm.xlu1 %2773, %v3700_v32   ;;  %v5034_v32 = vperm.slane %v3488_v25, 0 }
 0x242   : > { %v1209_v56 = vld [vmem:[#allocation1] sm:$0xff] }
 0x243   : > { %1210 = vst [vmem:[#allocation1] ss:$9 sm:$0xff] %v5030_v53 }
 0x244   : > { %1211 = vst [vmem:[#allocation1 + $0x1] ss:$9 sm:$0xff] %v5024_v44  ;;  %v5031_v44 = vperm.slane %v3404_v36, 7 }
 0x245   : > { %1212 = vst [vmem:[#allocation1 + $0x2] ss:$9 sm:$0xff] %v5025_v7  ;;  %v3867_v7 = vsel %vm630_vm11, %v3366_v21, 2147483647 }
 0x246   : > { %1213 = vst [vmem:[#allocation1 + $0x3] ss:$9 sm:$0xff] %v5026_v30  ;;  %v689_v30 = vshra.s32 %v3867_v7, 16 }
 0x247   : > { %1214 = vst [vmem:[#allocation1 + $0x4] ss:$9 sm:$0xff] %v5027_v38 }
 0x248   : > { %1215 = vst [vmem:[#allocation1 + $0x5] ss:$9 sm:$0xff] %v5028_v50  ;;  %v3874_v38 = vcvt.s32.f32 %v689_v30  ;;  %1271 = vperm.xlu1 %2773, %v3751_v1   ;;  %v3882_v50 = vsel %vm638_vm12, %v3366_v21, 2147483647  ;;  %v5035_v30 = vperm.slane %v3488_v25, 2 }
 0x249   : > { %1216 = vst [vmem:[#allocation1 + $0x6] ss:$9 sm:$0xff] %v5029_v54  ;;  %v5036_v54 = vperm.slane %v3488_v25, 1 }
 0x24a   : > { %1217 = vst [vmem:[#allocation1 + $0x7] ss:$9 sm:$0xff] %v5031_v44  ;;  %692 = vmin.xlane.f32.xlu2 %v3874_v38  ;;  %v801_v44 = vshra.s32 %v3882_v50, 16 }
 0x24c   : > { %v3894_v1 = vcvt.s32.f32 %v801_v44  ;;  %v5043_v44 = vperm.slane %v3488_v25, 6 }
 0x24e   : > { %804 = vmin.xlane.f32.xlu0 %v3894_v1 }
 0x250   : > { %1280 = vperm.xlu1 %2773, %v1209_v56  }
 0x251   : > { %v3885_v53 = vld [vmem:[#allocation1] sm:$0xff] }
 0x252   : > { %1219 = vst [vmem:[#allocation1] ss:$9 sm:$0xff] %v5034_v32  ;;  %v3906_v32 = vsel %vm642_vm13, %v3366_v21, 2147483647 }
 0x253   : > { %1220 = vst [vmem:[#allocation1 + $0x1] ss:$9 sm:$0xff] %v5036_v54  ;;  %v5042_v54 = vperm.slane %v3488_v25, 7  ;;  %v5056_v25 = vperm.slane %v3775_v60, 3 }
 0x254   : > { %1221 = vst [vmem:[#allocation1 + $0x2] ss:$9 sm:$0xff] %v5035_v30  ;;  %v857_v30 = vshra.s32 %v3906_v32, 16 }
 0x255   : > { %1222 = vst [vmem:[#allocation1 + $0x3] ss:$9 sm:$0xff] %v5037_v63 }
 0x256   : > { %1223 = vst [vmem:[#allocation1 + $0x4] ss:$9 sm:$0xff] %v5038_v6  ;;  %v3917_v63 = vcvt.s32.f32 %v857_v30  ;;  %v5046_v6 = vperm.slane %v3796_v37, 0  ;;  %v5049_v30 = vperm.slane %v3796_v37, 2 }
 0x257   : > { %1224 = vst [vmem:[#allocation1 + $0x5] ss:$9 sm:$0xff] %v5041_v2  ;;  %v3929_v2 = vsel %vm635_vm14, %v3366_v21, 2147483647 }
 0x258   : > { %1225 = vst [vmem:[#allocation1 + $0x6] ss:$9 sm:$0xff] %v5043_v44  ;;  %860 = vmin.xlane.f32.xlu2 %v3917_v63  ;;  %v759_v56 = vshra.s32 %v3929_v2, 16  ;;  %v5050_v44 = vperm.slane %v3796_v37, 4 }
 0x259   : > { %1226 = vst [vmem:[#allocation1 + $0x7] ss:$9 sm:$0xff] %v5042_v54  ;;  %v5048_v54 = vperm.slane %v3796_v37, 3 }
 0x25a   : > { %v3941_v19 = vcvt.s32.f32 %v759_v56  ;;  %v5055_v56 = vperm.slane %v3775_v60, 0 }
 0x25c   : > { %762 = vmin.xlane.f32.xlu0 %v3941_v19 }
 0x260   : > { %v3926_v45 = vld [vmem:[#allocation1] sm:$0xff] }
 0x261   : > { %1228 = vst [vmem:[#allocation1] ss:$9 sm:$0xff] %v5046_v6  ;;  %v5053_v6 = vperm.slane %v3796_v37, 6 }
 0x262   : > { %1229 = vst [vmem:[#allocation1 + $0x1] ss:$9 sm:$0xff] %v5047_v9  ;;  %v5054_v9 = vperm.slane %v3796_v37, 7 }
 0x263   : > { %1230 = vst [vmem:[#allocation1 + $0x2] ss:$9 sm:$0xff] %v5049_v30 }
 0x264   : > { %1231 = vst [vmem:[#allocation1 + $0x3] ss:$9 sm:$0xff] %v5048_v54  ;;  %v5062_v54 = vperm.slane %v3775_v60, 1 }
 0x265   : > { %1232 = vst [vmem:[#allocation1 + $0x4] ss:$9 sm:$0xff] %v5050_v44  ;;  %v5058_v44 = vperm.slane %v3775_v60, 2 }
 0x266   : > { %1233 = vst [vmem:[#allocation1 + $0x5] ss:$9 sm:$0xff] %v5063_v57  ;;  %v5173_v57 = vperm.slane %v3517_v46, 1 }
 0x267   : > { %1234 = vst [vmem:[#allocation1 + $0x6] ss:$9 sm:$0xff] %v5053_v6  ;;  %v5057_v6 = vperm.slane %v3775_v60, 4 }
 0x268   : > { %1235 = vst [vmem:[#allocation1 + $0x7] ss:$9 sm:$0xff] %v5054_v9  ;;  %v5061_v9 = vperm.slane %v3775_v60, 5 }
 0x26f   : > { %v1236_v30 = vld [vmem:[#allocation1] sm:$0xff] }
 0x270   : > { %1237 = vst [vmem:[#allocation1] ss:$9 sm:$0xff] %v5055_v56  ;;  %1289 = vperm.xlu1 %2773, %v1236_v30   ;;  %1256 = vperm.xlu2 %2774, %v3618_v62   ;;  %v5059_v56 = vperm.slane %v3775_v60, 6  ;;  %v5060_v30 = vperm.slane %v3775_v60, 7 }
 0x271   : > { %1238 = vst [vmem:[#allocation1 + $0x1] ss:$9 sm:$0xff] %v5062_v54  ;;  %1274 = vperm.xlu0 %2775, %v3785_v39   ;;  %v5161_v39 = vperm.slane %v3370_v23, 5 }
 0x272   : > { %1239 = vst [vmem:[#allocation1 + $0x2] ss:$9 sm:$0xff] %v5058_v44  ;;  %v5158_v44 = vperm.slane %v3370_v23, 2 }
 0x273   : > { %1240 = vst [vmem:[#allocation1 + $0x3] ss:$9 sm:$0xff] %v5056_v25  ;;  %v5156_v25 = vperm.slane %v3370_v23, 0 }
 0x274   : > { %1241 = vst [vmem:[#allocation1 + $0x4] ss:$9 sm:$0xff] %v5057_v6  ;;  %v5157_v6 = vperm.slane %v3370_v23, 1 }
 0x275   : > { %1242 = vst [vmem:[#allocation1 + $0x5] ss:$9 sm:$0xff] %v5061_v9  ;;  %v5162_v9 = vperm.slane %v3370_v23, 6 }
 0x276   : > { %1243 = vst [vmem:[#allocation1 + $0x6] ss:$9 sm:$0xff] %v5059_v56  ;;  %v5159_v56 = vperm.slane %v3370_v23, 3 }
 0x277   : > { %1244 = vst [vmem:[#allocation1 + $0x7] ss:$9 sm:$0xff] %v5060_v30  ;;  %v5160_v30 = vperm.slane %v3370_v23, 4 }
 0x279   : > { %1283 = vperm.xlu0 %2775, %v3885_v53   ;;  %v5165_v53 = vperm.slane %v3415_v40, 1 }
 0x27e   : > { %v3983_v62 = vld [vmem:[#allocation1] sm:$0xff] }
 0x27f   : > { %1681 = vst [vmem:[#allocation1] ss:$9 sm:$0xff] %v5156_v25  ;;  %v5163_v25 = vperm.slane %v3370_v23, 7 }
 0x280   : > { %1683 = vst [vmem:[#allocation1 + $0x1] ss:$9 sm:$0xff] %v5157_v6 }
 0x281   : > { %1685 = vst [vmem:[#allocation1 + $0x2] ss:$9 sm:$0xff] %v5158_v44  ;;  %v5164_v44 = vperm.slane %v3415_v40, 0 }
 0x282   : > { %1687 = vst [vmem:[#allocation1 + $0x3] ss:$9 sm:$0xff] %v5159_v56  ;;  %v5166_v56 = vperm.slane %v3415_v40, 2 }
 0x283   : > { %1689 = vst [vmem:[#allocation1 + $0x4] ss:$9 sm:$0xff] %v5160_v30  ;;  %v5167_v30 = vperm.slane %v3415_v40, 3 }
 0x284   : > { %1691 = vst [vmem:[#allocation1 + $0x5] ss:$9 sm:$0xff] %v5161_v39  ;;  %v4017_v39 = vsel %vm639_vm15, %v3366_v21, 2147483647 }
 0x285   : > { %1693 = vst [vmem:[#allocation1 + $0x6] ss:$9 sm:$0xff] %v5162_v9  ;;  %v5168_v9 = vperm.slane %v3415_v40, 4 }
 0x286   : > { %1695 = vst [vmem:[#allocation1 + $0x7] ss:$9 sm:$0xff] %v5163_v25  ;;  %v5169_v25 = vperm.slane %v3415_v40, 5 }
 0x28d   : > { %v4002_v6 = vld [vmem:[#allocation1] sm:$0xff] }
 0x28e   : > { %1697 = vst [vmem:[#allocation1] ss:$9 sm:$0xff] %v5164_v44  ;;  %v5170_v44 = vperm.slane %v3415_v40, 6 }
 0x28f   : > { %1698 = vst [vmem:[#allocation1 + $0x1] ss:$9 sm:$0xff] %v5165_v53  ;;  %v5171_v53 = vperm.slane %v3415_v40, 7 }
 0x290   : > { %1699 = vst [vmem:[#allocation1 + $0x2] ss:$9 sm:$0xff] %v5166_v56  ;;  %v815_v56 = vshra.s32 %v4017_v39, 16 }
 0x291   : > { %1700 = vst [vmem:[#allocation1 + $0x3] ss:$9 sm:$0xff] %v5167_v30 }
 0x292   : > { %1701 = vst [vmem:[#allocation1 + $0x4] ss:$9 sm:$0xff] %v5168_v9  ;;  %v4026_v54 = vcvt.s32.f32 %v815_v56  ;;  %v5172_v9 = vperm.slane %v3517_v46, 0  ;;  %v5177_v56 = vperm.slane %v3517_v46, 5 }
 0x293   : > { %1702 = vst [vmem:[#allocation1 + $0x5] ss:$9 sm:$0xff] %v5169_v25  ;;  %v5174_v25 = vperm.slane %v3517_v46, 2 }
 0x294   : > { %1703 = vst [vmem:[#allocation1 + $0x6] ss:$9 sm:$0xff] %v5170_v44  ;;  %v5175_v44 = vperm.slane %v3517_v46, 3 }
 0x295   : > { %1704 = vst [vmem:[#allocation1 + $0x7] ss:$9 sm:$0xff] %v5171_v53  ;;  %v5176_v53 = vperm.slane %v3517_v46, 4 }
 0x299   : > { %818 = vmin.xlane.f32.xlu2 %v4026_v54 }
 0x29c   : > { %v4029_v30 = vld [vmem:[#allocation1] sm:$0xff] }
 0x29d   : > { %1706 = vst [vmem:[#allocation1] ss:$9 sm:$0xff] %v5172_v9  ;;  %v5179_v9 = vperm.slane %v3517_v46, 7  ;;  %v5186_v46 = vperm.slane %v3581_v4, 6 }
 0x29e   : > { %1707 = vst [vmem:[#allocation1 + $0x1] ss:$9 sm:$0xff] %v5173_v57  ;;  %v5180_v57 = vperm.slane %v3581_v4, 0 }
 0x29f   : > { %1708 = vst [vmem:[#allocation1 + $0x2] ss:$9 sm:$0xff] %v5174_v25  ;;  %v5181_v25 = vperm.slane %v3581_v4, 1 }
 0x2a0   : > { %1709 = vst [vmem:[#allocation1 + $0x3] ss:$9 sm:$0xff] %v5175_v44  ;;  %v5182_v44 = vperm.slane %v3581_v4, 2 }
 0x2a1   : > { %1710 = vst [vmem:[#allocation1 + $0x4] ss:$9 sm:$0xff] %v5176_v53  ;;  %v5183_v53 = vperm.slane %v3581_v4, 3 }
 0x2a2   : > { %1711 = vst [vmem:[#allocation1 + $0x5] ss:$9 sm:$0xff] %v5177_v56  ;;  %v5184_v56 = vperm.slane %v3581_v4, 4 }
 0x2a3   : > { %1712 = vst [vmem:[#allocation1 + $0x6] ss:$9 sm:$0xff] %v5178_v15  ;;  %v5185_v15 = vperm.slane %v3581_v4, 5 }
 0x2a4   : > { %1713 = vst [vmem:[#allocation1 + $0x7] ss:$9 sm:$0xff] %v5179_v9  ;;  %v716_v9 = vand.u32 65535, %v3497_v24  ;;  %v674_v24 = vand.u32 65535, %v3512_v3 }
 0x2a6   : > { %v676_v3 = vcvt.s32.f32 %v674_v24  ;;  %v4102_v24 = vpop.xlane.xlu1 %664 }
 0x2a7   : > { %vm666_vm6 = vcmp.eq.f32.partialorder %v3398_v34, %v4102_v24  ;;  %v5225_v34 = vperm.slane %v3506_v42, 2 }
 0x2ab   : > { %v4047_v40 = vld [vmem:[#allocation1] sm:$0xff] }
 0x2ac   : > { %1715 = vst [vmem:[#allocation1] ss:$9 sm:$0xff] %v5180_v57  ;;  %v5187_v57 = vperm.slane %v3581_v4, 7 }
 0x2ad   : > { %1716 = vst [vmem:[#allocation1 + $0x1] ss:$9 sm:$0xff] %v5181_v25  ;;  %v4067_v25 = vpop.xlane.xlu0 %720 }
 0x2ae   : > { %1717 = vst [vmem:[#allocation1 + $0x2] ss:$9 sm:$0xff] %v5182_v44  ;;  %v718_v44 = vcvt.s32.f32 %v716_v9  ;;  %vm722_vm0 = vcmp.eq.f32.partialorder %v3508_v51, %v4067_v25  ;;  %v5190_v9 = vperm.slane %v3483_v28, 2 }
 0x2af   : > { %1718 = vst [vmem:[#allocation1 + $0x3] ss:$9 sm:$0xff] %v5183_v53 }
 0x2b0   : > { %1719 = vst [vmem:[#allocation1 + $0x4] ss:$9 sm:$0xff] %v5184_v56  ;;  %v723_v53 = vsel %vm722_vm0, %v718_v44, inf  ;;  %v772_v56 = vand.u32 65535, %v3532_v11  ;;  %v5191_v44 = vperm.slane %v3483_v28, 3  ;;  %vm1305_vm0 = vcmask 261312  }
 0x2b1   : > { %1720 = vst [vmem:[#allocation1 + $0x5] ss:$9 sm:$0xff] %v5185_v15  ;;  %1262 = vperm.xlu2 %2774, %v3673_v8   ;;  %724 = vmin.xlane.f32.xlu1 %v723_v53  ;;  %v5189_v8 = vperm.slane %v3483_v28, 1 }
 0x2b2   : > { %1721 = vst [vmem:[#allocation1 + $0x6] ss:$9 sm:$0xff] %v5186_v46  ;;  %v5188_v46 = vperm.slane %v3483_v28, 0  ;;  %v774_v11 = vcvt.s32.f32 %v772_v56  ;;  %v5194_v56 = vperm.slane %v3483_v28, 6 }
 0x2b3   : > { %1722 = vst [vmem:[#allocation1 + $0x7] ss:$9 sm:$0xff] %v5187_v57  ;;  %v4084_v57 = vpop.xlane.xlu2 %776 }
 0x2b4   : > { %vm778_vm1 = vcmp.eq.f32.partialorder %v3551_v18, %v4084_v57  ;;  %v842_v18 = vand.u32 65535, %v3556_v14  ;;  %v5198_v14 = vperm.slane %v3544_v35, 1 }
 0x2b5   : > { %v4082_v51 = vpop.xlane.xlu0 %678  ;;  %v779_v53 = vsel %vm778_vm1, %v774_v11, inf }
 0x2b6   : > { %vm680_vm2 = vcmp.eq.f32.partialorder %v3549_v52, %v4082_v51  ;;  %780 = vmin.xlane.f32.xlu0 %v779_v53  ;;  %v5197_v53 = vperm.slane %v3544_v35, 0 }
 0x2b9   : > { %1268 = vperm.xlu2 %2774, %v3725_v47   ;;  %v5192_v47 = vperm.slane %v3483_v28, 4 }
 0x2ba   : > { %v4072_v15 = vld [vmem:[#allocation1] sm:$0xff] }
 0x2bb   : > { %1724 = vst [vmem:[#allocation1] ss:$9 sm:$0xff] %v5188_v46  ;;  %v5193_v46 = vperm.slane %v3483_v28, 5  ;;  %v4106_v52 = vpop.xlane.xlu2 %734 }
 0x2bc   : > { %1725 = vst [vmem:[#allocation1 + $0x1] ss:$9 sm:$0xff] %v5189_v8  ;;  %v681_v8 = vsel %vm680_vm2, %v676_v3, inf  ;;  %vm736_vm8 = vcmp.eq.f32.partialorder %v3577_v41, %v4106_v52  ;;  %vm1309_vm2 = vcmask 326912  }
 0x2bd   : > { %1726 = vst [vmem:[#allocation1 + $0x2] ss:$9 sm:$0xff] %v5190_v9  ;;  %682 = vmin.xlane.f32.xlu1 %v681_v8  ;;  %v5195_v9 = vperm.slane %v3483_v28, 7  ;;  %v4104_v11 = vpop.xlane.xlu0 %846  ;;  %v4120_v8 = vadd.s32 4294967288, %v3366_v21 }
 0x2be   : > { %1727 = vst [vmem:[#allocation1 + $0x3] ss:$9 sm:$0xff] %v5191_v44  ;;  %v844_v44 = vcvt.s32.f32 %v842_v18  ;;  %vm848_vm3 = vcmp.eq.f32.partialorder %v3575_v27, %v4104_v11  ;;  %v5200_v27 = vperm.slane %v3544_v35, 3  ;;  %v5201_v18 = vperm.slane %v3544_v35, 4 }
 0x2bf   : > { %1728 = vst [vmem:[#allocation1 + $0x4] ss:$9 sm:$0xff] %v5192_v47 }
 0x2c0   : > { %1729 = vst [vmem:[#allocation1 + $0x5] ss:$9 sm:$0xff] %v5193_v46  ;;  %v849_v3 = vsel %vm848_vm3, %v844_v44, inf  ;;  %v1248_v46 = vpop.permute.xlu1 %1247  ;;  %vm1313_vm3 = vcmask 392512  }
 0x2c1   : > { %1730 = vst [vmem:[#allocation1 + $0x6] ss:$9 sm:$0xff] %v5194_v56  ;;  %1277 = vperm.xlu2 %2774, %v3818_v58   ;;  %v5199_v58 = vperm.slane %v3544_v35, 2  ;;  %v1294_v56 = vperm.slane %v1248_v46, %v3366_v21  ;;  %v4139_v46 = vadd.s32 4294967280, %v3366_v21 }
 0x2c2   : > { %1731 = vst [vmem:[#allocation1 + $0x7] ss:$9 sm:$0xff] %v5195_v9 }
 0x2c3   : > { %v1251_v9 = vpop.permute.xlu2 %1250 }
 0x2c4   : > { %v1296_v44 = vperm.slane %v1251_v9, %v4120_v8 }
 0x2c5   : > { %850 = vmin.xlane.f32.xlu1 %v849_v3  ;;  %v5203_v3 = vperm.slane %v3544_v35, 6  ;;  %v1254_v9 = vpop.permute.xlu0 %1253 }
 0x2c9   : > { %v4110_v47 = vld [vmem:[#allocation1] sm:$0xff]  ;;  %1286 = vperm.xlu2 %2774, %v3926_v45   ;;  %v5202_v45 = vperm.slane %v3544_v35, 5 }
 0x2ca   : > { %5196 = vst [vmem:[#allocation73_spill] sm:$0xff] %v4110_v47  ;;  %1292 = vperm.xlu0 %2775, %v3983_v62  }
 0x2cb   : > { %1733 = vst [vmem:[#allocation1] ss:$9 sm:$0xff] %v5197_v53  ;;  %v1298_v53 = vsel %vm1297_vm4, %v1296_v44, %v1294_v56  ;;  %v5207_v56 = vperm.slane %v3486_v26, 1  ;;  %v5208_v44 = vperm.slane %v3486_v26, 2 }
 0x2cc   : > { %1734 = vst [vmem:[#allocation1 + $0x1] ss:$9 sm:$0xff] %v5198_v14  ;;  %v5204_v14 = vperm.slane %v3544_v35, 7 }
 0x2cd   : > { %1735 = vst [vmem:[#allocation1 + $0x2] ss:$9 sm:$0xff] %v5199_v58  ;;  %v4136_v58 = vpop.xlane.xlu1 %832 }
 0x2ce   : > { %1736 = vst [vmem:[#allocation1 + $0x3] ss:$9 sm:$0xff] %v5200_v27  ;;  %vm834_vm7 = vcmp.eq.f32.partialorder %v3477_v31, %v4136_v58  ;;  %v5229_v31 = vperm.slane %v3506_v42, 6 }
 0x2cf   : > { %1737 = vst [vmem:[#allocation1 + $0x4] ss:$9 sm:$0xff] %v5201_v18  ;;  %v5206_v18 = vperm.slane %v3486_v26, 0 }
 0x2d0   : > { %1738 = vst [vmem:[#allocation1 + $0x5] ss:$9 sm:$0xff] %v5202_v45  ;;  %v1300_v45 = vperm.slane %v1254_v9, %v4139_v46  ;;  %v5212_v9 = vperm.slane %v3486_v26, 6 }
 0x2d1   : > { %1739 = vst [vmem:[#allocation1 + $0x6] ss:$9 sm:$0xff] %v5203_v3  ;;  %v5209_v3 = vperm.slane %v3486_v26, 3 }
 0x2d2   : > { %1740 = vst [vmem:[#allocation1 + $0x7] ss:$9 sm:$0xff] %v5204_v14  ;;  %v4151_v62 = vsel %vm1301_vm5, %v1300_v45, %v1298_v53  ;;  %v5210_v14 = vperm.slane %v3486_v26, 4  ;;  %v5215_v45 = vperm.slane %v3695_v49, 0 }
 0x2d5   : > { %v4163_v47 = vpop.xlane.xlu1 %790 }
 0x2d6   : > { %vm792_vm9 = vcmp.eq.f32.partialorder %v3494_v33, %v4163_v47 }
 0x2d9   : > { %v4141_v27 = vld [vmem:[#allocation1] sm:$0xff] }
 0x2da   : > { %5205 = vst [vmem:[#allocation74_spill] sm:$0xff] %v4141_v27 }
 0x2db   : > { %1742 = vst [vmem:[#allocation1] ss:$9 sm:$0xff] %v5206_v18  ;;  %v5211_v18 = vperm.slane %v3486_v26, 5 }
 0x2dc   : > { %1743 = vst [vmem:[#allocation1 + $0x1] ss:$9 sm:$0xff] %v5207_v56  ;;  %v5213_v56 = vperm.slane %v3486_v26, 7 }
 0x2dd   : > { %1744 = vst [vmem:[#allocation1 + $0x2] ss:$9 sm:$0xff] %v5208_v44  ;;  %v5216_v44 = vperm.slane %v3695_v49, 1 }
 0x2de   : > { %1745 = vst [vmem:[#allocation1 + $0x3] ss:$9 sm:$0xff] %v5209_v3  ;;  %1833 = vperm.xlu1 %2773, %v4002_v6   ;;  %v5217_v3 = vperm.slane %v3695_v49, 2  ;;  %v5220_v6 = vperm.slane %v3695_v49, 5 }
 0x2df   : > { %1746 = vst [vmem:[#allocation1 + $0x4] ss:$9 sm:$0xff] %v5210_v14  ;;  %v5218_v14 = vperm.slane %v3695_v49, 3 }
 0x2e0   : > { %1747 = vst [vmem:[#allocation1 + $0x5] ss:$9 sm:$0xff] %v5211_v18  ;;  %v4176_v18 = vpop.xlane.xlu1 %748 }
 0x2e1   : > { %1748 = vst [vmem:[#allocation1 + $0x6] ss:$9 sm:$0xff] %v5212_v9  ;;  %v5219_v9 = vperm.slane %v3695_v49, 4  ;;  %vm750_vm12 = vcmp.eq.f32.partialorder %v3525_v48, %v4176_v18  ;;  %v5238_v48 = vperm.slane %v3470_v43, 7 }
 0x2e2   : > { %1749 = vst [vmem:[#allocation1 + $0x7] ss:$9 sm:$0xff] %v5213_v56  ;;  %v660_v56 = vand.u32 65535, %v3385_v29  ;;  %v5223_v29 = vperm.slane %v3506_v42, 0 }
 0x2e9   : > { %v4166_v53 = vld [vmem:[#allocation1] sm:$0xff] }
 0x2ea   : > { %5214 = vst [vmem:[#allocation75_spill] sm:$0xff] %v4166_v53 }
 0x2eb   : > { %1751 = vst [vmem:[#allocation1] ss:$9 sm:$0xff] %v5215_v45  ;;  %v5221_v45 = vperm.slane %v3695_v49, 6 }
 0x2ec   : > { %1752 = vst [vmem:[#allocation1 + $0x1] ss:$9 sm:$0xff] %v5216_v44  ;;  %v5222_v44 = vperm.slane %v3695_v49, 7 }
 0x2ed   : > { %1753 = vst [vmem:[#allocation1 + $0x2] ss:$9 sm:$0xff] %v5217_v3  ;;  %v662_v3 = vcvt.s32.f32 %v660_v56 }
 0x2ee   : > { %1754 = vst [vmem:[#allocation1 + $0x3] ss:$9 sm:$0xff] %v5218_v14  ;;  %v4189_v14 = vpop.xlane.xlu1 %706 }
 0x2ef   : > { %1755 = vst [vmem:[#allocation1 + $0x4] ss:$9 sm:$0xff] %v5219_v9  ;;  %v667_v53 = vsel %vm666_vm6, %v662_v3, inf  ;;  %v828_v9 = vand.u32 65535, %v3466_v61  ;;  %v5227_v61 = vperm.slane %v3506_v42, 4  ;;  %v5228_v3 = vperm.slane %v3506_v42, 5 }
 0x2f0   : > { %1756 = vst [vmem:[#allocation1 + $0x5] ss:$9 sm:$0xff] %v5220_v6  ;;  %v730_v6 = vand.u32 65535, %v3572_v13  ;;  %vm708_vm15 = vcmp.eq.f32.partialorder %v3607_v12, %v4189_v14  ;;  %v870_v12 = vand.u32 65535, %v3780_v10  ;;  %v5243_v10 = vperm.slane %v3562_v22, 4 }
 0x2f1   : > { %1757 = vst [vmem:[#allocation1 + $0x6] ss:$9 sm:$0xff] %v5221_v45  ;;  %v5224_v45 = vperm.slane %v3506_v42, 1  ;;  %v830_v56 = vcvt.s32.f32 %v828_v9  ;;  %vm1317_vm6 = vcmask 458112  }
 0x2f2   : > { %1758 = vst [vmem:[#allocation1 + $0x7] ss:$9 sm:$0xff] %v5222_v44  ;;  %668 = vmin.xlane.f32.xlu2 %v667_v53  ;;  %v5226_v53 = vperm.slane %v3506_v42, 3  ;;  %v732_v13 = vcvt.s32.f32 %v730_v6  ;;  %v688_v6 = vand.u32 65535, %v3867_v7  ;;  %v5232_v7 = vperm.slane %v3470_v43, 1 }
 0x2f3   : > { %v835_v44 = vsel %vm834_vm7, %v830_v56, inf  ;;  %v4221_v56 = vpop.xlane.xlu0 %804  ;;  %vm1476_vm7 = vcmp.lt.f32.partialorder %v3483_v28, %v3328_v5  ;;  %v5260_v5 = vperm.slane %v3404_v36, 5  ;;  %v5261_v28 = vperm.slane %v3404_v36, 6 }
 0x2f4   : > { %v737_v9 = vsel %vm736_vm8, %v732_v13, inf  ;;  %v744_v13 = vand.u32 65535, %v3500_v16  ;;  %v690_v33 = vcvt.s32.f32 %v688_v6  ;;  %vm806_vm11 = vcmp.eq.f32.partialorder %v3894_v1, %v4221_v56 }
 0x2f5   : > { %738 = vmin.xlane.f32.xlu0 %v737_v9  ;;  %v5233_v9 = vperm.slane %v3470_v43, 2  ;;  %v5234_v16 = vperm.slane %v3470_v43, 3  ;;  %v5236_v6 = vperm.slane %v3470_v43, 5  ;;  %v5237_v1 = vperm.slane %v3470_v43, 6 }
 0x2f6   : > { %vm1321_vm8 = vcmask 523712  }
 0x2f9   : > { %v4192_v27 = vld [vmem:[#allocation1] sm:$0xff] }
 0x2fa   : > { %1760 = vst [vmem:[#allocation1] ss:$9 sm:$0xff] %v5223_v29  ;;  %836 = vmin.xlane.f32.xlu2 %v835_v44  ;;  %v4213_v29 = vpop.xlane.xlu1 %874 }
 0x2fb   : > { %1761 = vst [vmem:[#allocation1 + $0x1] ss:$9 sm:$0xff] %v5224_v45  ;;  %v786_v45 = vand.u32 65535, %v3480_v0  ;;  %v800_v0 = vand.u32 65535, %v3882_v50  ;;  %vm876_vm1 = vcmp.eq.f32.partialorder %v3790_v59, %v4213_v29  ;;  %v5246_v59 = vperm.slane %v3562_v22, 7 }
 0x2fc   : > { %1762 = vst [vmem:[#allocation1 + $0x2] ss:$9 sm:$0xff] %v5225_v34  ;;  %v5230_v34 = vperm.slane %v3506_v42, 7 }
 0x2fd   : > { %1763 = vst [vmem:[#allocation1 + $0x3] ss:$9 sm:$0xff] %v5226_v53  ;;  %v788_v41 = vcvt.s32.f32 %v786_v45  ;;  %v802_v50 = vcvt.s32.f32 %v800_v0  ;;  %v4254_v0 = vpop.xlane.xlu0 %762 }
 0x2fe   : > { %1764 = vst [vmem:[#allocation1 + $0x4] ss:$9 sm:$0xff] %v5227_v61  ;;  %vm764_vm14 = vcmp.eq.f32.partialorder %v3941_v19, %v4254_v0  ;;  %v4276_v19 = vadd.s32 4294967272, %v3366_v21 }
 0x2ff   : > { %1765 = vst [vmem:[#allocation1 + $0x5] ss:$9 sm:$0xff] %v5228_v3  ;;  %v793_v53 = vsel %vm792_vm9, %v788_v41, inf  ;;  %v5231_v3 = vperm.slane %v3470_v43, 0  ;;  %v5235_v41 = vperm.slane %v3470_v43, 4  ;;  %vm1325_vm9 = vcmask 589312  }
 0x300   : > { %1766 = vst [vmem:[#allocation1 + $0x6] ss:$9 sm:$0xff] %v5229_v31  ;;  %v4231_v31 = vpop.xlane.xlu2 %692 }
 0x301   : > { %1767 = vst [vmem:[#allocation1 + $0x7] ss:$9 sm:$0xff] %v5230_v34  ;;  %vm694_vm10 = vcmp.eq.f32.partialorder %v3874_v38, %v4231_v31  ;;  %v746_v34 = vcvt.s32.f32 %v744_v13  ;;  %v856_v38 = vand.u32 65535, %v3906_v32  ;;  %v758_v13 = vand.u32 65535, %v3929_v2 }
 0x302   : > { %794 = vmin.xlane.f32.xlu2 %v793_v53  ;;  %v4225_v44 = vpop.permute.xlu1 %1259  ;;  %v695_v45 = vsel %vm694_vm10, %v690_v33, inf  ;;  %v807_v53 = vsel %vm806_vm11, %v802_v50, inf  ;;  %v702_v33 = vand.u32 65535, %v3596_v55  ;;  %vm1329_vm10 = vcmask 654912  }
 0x303   : > { %696 = vmin.xlane.f32.xlu0 %v695_v45  ;;  %vm1333_vm11 = vcmask 720512  }
 0x304   : > { %v704_v2 = vcvt.s32.f32 %v702_v33 }
 0x306   : > { %v709_v55 = vsel %vm708_vm15, %v704_v2, inf  ;;  %vm5077_vm15 = vcmask 982912  }
 0x308   : > { %v4223_v61 = vld [vmem:[#allocation1] sm:$0xff]  ;;  %808 = vmin.xlane.f32.xlu1 %v807_v53  ;;  %v4258_v32 = vpop.xlane.xlu2 %860  ;;  %v5241_v53 = vperm.slane %v3562_v22, 2 }
 0x309   : > { %1769 = vst [vmem:[#allocation1] ss:$9 sm:$0xff] %v5231_v3  ;;  %v751_v3 = vsel %vm750_vm12, %v746_v34, inf  ;;  %vm862_vm13 = vcmp.eq.f32.partialorder %v3917_v63, %v4258_v32  ;;  %v5239_v63 = vperm.slane %v3562_v22, 0  ;;  %vm1337_vm12 = vcmask 786112  }
 0x30a   : > { %1770 = vst [vmem:[#allocation1 + $0x1] ss:$9 sm:$0xff] %v5232_v7  ;;  %752 = vmin.xlane.f32.xlu2 %v751_v3  ;;  %v858_v7 = vcvt.s32.f32 %v856_v38  ;;  %v5240_v38 = vperm.slane %v3562_v22, 1 }
 0x30b   : > { %1771 = vst [vmem:[#allocation1 + $0x2] ss:$9 sm:$0xff] %v5233_v9  ;;  %v4260_v9 = vpop.permute.xlu1 %1265 }
 0x30c   : > { %1772 = vst [vmem:[#allocation1 + $0x3] ss:$9 sm:$0xff] %v5234_v16  ;;  %v863_v45 = vsel %vm862_vm13, %v858_v7, inf  ;;  %v760_v16 = vcvt.s32.f32 %v758_v13  ;;  %v872_v7 = vcvt.s32.f32 %v870_v12  ;;  %v5249_v12 = vperm.slane %v3814_v20, 2 }
 0x30d   : > { %1773 = vst [vmem:[#allocation1 + $0x4] ss:$9 sm:$0xff] %v5235_v41  ;;  %864 = vmin.xlane.f32.xlu0 %v863_v45  ;;  %v4271_v41 = vadd.s32 4294967264, %v3366_v21  ;;  %v5244_v45 = vperm.slane %v3562_v22, 5  ;;  %vm1341_vm13 = vcmask 851712  }
 0x30e   : > { %1774 = vst [vmem:[#allocation1 + $0x5] ss:$9 sm:$0xff] %v5236_v6  ;;  %v765_v50 = vsel %vm764_vm14, %v760_v16, inf  ;;  %v877_v2 = vsel %vm876_vm1, %v872_v7, inf  ;;  %v4331_v7 = vadd.s32 4294967248, %v3366_v21  ;;  %vm5083_vm14 = vcmask 917312  }
 0x30f   : > { %1775 = vst [vmem:[#allocation1 + $0x6] ss:$9 sm:$0xff] %v5237_v1  ;;  %v5242_v1 = vperm.slane %v3562_v22, 3 }
 0x310   : > { %1776 = vst [vmem:[#allocation1 + $0x7] ss:$9 sm:$0xff] %v5238_v48  ;;  %766 = vmin.xlane.f32.xlu1 %v765_v50  ;;  %v1257_v6 = vpop.permute.xlu2 %1256  ;;  %v1308_v48 = vperm.slane %v4225_v44, %v4271_v41  ;;  %v5245_v44 = vperm.slane %v3562_v22, 6 }
 0x311   : > { %v1304_v3 = vperm.slane %v1257_v6, %v4276_v19  ;;  %v5251_v6 = vperm.slane %v3814_v20, 4 }
 0x312   : > { %710 = vmin.xlane.f32.xlu2 %v709_v55 }
 0x313   : > { %v1272_v13 = vpop.permute.xlu1 %1271  ;;  %v1306_v33 = vsel %vm1305_vm0, %v1304_v3, %v4151_v62  ;;  %v5247_v62 = vperm.slane %v3814_v20, 0 }
 0x314   : > { %v1310_v16 = vsel %vm1309_vm2, %v1308_v48, %v1306_v33  ;;  %v5253_v48 = vperm.slane %v3814_v20, 6  ;;  %v4328_v33 = vadd.s32 4294967256, %v3366_v21 }
 0x317   : > { %v4268_v34 = vld [vmem:[#allocation1] sm:$0xff] }
 0x318   : > { %1778 = vst [vmem:[#allocation1] ss:$9 sm:$0xff] %v5239_v63  ;;  %v5248_v63 = vperm.slane %v3814_v20, 1 }
 0x319   : > { %1779 = vst [vmem:[#allocation1 + $0x1] ss:$9 sm:$0xff] %v5240_v38  ;;  %v5250_v38 = vperm.slane %v3814_v20, 3 }
 0x31a   : > { %1780 = vst [vmem:[#allocation1 + $0x2] ss:$9 sm:$0xff] %v5241_v53  ;;  %878 = vmin.xlane.f32.xlu2 %v877_v2  ;;  %v5252_v53 = vperm.slane %v3814_v20, 5 }
 0x31b   : > { %1781 = vst [vmem:[#allocation1 + $0x3] ss:$9 sm:$0xff] %v5242_v1  ;;  %v4301_v50 = vpop.permute.xlu1 %1280  ;;  %v4320_v1 = vpop.xlane.xlu2 %818 }
 0x31c   : > { %1782 = vst [vmem:[#allocation1 + $0x4] ss:$9 sm:$0xff] %v5243_v10  ;;  %v727_v10 = vcvt.f32.s32 %v4067_v25  ;;  %v1316_v25 = vperm.slane %v4260_v9, %v4331_v7  ;;  %vm820_vm1 = vcmp.eq.f32.partialorder %v4026_v54, %v4320_v1  ;;  %v5280_v54 = vperm.slane %v3796_v37, 2 }
 0x31d   : > { %1783 = vst [vmem:[#allocation1 + $0x5] ss:$9 sm:$0xff] %v5244_v45 }
 0x31e   : > { %1784 = vst [vmem:[#allocation1 + $0x6] ss:$9 sm:$0xff] %v5245_v44 }
 0x31f   : > { %1785 = vst [vmem:[#allocation1 + $0x7] ss:$9 sm:$0xff] %v5246_v59  ;;  %v728_v59 = vshll.u32 %v727_v10, 16  ;;  %v5258_v10 = vperm.slane %v3404_v36, 3 }
 0x321   : > { %1836 = vperm.xlu0 %2775, %v4029_v30   ;;  %v5254_v30 = vperm.slane %v3814_v20, 7 }
 0x323   : > { %v4318_v3 = vpop.permute.xlu1 %1289  ;;  %v1263_v44 = vpop.permute.xlu2 %1262 }
 0x326   : > { %v4303_v55 = vld [vmem:[#allocation1] sm:$0xff] }
 0x327   : > { %1787 = vst [vmem:[#allocation1] ss:$9 sm:$0xff] %v5247_v62 }
 0x328   : > { %1788 = vst [vmem:[#allocation1 + $0x1] ss:$9 sm:$0xff] %v5248_v63  ;;  %v1312_v63 = vperm.slane %v1263_v44, %v4328_v33 }
 0x329   : > { %1789 = vst [vmem:[#allocation1 + $0x2] ss:$9 sm:$0xff] %v5249_v12  ;;  %v5255_v12 = vperm.slane %v3404_v36, 0 }
 0x32a   : > { %1790 = vst [vmem:[#allocation1 + $0x3] ss:$9 sm:$0xff] %v5250_v38  ;;  %v5256_v38 = vperm.slane %v3404_v36, 1 }
 0x32b   : > { %1791 = vst [vmem:[#allocation1 + $0x4] ss:$9 sm:$0xff] %v5251_v6  ;;  %v725_v45 = vpop.xlane.xlu1 %724  ;;  %v1269_v44 = vpop.permute.xlu2 %1268 }
 0x32c   : > { %1792 = vst [vmem:[#allocation1 + $0x5] ss:$9 sm:$0xff] %v5252_v53  ;;  %v726_v62 = vcvt.f32.s32 %v725_v45  ;;  %v1314_v53 = vsel %vm1313_vm3, %v1312_v63, %v1310_v16  ;;  %v4356_v45 = vadd.s32 4294967240, %v3366_v21  ;;  %v5259_v16 = vperm.slane %v3404_v36, 4  ;;  %v1275_v63 = vpop.permute.xlu0 %1274 }
 0x32d   : > { %1793 = vst [vmem:[#allocation1 + $0x6] ss:$9 sm:$0xff] %v5253_v48  ;;  %v5257_v48 = vperm.slane %v3404_v36, 2 }
 0x32e   : > { %1794 = vst [vmem:[#allocation1 + $0x7] ss:$9 sm:$0xff] %v5254_v30  ;;  %v4342_v6 = vadd.s32 %v728_v59, %v726_v62  ;;  %v1318_v30 = vsel %vm1317_vm6, %v1316_v25, %v1314_v53  ;;  %v1320_v59 = vperm.slane %v1269_v44, %v4356_v45  ;;  %v4373_v25 = vadd.s32 4294967224, %v3366_v21 }
 0x32f   : > { %v4377_v53 = vadd.s32 4294967216, %v3366_v21 }
 0x330   : > { %v1589_v9 = vsel %vm1476_vm7, %v4342_v6, %v3449_v17  ;;  %v5262_v17 = vperm.slane %v3404_v36, 7  ;;  %5263 = vst [vmem:[#allocation76_spill] sm:$0xff] %v4373_v25  ;;  %vm888_vm7 = vcmp.eq.s32.totalorder %v3366_v21, %v4342_v6  ;;  %v671_v6 = vcvt.f32.s32 %v4102_v24 }
 0x331   : > { %1614 = vperm.xlu1 %2773, %v1589_v9   ;;  %5264 = vst [vmem:[#allocation77_spill] sm:$0xff] %v4377_v53  ;;  %v1328_v9 = vperm.slane %v1275_v63, %v4373_v25 }
 0x332   : > { %1839 = vperm.xlu2 %2774, %v4047_v40   ;;  %v4361_v40 = vadd.s32 4294967232, %v3366_v21 }
 0x334   : > { %v1324_v62 = vperm.slane %v1272_v13, %v4361_v40  ;;  %v1278_v13 = vpop.permute.xlu2 %1277 }
 0x335   : > { %v4333_v2 = vld [vmem:[#allocation1] sm:$0xff] }
 0x336   : > { %1796 = vst [vmem:[#allocation1] ss:$9 sm:$0xff] %v5255_v12  ;;  %v1322_v12 = vsel %vm1321_vm8, %v1320_v59, %v1318_v30 }
 0x337   : > { %1797 = vst [vmem:[#allocation1 + $0x1] ss:$9 sm:$0xff] %v5256_v38  ;;  %v1326_v38 = vsel %vm1325_vm9, %v1324_v62, %v1322_v12  ;;  %v4399_v12 = vadd.s32 4294967200, %v3366_v21 }
 0x338   : > { %1798 = vst [vmem:[#allocation1 + $0x2] ss:$9 sm:$0xff] %v5257_v48  ;;  %v4380_v48 = vadd.s32 4294967208, %v3366_v21 }
 0x339   : > { %1799 = vst [vmem:[#allocation1 + $0x3] ss:$9 sm:$0xff] %v5258_v10 }
 0x33a   : > { %1800 = vst [vmem:[#allocation1 + $0x4] ss:$9 sm:$0xff] %v5259_v16  ;;  %v5266_v16 = vld [vmem:[#allocation71_spill] sm:$0xff]  ;;  %v1336_v44 = vperm.slane %v4301_v50, %v4380_v48  ;;  %v4405_v50 = vadd.s32 4294967192, %v3366_v21 }
 0x33b   : > { %1801 = vst [vmem:[#allocation1 + $0x5] ss:$9 sm:$0xff] %v5260_v5  ;;  %v5267_v30 = vperm.slane %v5266_v16, 0  ;;  %v1332_v5 = vperm.slane %v1278_v13, %v4377_v53  ;;  %v5269_v59 = vperm.slane %v5266_v16, 2  ;;  %v5270_v63 = vperm.slane %v5266_v16, 3 }
 0x33c   : > { %1802 = vst [vmem:[#allocation1 + $0x6] ss:$9 sm:$0xff] %v5261_v28  ;;  %v5268_v28 = vperm.slane %v5266_v16, 1 }
 0x33d   : > { %1803 = vst [vmem:[#allocation1 + $0x7] ss:$9 sm:$0xff] %v5262_v17  ;;  %v1330_v17 = vsel %vm1329_vm10, %v1328_v9, %v1326_v38  ;;  %v5274_v38 = vperm.slane %v5266_v16, 5  ;;  %v4410_v9 = vadd.s32 4294967184, %v3366_v21 }
 0x33e   : > { %5265 = vst [vmem:[#allocation78_spill] sm:$0xff] %v4380_v48  ;;  %v1334_v62 = vsel %vm1333_vm11, %v1332_v5, %v1330_v17  ;;  %v5276_v5 = vperm.slane %v5266_v16, 6  ;;  %v814_v17 = vand.u32 65535, %v4017_v39 }
 0x33f   : > { %5271 = vst [vmem:[#allocation71_spill] sm:$0xff] %v4399_v12  ;;  %v1338_v13 = vsel %vm1337_vm12, %v1336_v44, %v1334_v62  ;;  %v5277_v44 = vperm.slane %v5266_v16, 7  ;;  %v1287_v62 = vpop.permute.xlu2 %1286 }
 0x340   : > { %5273 = vst [vmem:[#allocation79_spill] sm:$0xff] %v4405_v50  ;;  %v816_v39 = vcvt.s32.f32 %v814_v17  ;;  %v5282_v17 = vperm.slane %v3796_v37, 4 }
 0x341   : > { %5275 = vst [vmem:[#allocation80_spill] sm:$0xff] %v4410_v9 }
 0x344   : > { %v4382_v10 = vld [vmem:[#allocation1] sm:$0xff] }
 0x345   : > { %1805 = vst [vmem:[#allocation1] ss:$9 sm:$0xff] %v5267_v30  ;;  %v5272_v30 = vperm.slane %v5266_v16, 4 }
 0x346   : > { %1806 = vst [vmem:[#allocation1 + $0x1] ss:$9 sm:$0xff] %v5268_v28  ;;  %v1284_v28 = vpop.permute.xlu0 %1283 }
 0x347   : > { %1807 = vst [vmem:[#allocation1 + $0x2] ss:$9 sm:$0xff] %v5269_v59  ;;  %v1340_v59 = vperm.slane %v1284_v28, %v4399_v12  ;;  %v821_v28 = vsel %vm820_vm1, %v816_v39, inf  ;;  %v685_v39 = vcvt.f32.s32 %v4082_v51  ;;  %v5289_v51 = vperm.slane %v3775_v60, 2 }
 0x348   : > { %1808 = vst [vmem:[#allocation1 + $0x3] ss:$9 sm:$0xff] %v5270_v63  ;;  %v1344_v63 = vperm.slane %v1287_v62, %v4405_v50  ;;  %v5278_v62 = vperm.slane %v3796_v37, 0 }
 0x349   : > { %1809 = vst [vmem:[#allocation1 + $0x4] ss:$9 sm:$0xff] %v5272_v30  ;;  %v1348_v30 = vperm.slane %v4318_v3, %v4410_v9  ;;  %v5279_v3 = vperm.slane %v3796_v37, 1 }
 0x34a   : > { %1810 = vst [vmem:[#allocation1 + $0x5] ss:$9 sm:$0xff] %v5274_v38  ;;  %v1342_v38 = vsel %vm1341_vm13, %v1340_v59, %v1338_v13  ;;  %v5281_v13 = vperm.slane %v3796_v37, 3  ;;  %v5283_v59 = vperm.slane %v3796_v37, 5 }
 0x34b   : > { %1811 = vst [vmem:[#allocation1 + $0x6] ss:$9 sm:$0xff] %v5276_v5  ;;  %v1346_v5 = vsel %vm5083_vm14, %v1344_v63, %v1342_v38  ;;  %822 = vmin.xlane.f32.xlu0 %v821_v28  ;;  %v5284_v63 = vperm.slane %v3796_v37, 6  ;;  %v683_v38 = vpop.xlane.xlu1 %682  ;;  %v686_v28 = vshll.u32 %v685_v39, 16  ;;  %v5293_v39 = vperm.slane %v3775_v60, 6 }
 0x34c   : > { %1812 = vst [vmem:[#allocation1 + $0x7] ss:$9 sm:$0xff] %v5277_v44  ;;  %v4426_v44 = vsel %vm5077_vm15, %v1348_v30, %v1346_v5  ;;  %v5285_v30 = vperm.slane %v3796_v37, 7  ;;  %v684_v5 = vcvt.f32.s32 %v683_v38  ;;  %v5292_v38 = vperm.slane %v3775_v60, 5 }
 0x34d   : > { %vm5082_vm15 = vcmask 1048512  }
 0x353   : > { %v4428_v12 = vld [vmem:[#allocation1] sm:$0xff] }
 0x354   : > { %1814 = vst [vmem:[#allocation1] ss:$9 sm:$0xff] %v5278_v62 }
 0x355   : > { %1815 = vst [vmem:[#allocation1 + $0x1] ss:$9 sm:$0xff] %v5279_v3  ;;  %v5286_v3 = vld [vmem:[#allocation32_spill] sm:$0xff] }
 0x356   : > { %1816 = vst [vmem:[#allocation1 + $0x2] ss:$9 sm:$0xff] %v5280_v54  ;;  %v904_v54 = vsel %vm888_vm7, inf, %v5286_v3  ;;  %v672_v3 = vshll.u32 %v671_v6, 16 }
 0x357   : > { %1817 = vst [vmem:[#allocation1 + $0x3] ss:$9 sm:$0xff] %v5281_v13  ;;  %v5287_v13 = vperm.slane %v3775_v60, 0 }
 0x358   : > { %1818 = vst [vmem:[#allocation1 + $0x4] ss:$9 sm:$0xff] %v5282_v17  ;;  %v4454_v17 = vadd.s32 %v686_v28, %v684_v5  ;;  %v5294_v28 = vperm.slane %v3775_v60, 7 }
 0x359   : > { %1819 = vst [vmem:[#allocation1 + $0x5] ss:$9 sm:$0xff] %v5283_v59  ;;  %v5288_v59 = vperm.slane %v3775_v60, 1 }
 0x35a   : > { %1820 = vst [vmem:[#allocation1 + $0x6] ss:$9 sm:$0xff] %v5284_v63  ;;  %v5290_v63 = vperm.slane %v3775_v60, 3  ;;  %vm885_vm1 = vcmp.eq.s32.totalorder %v3366_v21, %v4454_v17 }
 0x35b   : > { %1821 = vst [vmem:[#allocation1 + $0x7] ss:$9 sm:$0xff] %v5285_v30  ;;  %924 = vmin.xlane.f32.xlu1 %v904_v54  ;;  %v5291_v30 = vperm.slane %v3775_v60, 4  ;;  %v5295_v54 = vld [vmem:[#allocation26_spill] sm:$0xff] }
 0x362   : > { %v4449_v62 = vld [vmem:[#allocation1] sm:$0xff] }
 0x363   : > { %1823 = vst [vmem:[#allocation1] ss:$9 sm:$0xff] %v5287_v13  ;;  %v901_v13 = vsel %vm885_vm1, inf, %v5295_v54 }
 0x364   : > { %1824 = vst [vmem:[#allocation1 + $0x1] ss:$9 sm:$0xff] %v5288_v59  ;;  %918 = vmin.xlane.f32.xlu1 %v901_v13  ;;  %v5299_v13 = vld [vmem:[#allocation68_spill] sm:$0xff] }
 0x365   : > { %1825 = vst [vmem:[#allocation1 + $0x2] ss:$9 sm:$0xff] %v5289_v51  ;;  %v669_v5 = vpop.xlane.xlu2 %668  ;;  %v781_v51 = vpop.xlane.xlu0 %780 }
 0x366   : > { %1826 = vst [vmem:[#allocation1 + $0x3] ss:$9 sm:$0xff] %v5290_v63  ;;  %v670_v24 = vcvt.f32.s32 %v669_v5  ;;  %v5296_v63 = vld [vmem:[#allocation39_spill] sm:$0xff]  ;;  %v853_v5 = vcvt.f32.s32 %v4104_v11 }
 0x367   : > { %1827 = vst [vmem:[#allocation1 + $0x4] ss:$9 sm:$0xff] %v5291_v30  ;;  %vm1472_vm7 = vcmp.lt.f32.partialorder %v3370_v23, %v5296_v63  ;;  %v5297_v30 = vld [vmem:[#allocation57_spill] sm:$0xff] }
 0x368   : > { %1828 = vst [vmem:[#allocation1 + $0x5] ss:$9 sm:$0xff] %v5292_v38  ;;  %v673_v59 = vadd.s32 %v672_v3, %v670_v24  ;;  %v5298_v3 = vld [vmem:[#allocation33_spill] sm:$0xff] }
 0x369   : > { %1829 = vst [vmem:[#allocation1 + $0x6] ss:$9 sm:$0xff] %v5293_v39  ;;  %v839_v39 = vcvt.f32.s32 %v4136_v58  ;;  %vm1484_vm1 = vcmp.lt.f32.partialorder %v3404_v36, %v5298_v3  ;;  %v4490_v58 = vadd.s32 4294967176, %v3366_v21  ;;  %v5302_v36 = vld [vmem:[#allocation67_spill] sm:$0xff] }
 0x36a   : > { %1830 = vst [vmem:[#allocation1 + $0x7] ss:$9 sm:$0xff] %v5294_v28  ;;  %v1585_v9 = vsel %vm1472_vm7, %v673_v59, %v5297_v30  ;;  %v851_v28 = vpop.xlane.xlu1 %850  ;;  %v5301_v30 = vld [vmem:[#allocation56_spill] sm:$0xff] }
 0x36b   : > { %1602 = vperm.xlu0 %2775, %v1585_v9   ;;  %v840_v53 = vshll.u32 %v839_v39, 16  ;;  %v852_v54 = vcvt.f32.s32 %v851_v28  ;;  %v854_v9 = vshll.u32 %v853_v5, 16  ;;  %5300 = vst [vmem:[#allocation32_spill] sm:$0xff] %v4490_v58  ;;  %vm1485_vm7 = vcmp.lt.f32.partialorder %v5266_v16, %v5301_v30 }
 0x36d   : > { %v837_v38 = vpop.xlane.xlu2 %836  ;;  %v1293_v48 = vpop.permute.xlu0 %1292 }
 0x36e   : > { %v838_v50 = vcvt.f32.s32 %v837_v38  ;;  %v1352_v11 = vperm.slane %v1293_v48, %v4490_v58 }
 0x370   : > { %v4478_v6 = vadd.s32 %v840_v53, %v838_v50  ;;  %v855_v53 = vadd.s32 %v854_v9, %v852_v54  ;;  %v948_v50 = vld [vmem:[#allocation2] sm:$0x1]  ;;  %v1354_v28 = vsel %vm5082_vm15, %v1352_v11, %v4426_v44  ;;  %v5303_v9 = vld [vmem:[#allocation24_spill] sm:$0xff] }
 0x371   : > { %v1356_v5 = vmin.f32 %v948_v50, %v1354_v28 }
 0x372   : > { %v1597_v23 = vsel %vm1484_vm1, %v4478_v6, %v5299_v13  ;;  %v1598_v38 = vsel %vm1485_vm7, %v855_v53, %v5302_v36  ;;  %vm884_vm1 = vcmp.eq.s32.totalorder %v3366_v21, %v673_v59  ;;  %v1834_v16 = vpop.permute.xlu1 %1833 }
 0x373   : > { %1638 = vperm.xlu2 %2774, %v1597_v23   ;;  %1357 = vst [vmem:[#allocation2] sm:$0x1] %v1356_v5  ;;  %v783_v23 = vcvt.f32.s32 %v4084_v57  ;;  %v900_v30 = vsel %vm884_vm1, inf, %v5303_v9  ;;  %v1880_v44 = vperm.slane %v1834_v16, %v3366_v21  ;;  %v5304_v57 = vld [vmem:[#allocation35_spill] sm:$0xff]  ;;  %vm897_vm1 = vcmp.eq.s32.totalorder %v3366_v21, %v855_v53 }
 0x374   : > { %v5306_v16 = vld [vmem:[#allocation63_spill] sm:$0xff] }
 0x375   : > { %v4485_v24 = vpop.xlane.xlu2 %794  ;;  %v4487_v63 = vpop.xlane.xlu0 %738  ;;  %v784_v11 = vshll.u32 %v783_v23, 16 }
 0x37d   : > { %1641 = vperm.xlu1 %2773, %v1598_v38   ;;  %v4496_v39 = vpop.xlane.xlu2 %752  ;;  %v697_v3 = vpop.xlane.xlu0 %696  ;;  %v782_v38 = vcvt.f32.s32 %v781_v51  ;;  %v5305_v51 = vld [vmem:[#allocation52_spill] sm:$0xff] }
 0x37e   : > { %vm1480_vm15 = vcmp.lt.f32.partialorder %v3506_v42, %v5305_v51 }
 0x37f   : > { %v785_v25 = vadd.s32 %v784_v11, %v782_v38  ;;  %v699_v38 = vcvt.f32.s32 %v4231_v31  ;;  %v5311_v31 = vld [vmem:[#allocation30_spill] sm:$0xff] }
 0x381   : > { %vm892_vm7 = vcmp.eq.s32.totalorder %v3366_v21, %v785_v25  ;;  %v1593_v23 = vsel %vm1480_vm15, %v785_v25, %v5306_v16  ;;  %v700_v53 = vshll.u32 %v699_v38, 16  ;;  %v809_v25 = vpop.xlane.xlu1 %808 }
 0x382   : > { %v908_v9 = vsel %vm892_vm7, inf, %v5304_v57  ;;  %v811_v57 = vcvt.f32.s32 %v4221_v56  ;;  %vm896_vm7 = vcmp.eq.s32.totalorder %v3366_v21, %v4478_v6  ;;  %v797_v6 = vcvt.f32.s32 %v4163_v47 }
 0x384   : > { %v812_v38 = vshll.u32 %v811_v57, 16  ;;  %v5317_v57 = vld [vmem:[#allocation40_spill] sm:$0xff] }
 0x385   : > { %v4500_v13 = vpop.xlane.xlu2 %710  ;;  %v4502_v54 = vpop.xlane.xlu0 %864 }
 0x38d   : > { %v4504_v48 = vpop.xlane.xlu2 %878 }
 0x393   : > { %v1837_v36 = vpop.permute.xlu0 %1836 }
 0x394   : > { %v1881_v50 = vperm.slane %v1837_v36, %v4120_v8 }
 0x395   : > { %916 = vmin.xlane.f32.xlu0 %v900_v30  ;;  %v1840_v5 = vpop.permute.xlu2 %1839  ;;  %v5307_v30 = vld [vmem:[#allocation34_spill] sm:$0xff] }
 0x396   : > { %v1882_v28 = vsel %vm1297_vm4, %v1881_v50, %v1880_v44  ;;  %v1883_v58 = vperm.slane %v1840_v5, %v4139_v46  ;;  %v913_v36 = vsel %vm897_vm1, inf, %v5307_v30  ;;  %v5309_v44 = vld [vmem:[#allocation58_spill] sm:$0xff]  ;;  %v825_v5 = vcvt.f32.s32 %v4320_v1 }
 0x397   : > { %v5310_v50 = vld [vmem:[#allocation38_spill] sm:$0xff]  ;;  %v810_v30 = vcvt.f32.s32 %v809_v25 }
 0x398   : > { %v4514_v59 = vsel %vm1301_vm5, %v1883_v58, %v1882_v28  ;;  %v5308_v58 = vld [vmem:[#allocation36_spill] sm:$0xff]  ;;  %v698_v28 = vcvt.f32.s32 %v697_v3  ;;  %v826_v51 = vshll.u32 %v825_v5, 16 }
 0x399   : > { %vm1473_vm14 = vcmp.lt.f32.partialorder %v5309_v44, %v5308_v58  ;;  %v813_v1 = vadd.s32 %v812_v38, %v810_v30  ;;  %v5314_v58 = vld [vmem:[#allocation54_spill] sm:$0xff]  ;;  %v5315_v44 = vld [vmem:[#allocation65_spill] sm:$0xff] }
 0x39a   : > { %v1586_v11 = vsel %vm1473_vm14, %v4454_v17, %v5310_v50  ;;  %v4529_v42 = vadd.s32 %v700_v53, %v698_v28  ;;  %vm1482_vm14 = vcmp.lt.f32.partialorder %v3562_v22, %v5314_v58  ;;  %v5316_v50 = vld [vmem:[#allocation25_spill] sm:$0xff]  ;;  %v741_v28 = vcvt.f32.s32 %v4106_v52  ;;  %v5318_v22 = vld [vmem:[#allocation47_spill] sm:$0xff]  ;;  %v5322_v38 = vld [vmem:[#allocation66_spill] sm:$0xff] }
 0x39b   : > { %v1595_v56 = vsel %vm1482_vm14, %v813_v1, %v5315_v44  ;;  %v740_v53 = vcvt.f32.s32 %v4487_v63  ;;  %vm894_vm14 = vcmp.eq.s32.totalorder %v3366_v21, %v813_v1  ;;  %v796_v52 = vcvt.f32.s32 %v4485_v24  ;;  %v767_v44 = vpop.xlane.xlu1 %766  ;;  %v5323_v24 = vld [vmem:[#allocation45_spill] sm:$0xff] }
 0x39c   : > { %932 = vmin.xlane.f32.xlu2 %v908_v9  ;;  %v742_v5 = vshll.u32 %v741_v28, 16  ;;  %v798_v63 = vshll.u32 %v797_v6, 16  ;;  %v5325_v6 = vld [vmem:[#allocation31_spill] sm:$0xff] }
 0x39e   : > { %v743_v25 = vadd.s32 %v742_v5, %v740_v53  ;;  %v799_v30 = vadd.s32 %v798_v63, %v796_v52  ;;  %v5326_v63 = vld [vmem:[#allocation64_spill] sm:$0xff] }
 0x3a0   : > { %vm889_vm1 = vcmp.eq.s32.totalorder %v3366_v21, %v743_v25 }
 0x3a3   : > { %v4566_v28 = vpop.permute.xlu1 %1614 }
 0x3a7   : > { %942 = vmin.xlane.f32.xlu1 %v913_v36  ;;  %v5313_v36 = vld [vmem:[#allocation61_spill] sm:$0xff] }
 0x3a9   : > { %1626 = vperm.xlu0 %2775, %v1593_v23   ;;  %v5312_v23 = vld [vmem:[#allocation72_spill] sm:$0xff] }
 0x3aa   : > { %vm1474_vm15 = vcmp.lt.f32.partialorder %v5312_v23, %v5311_v31  ;;  %v5320_v31 = vld [vmem:[#allocation41_spill] sm:$0xff] }
 0x3ab   : > { %v1587_v17 = vsel %vm1474_vm15, %v4529_v42, %v5313_v36  ;;  %vm1477_vm15 = vcmp.lt.f32.partialorder %v3544_v35, %v5318_v22  ;;  %v910_v23 = vsel %vm894_vm14, inf, %v5320_v31  ;;  %v755_v36 = vcvt.f32.s32 %v4176_v18  ;;  %v4570_v22 = vld [vmem:[#allocation1] sm:$0xff] }
 0x3ac   : > { %v754_v35 = vcvt.f32.s32 %v4496_v39  ;;  %v769_v18 = vcvt.f32.s32 %v4254_v0  ;;  %vm893_vm14 = vcmp.eq.s32.totalorder %v3366_v21, %v799_v30 }
 0x3ad   : > { %v756_v47 = vshll.u32 %v755_v36, 16 }
 0x3ae   : > { %v770_v39 = vshll.u32 %v769_v18, 16 }
 0x3af   : > { %v757_v1 = vadd.s32 %v756_v47, %v754_v35 }
 0x3b4   : > { %1605 = vperm.xlu2 %2774, %v1586_v11   ;;  %v912_v11 = vsel %vm896_vm7, inf, %v5316_v50  ;;  %v5324_v50 = vld [vmem:[#allocation42_spill] sm:$0xff] }
 0x3be   : > { %v823_v9 = vpop.xlane.xlu0 %822 }
 0x3bf   : > { %v824_v16 = vcvt.f32.s32 %v823_v9  ;;  %v905_v9 = vsel %vm889_vm1, inf, %v5317_v57  ;;  %vm1478_vm1 = vcmp.lt.f32.partialorder %v3486_v26, %v5323_v24 }
 0x3c0   : > { %1608 = vperm.xlu1 %2773, %v1587_v17   ;;  %v5321_v17 = vld [vmem:[#allocation50_spill] sm:$0xff] }
 0x3c1   : > { %v4536_v3 = vadd.s32 %v826_v51, %v824_v16  ;;  %v5319_v51 = vld [vmem:[#allocation62_spill] sm:$0xff]  ;;  %vm1481_vm7 = vcmp.lt.f32.partialorder %v3470_v43, %v5321_v17  ;;  %v768_v43 = vcvt.f32.s32 %v767_v44  ;;  %v5327_v17 = vld [vmem:[#allocation27_spill] sm:$0xff]  ;;  %v5328_v44 = vld [vmem:[#allocation28_spill] sm:$0xff] }
 0x3c2   : > { %v1590_v16 = vsel %vm1477_vm15, %v743_v25, %v5319_v51  ;;  %v1594_v58 = vsel %vm1481_vm7, %v799_v30, %v5322_v38  ;;  %vm1479_vm15 = vcmp.lt.f32.partialorder %v3695_v49, %v5325_v6  ;;  %v909_v35 = vsel %vm893_vm14, inf, %v5327_v17 }
 0x3c3   : > { %v4568_v5 = vadd.s32 %v770_v39, %v768_v43  ;;  %vm890_vm7 = vcmp.eq.s32.totalorder %v3366_v21, %v757_v1 }
 0x3c4   : > { %v906_v47 = vsel %vm890_vm7, inf, %v5328_v44 }
 0x3c5   : > { %v1592_v31 = vsel %vm1479_vm15, %v4568_v5, %v5326_v63  ;;  %vm891_vm7 = vcmp.eq.s32.totalorder %v3366_v21, %v4568_v5  ;;  %v5335_v5 = vld [vmem:[#allocation60_spill] sm:$0xff] }
 0x3c8   : > { %1632 = vperm.xlu1 %2773, %v1595_v56  }
 0x3cd   : > { %v4576_v52 = vpop.permute.xlu2 %1638 }
 0x3d3   : > { %940 = vmin.xlane.f32.xlu0 %v912_v11  ;;  %v1591_v11 = vsel %vm1478_vm1, %v757_v1, %v5324_v50  ;;  %vm886_vm1 = vcmp.eq.s32.totalorder %v3366_v21, %v4529_v42 }
 0x3dd   : > { %926 = vmin.xlane.f32.xlu2 %v905_v9  ;;  %v4560_v56 = vpop.permute.xlu0 %1602 }
 0x3de   : > { %v1649_v1 = vperm.slane %v4560_v56, %v3366_v21  ;;  %v5330_v56 = vld [vmem:[#allocation55_spill] sm:$0xff] }
 0x3df   : > { %vm1486_vm15 = vcmp.lt.f32.partialorder %v3796_v37, %v5330_v56 }
 0x3e7   : > { %1617 = vperm.xlu0 %2775, %v1590_v16   ;;  %v4572_v16 = vpop.xlane.xlu1 %924 }
 0x3ef   : > { %v919_v49 = vpop.xlane.xlu1 %918 }
 0x3f0   : > { %v1938_v24 = vperm.slane %v919_v49, 1  ;;  %v1939_v50 = vperm.slane %v919_v49, 2  ;;  %v1941_v18 = vperm.slane %v919_v49, 4  ;;  %v1942_v43 = vperm.slane %v919_v49, 5 }
 0x3f2   : > { %936 = vmin.xlane.f32.xlu1 %v910_v23 }
 0x3f5   : > { %1629 = vperm.xlu2 %2774, %v1594_v58   ;;  %v1937_v58 = vperm.slane %v919_v49, 0 }
 0x3f7   : > { %v4594_v6 = vpop.permute.xlu1 %1641 }
 0x3fd   : > { %1620 = vperm.xlu2 %2774, %v1591_v11   ;;  %v1940_v11 = vperm.slane %v919_v49, 3 }
 0x408   : > { %v917_v53 = vpop.xlane.xlu0 %916 }
 0x409   : > { %v1929_v25 = vperm.slane %v917_v53, 0  ;;  %v1930_v57 = vperm.slane %v917_v53, 1  ;;  %v1931_v9 = vperm.slane %v917_v53, 2  ;;  %v1932_v51 = vperm.slane %v917_v53, 3 }
 0x40a   : > { %v1933_v26 = vperm.slane %v917_v53, 4  ;;  %v1934_v0 = vperm.slane %v917_v53, 5  ;;  %v1935_v23 = vperm.slane %v917_v53, 6  ;;  %v1936_v36 = vperm.slane %v917_v53, 7 }
 0x40b   : > { %2057 = vst [vmem:[#allocation1] ss:$9 sm:$0xff] %v1929_v25  ;;  %1623 = vperm.xlu1 %2773, %v1592_v31   ;;  %v1943_v53 = vperm.slane %v919_v49, 6  ;;  %v1944_v25 = vperm.slane %v919_v49, 7  ;;  %v5329_v31 = vld [vmem:[#allocation37_spill] sm:$0xff] }
 0x40c   : > { %2059 = vst [vmem:[#allocation1 + $0x1] ss:$9 sm:$0xff] %v1930_v57 }
 0x40d   : > { %2061 = vst [vmem:[#allocation1 + $0x2] ss:$9 sm:$0xff] %v1931_v9  ;;  %v867_v9 = vcvt.f32.s32 %v4258_v32 }
 0x40e   : > { %2063 = vst [vmem:[#allocation1 + $0x3] ss:$9 sm:$0xff] %v1932_v51 }
 0x40f   : > { %2065 = vst [vmem:[#allocation1 + $0x4] ss:$9 sm:$0xff] %v1933_v26  ;;  %v4582_v38 = vpop.xlane.xlu2 %932  ;;  %v866_v26 = vcvt.f32.s32 %v4502_v54  ;;  %v5332_v54 = vld [vmem:[#allocation44_spill] sm:$0xff] }
 0x410   : > { %2067 = vst [vmem:[#allocation1 + $0x5] ss:$9 sm:$0xff] %v1934_v0  ;;  %v868_v0 = vshll.u32 %v867_v9, 16  ;;  %v5340_v9 = vld [vmem:[#allocation70_spill] sm:$0xff] }
 0x411   : > { %2069 = vst [vmem:[#allocation1 + $0x6] ss:$9 sm:$0xff] %v1935_v23  ;;  %934 = vmin.xlane.f32.xlu0 %v909_v35  ;;  %v902_v23 = vsel %vm886_vm1, inf, %v5329_v31 }
 0x412   : > { %2071 = vst [vmem:[#allocation1 + $0x7] ss:$9 sm:$0xff] %v1936_v36  ;;  %v869_v63 = vadd.s32 %v868_v0, %v866_v26  ;;  %v5331_v36 = vld [vmem:[#allocation69_spill] sm:$0xff] }
 0x413   : > { %v5341_v26 = vld [vmem:[#allocation73_spill] sm:$0xff] }
 0x414   : > { %v1599_v17 = vsel %vm1486_vm15, %v869_v63, %v5331_v36  ;;  %vm898_vm14 = vcmp.eq.s32.totalorder %v3366_v21, %v869_v63 }
 0x415   : > { %v914_v35 = vsel %vm898_vm14, inf, %v5332_v54 }
 0x417   : > { %v1606_v39 = vpop.permute.xlu2 %1605 }
 0x418   : > { %v1650_v57 = vperm.slane %v1606_v39, %v4120_v8  ;;  %v5336_v39 = vld [vmem:[#allocation74_spill] sm:$0xff] }
 0x419   : > { %v4586_v30 = vld [vmem:[#allocation1] sm:$0xff]  ;;  %928 = vmin.xlane.f32.xlu0 %v906_v47  ;;  %v713_v47 = vcvt.f32.s32 %v4189_v14  ;;  %v5338_v14 = vld [vmem:[#allocation75_spill] sm:$0xff] }
 0x41a   : > { %2073 = vst [vmem:[#allocation1] ss:$9 sm:$0xff] %v1937_v58  ;;  %v1651_v51 = vsel %vm1297_vm4, %v1650_v57, %v1649_v1  ;;  %v4602_v32 = vpop.xlane.xlu1 %942  ;;  %v5333_v58 = vld [vmem:[#allocation51_spill] sm:$0xff] }
 0x41b   : > { %2074 = vst [vmem:[#allocation1 + $0x1] ss:$9 sm:$0xff] %v1938_v24  ;;  %v907_v44 = vsel %vm891_vm7, inf, %v5333_v58  ;;  %v712_v24 = vcvt.f32.s32 %v4500_v13  ;;  %v881_v13 = vcvt.f32.s32 %v4213_v29  ;;  %v5339_v57 = vld [vmem:[#allocation59_spill] sm:$0xff]  ;;  %vm895_vm7 = vcmp.eq.s32.totalorder %v3366_v21, %v4536_v3  ;;  %v4648_v0 = vpop.permute.xlu0 %1626 }
 0x41c   : > { %2075 = vst [vmem:[#allocation1 + $0x2] ss:$9 sm:$0xff] %v1939_v50  ;;  %v714_v50 = vshll.u32 %v713_v47, 16  ;;  %vm1487_vm14 = vcmp.lt.f32.partialorder %v3775_v60, %v5339_v57  ;;  %v5342_v60 = vld [vmem:[#allocation53_spill] sm:$0xff] }
 0x41d   : > { %2076 = vst [vmem:[#allocation1 + $0x3] ss:$9 sm:$0xff] %v1940_v11 }
 0x41e   : > { %2077 = vst [vmem:[#allocation1 + $0x4] ss:$9 sm:$0xff] %v1941_v18  ;;  %v715_v11 = vadd.s32 %v714_v50, %v712_v24  ;;  %v5334_v18 = vld [vmem:[#allocation43_spill] sm:$0xff] }
 0x41f   : > { %2078 = vst [vmem:[#allocation1 + $0x5] ss:$9 sm:$0xff] %v1942_v43  ;;  %vm1475_vm1 = vcmp.lt.f32.partialorder %v3581_v4, %v5334_v18  ;;  %v880_v4 = vcvt.f32.s32 %v4504_v48 }
 0x420   : > { %2079 = vst [vmem:[#allocation1 + $0x6] ss:$9 sm:$0xff] %v1943_v53  ;;  %v1588_v43 = vsel %vm1475_vm1, %v715_v11, %v5335_v5  ;;  %vm887_vm15 = vcmp.eq.s32.totalorder %v3366_v21, %v715_v11  ;;  %v5337_v53 = vld [vmem:[#allocation46_spill] sm:$0xff]  ;;  %vm1483_vm1 = vcmp.lt.f32.partialorder %v3814_v20, %v5342_v60 }
 0x421   : > { %2080 = vst [vmem:[#allocation1 + $0x7] ss:$9 sm:$0xff] %v1944_v25  ;;  %v903_v25 = vsel %vm887_vm15, inf, %v5337_v53 }
 0x426   : > { %920 = vmin.xlane.f32.xlu2 %v902_v23 }
 0x42d   : > { %1644 = vperm.xlu0 %2775, %v1599_v17  }
 0x42e   : > { %944 = vmin.xlane.f32.xlu2 %v914_v35 }
 0x432   : > { %v1609_v42 = vpop.permute.xlu1 %1608 }
 0x433   : > { %v1652_v49 = vperm.slane %v1609_v42, %v4139_v46 }
 0x435   : > { %v4611_v37 = vsel %vm1301_vm5, %v1652_v49, %v1651_v51  ;;  %930 = vmin.xlane.f32.xlu1 %v907_v44  ;;  %v1656_v44 = vperm.slane %v4566_v28, %v4271_v41  ;;  %v5345_v28 = vld [vmem:[#allocation29_spill] sm:$0xff] }
 0x43a   : > { %v4669_v5 = vpop.permute.xlu1 %1632 }
 0x446   : > { %1611 = vperm.xlu2 %2774, %v1588_v43  }
 0x44e   : > { %1842 = vperm.xlu1 %2773, %v4072_v15   ;;  %1848 = vperm.xlu2 %2774, %v5336_v39   ;;  %v882_v15 = vshll.u32 %v881_v13, 16 }
 0x450   : > { %v883_v1 = vadd.s32 %v882_v15, %v880_v4  ;;  %v4635_v29 = vpop.xlane.xlu2 %926 }
 0x452   : > { %v1600_v51 = vsel %vm1487_vm14, %v883_v1, %v5340_v9  ;;  %vm899_vm15 = vcmp.eq.s32.totalorder %v3366_v21, %v883_v1  ;;  %vm5351_vm14 = vcmask 917312  }
 0x453   : > { %v915_v39 = vsel %vm899_vm15, inf, %v5345_v28 }
 0x456   : > { %1851 = vperm.xlu1 %2773, %v5338_v14   ;;  %1857 = vperm.xlu2 %2774, %v4223_v61   ;;  %v2081_v61 = vld [vmem:[#allocation1] sm:$0xff] }
 0x457   : > { %922 = vmin.xlane.f32.xlu0 %v903_v25 }
 0x45e   : > { %1860 = vperm.xlu1 %2773, %v4268_v34   ;;  %1866 = vperm.xlu2 %2774, %v4333_v2   ;;  %v4639_v34 = vpop.permute.xlu2 %1629  ;;  %v5343_v2 = vld [vmem:[#allocation49_spill] sm:$0xff] }
 0x465   : > { %v4675_v53 = vpop.xlane.xlu1 %936 }
 0x466   : > { %1869 = vperm.xlu1 %2773, %v4382_v10   ;;  %1647 = vperm.xlu2 %2774, %v1600_v51   ;;  %v1596_v10 = vsel %vm1483_vm1, %v4536_v3, %v5343_v2  ;;  %v1621_v48 = vpop.permute.xlu2 %1620  ;;  %vm5354_vm1 = vmmov %vm5351_vm14 }
 0x467   : > { %v1660_v50 = vperm.slane %v1621_v48, %v4331_v7  ;;  %v1963_v48 = vperm.slane %v4572_v16, 2 }
 0x46b   : > { %1845 = vperm.xlu0 %2775, %v5341_v26  }
 0x46e   : > { %2212 = vperm.xlu1 %2773, %v2081_v61  }
 0x473   : > { %1854 = vperm.xlu0 %2775, %v4192_v27   ;;  %v5344_v27 = vld [vmem:[#allocation48_spill] sm:$0xff] }
 0x47b   : > { %1863 = vperm.xlu0 %2775, %v4303_v55   ;;  %v911_v55 = vsel %vm895_vm7, inf, %v5344_v27  ;;  %v1962_v27 = vperm.slane %v4572_v16, 1  ;;  %vm5353_vm7 = vcmask 982912  }
 0x47c   : > { %vm5355_vm15 = vmmov %vm5353_vm7 }
 0x47d   : > { %v4679_v25 = vpop.permute.xlu1 %1623 }
 0x483   : > { %1872 = vperm.xlu0 %2775, %v4428_v12  }
 0x48b   : > { %1875 = vperm.xlu0 %2775, %v4449_v62   ;;  %v4650_v62 = vpop.xlane.xlu0 %940 }
 0x48f   : > { %938 = vmin.xlane.f32.xlu2 %v911_v55 }
 0x493   : > { %1635 = vperm.xlu0 %2775, %v1596_v10   ;;  %v1618_v35 = vpop.permute.xlu0 %1617  ;;  %v1961_v10 = vperm.slane %v4572_v16, 0 }
 0x494   : > { %v1658_v47 = vperm.slane %v1618_v35, %v4328_v33 }
 0x499   : > { %v921_v12 = vpop.xlane.xlu2 %920 }
 0x49a   : > { %v1945_v63 = vperm.slane %v921_v12, 0  ;;  %v1946_v31 = vperm.slane %v921_v12, 1  ;;  %v1947_v23 = vperm.slane %v921_v12, 2  ;;  %v1948_v56 = vperm.slane %v921_v12, 3 }
 0x49b   : > { %v1949_v36 = vperm.slane %v921_v12, 4  ;;  %v1950_v20 = vperm.slane %v921_v12, 5  ;;  %v1951_v17 = vperm.slane %v921_v12, 6  ;;  %v1952_v3 = vperm.slane %v921_v12, 7  ;;  %v4655_v49 = vpop.xlane.xlu0 %934 }
 0x49c   : > { %2082 = vst [vmem:[#allocation1] ss:$9 sm:$0xff] %v1945_v63  ;;  %v1964_v63 = vperm.slane %v4572_v16, 3 }
 0x49d   : > { %2083 = vst [vmem:[#allocation1 + $0x1] ss:$9 sm:$0xff] %v1946_v31  ;;  %v1965_v31 = vperm.slane %v4572_v16, 4 }
 0x49e   : > { %2084 = vst [vmem:[#allocation1 + $0x2] ss:$9 sm:$0xff] %v1947_v23  ;;  %v1966_v23 = vperm.slane %v4572_v16, 5 }
 0x49f   : > { %2085 = vst [vmem:[#allocation1 + $0x3] ss:$9 sm:$0xff] %v1948_v56 }
 0x4a0   : > { %2086 = vst [vmem:[#allocation1 + $0x4] ss:$9 sm:$0xff] %v1949_v36  ;;  %v1967_v36 = vperm.slane %v4572_v16, 6 }
 0x4a1   : > { %2087 = vst [vmem:[#allocation1 + $0x5] ss:$9 sm:$0xff] %v1950_v20  ;;  %v4652_v54 = vpop.xlane.xlu2 %944  ;;  %v1968_v20 = vperm.slane %v4572_v16, 7 }
 0x4a2   : > { %2088 = vst [vmem:[#allocation1 + $0x6] ss:$9 sm:$0xff] %v1951_v17 }
 0x4a3   : > { %2089 = vst [vmem:[#allocation1 + $0x7] ss:$9 sm:$0xff] %v1952_v3  ;;  %v4672_v43 = vpop.xlane.xlu0 %928 }
 0x4a7   : > { %2209 = vperm.xlu2 %2774, %v4586_v30  }
 0x4a8   : > { %v4681_v61 = vpop.xlane.xlu1 %930 }
 0x4a9   : > { %v1612_v42 = vpop.permute.xlu2 %1611 }
 0x4aa   : > { %v1654_v58 = vperm.slane %v1612_v42, %v4276_v19  ;;  %v2090_v57 = vld [vmem:[#allocation1] sm:$0xff] }
 0x4ac   : > { %v1655_v24 = vsel %vm1305_vm0, %v1654_v58, %v4611_v37  ;;  %v4677_v37 = vpop.permute.xlu0 %1644 }
 0x4ad   : > { %v1657_v11 = vsel %vm1309_vm2, %v1656_v44, %v1655_v24 }
 0x4ae   : > { %v1659_v18 = vsel %vm1313_vm3, %v1658_v47, %v1657_v11 }
 0x4af   : > { %v4667_v30 = vsel %vm1317_vm6, %v1660_v50, %v1659_v18  ;;  %v1969_v50 = vperm.slane %v4635_v29, 0  ;;  %v1970_v18 = vperm.slane %v4635_v29, 1 }
 0x4b1   : > { %v1849_v12 = vpop.permute.xlu2 %1848 }
 0x4b2   : > { %v1889_v58 = vperm.slane %v1849_v12, %v4328_v33 }
 0x4b9   : > { %v1858_v24 = vpop.permute.xlu2 %1857 }
 0x4bd   : > { %946 = vmin.xlane.f32.xlu0 %v915_v39 }
 0x4c0   : > { %v1843_v2 = vpop.permute.xlu1 %1842 }
 0x4c1   : > { %v1885_v56 = vperm.slane %v1843_v2, %v4276_v19  ;;  %v1867_v2 = vpop.permute.xlu2 %1866 }
 0x4c3   : > { %v1886_v42 = vsel %vm1305_vm0, %v1885_v56, %v4514_v59  ;;  %v1971_v59 = vperm.slane %v4635_v29, 2 }
 0x4c8   : > { %v1852_v3 = vpop.permute.xlu1 %1851 }
 0x4c9   : > { %v1891_v16 = vperm.slane %v1852_v3, %v4331_v7  ;;  %v5349_v3 = vld [vmem:[#allocation71_spill] sm:$0xff] }
 0x4ca   : > { %v923_v14 = vpop.xlane.xlu0 %922 }
 0x4cb   : > { %v1953_v13 = vperm.slane %v923_v14, 0  ;;  %v1954_v4 = vperm.slane %v923_v14, 1  ;;  %v1955_v15 = vperm.slane %v923_v14, 2  ;;  %v1956_v9 = vperm.slane %v923_v14, 3 }
 0x4cc   : > { %v1957_v51 = vperm.slane %v923_v14, 4  ;;  %v1958_v1 = vperm.slane %v923_v14, 5  ;;  %v1959_v26 = vperm.slane %v923_v14, 6  ;;  %v1960_v60 = vperm.slane %v923_v14, 7 }
 0x4cd   : > { %2091 = vst [vmem:[#allocation1] ss:$9 sm:$0xff] %v1953_v13  ;;  %v1895_v14 = vperm.slane %v1858_v24, %v4361_v40 }
 0x4ce   : > { %2092 = vst [vmem:[#allocation1 + $0x1] ss:$9 sm:$0xff] %v1954_v4  ;;  %v1972_v4 = vperm.slane %v4635_v29, 3 }
 0x4cf   : > { %2093 = vst [vmem:[#allocation1 + $0x2] ss:$9 sm:$0xff] %v1955_v15 }
 0x4d0   : > { %2094 = vst [vmem:[#allocation1 + $0x3] ss:$9 sm:$0xff] %v1956_v9  ;;  %v1861_v15 = vpop.permute.xlu1 %1860  ;;  %v1973_v9 = vperm.slane %v4635_v29, 4 }
 0x4d1   : > { %2095 = vst [vmem:[#allocation1 + $0x4] ss:$9 sm:$0xff] %v1957_v51  ;;  %2215 = vperm.xlu0 %2775, %v2090_v57  }
 0x4d2   : > { %2096 = vst [vmem:[#allocation1 + $0x5] ss:$9 sm:$0xff] %v1958_v1  ;;  %v1974_v1 = vperm.slane %v4635_v29, 5 }
 0x4d3   : > { %2097 = vst [vmem:[#allocation1 + $0x6] ss:$9 sm:$0xff] %v1959_v26  ;;  %v1975_v26 = vperm.slane %v4635_v29, 6 }
 0x4d4   : > { %2098 = vst [vmem:[#allocation1 + $0x7] ss:$9 sm:$0xff] %v1960_v60  ;;  %v1976_v60 = vperm.slane %v4635_v29, 7  ;;  %v1977_v29 = vperm.slane %v4672_v43, 0 }
 0x4db   : > { %v2099_v55 = vld [vmem:[#allocation1] sm:$0xff] }
 0x4dc   : > { %2100 = vst [vmem:[#allocation1] ss:$9 sm:$0xff] %v1961_v10  ;;  %2218 = vperm.xlu2 %2774, %v2099_v55   ;;  %v5346_v10 = vld [vmem:[#allocation76_spill] sm:$0xff] }
 0x4dd   : > { %2101 = vst [vmem:[#allocation1 + $0x1] ss:$9 sm:$0xff] %v1962_v27  ;;  %v1846_v17 = vpop.permute.xlu0 %1845  ;;  %v1897_v27 = vperm.slane %v1861_v15, %v5346_v10 }
 0x4de   : > { %2102 = vst [vmem:[#allocation1 + $0x2] ss:$9 sm:$0xff] %v1963_v48  ;;  %v1887_v35 = vperm.slane %v1846_v17, %v4271_v41  ;;  %v5347_v48 = vld [vmem:[#allocation77_spill] sm:$0xff]  ;;  %v1978_v17 = vperm.slane %v4672_v43, 1 }
 0x4df   : > { %2103 = vst [vmem:[#allocation1 + $0x3] ss:$9 sm:$0xff] %v1964_v63  ;;  %v5348_v63 = vld [vmem:[#allocation78_spill] sm:$0xff] }
 0x4e0   : > { %2104 = vst [vmem:[#allocation1 + $0x4] ss:$9 sm:$0xff] %v1965_v31  ;;  %v1888_v44 = vsel %vm1309_vm2, %v1887_v35, %v1886_v42  ;;  %v1901_v31 = vperm.slane %v1867_v2, %v5348_v63  ;;  %v1988_v2 = vperm.slane %v4681_v61, 3 }
 0x4e1   : > { %2105 = vst [vmem:[#allocation1 + $0x5] ss:$9 sm:$0xff] %v1966_v23  ;;  %v1890_v47 = vsel %vm1313_vm3, %v1889_v58, %v1888_v44  ;;  %v1979_v44 = vperm.slane %v4672_v43, 2 }
 0x4e2   : > { %2106 = vst [vmem:[#allocation1 + $0x6] ss:$9 sm:$0xff] %v1967_v36  ;;  %v1892_v13 = vsel %vm1317_vm6, %v1891_v16, %v1890_v47  ;;  %v5350_v47 = vld [vmem:[#allocation79_spill] sm:$0xff] }
 0x4e3   : > { %2107 = vst [vmem:[#allocation1 + $0x7] ss:$9 sm:$0xff] %v1968_v20  ;;  %v1870_v20 = vpop.permute.xlu1 %1869 }
 0x4e4   : > { %v1903_v35 = vperm.slane %v1870_v20, %v5349_v3  ;;  %v1674_v20 = vperm.slane %v4594_v6, %v5350_v47  ;;  %v1996_v6 = vperm.slane %v4582_v38, 3 }
 0x4e5   : > { %v1855_v11 = vpop.permute.xlu0 %1854 }
 0x4e6   : > { %v1893_v39 = vperm.slane %v1855_v11, %v4356_v45  ;;  %v1981_v11 = vperm.slane %v4672_v43, 4 }
 0x4e8   : > { %v1894_v57 = vsel %vm1321_vm8, %v1893_v39, %v1892_v13  ;;  %v1982_v39 = vperm.slane %v4672_v43, 5  ;;  %v1666_v13 = vperm.slane %v4639_v34, %v5346_v10 }
 0x4e9   : > { %v1896_v51 = vsel %vm1325_vm9, %v1895_v14, %v1894_v57  ;;  %v1983_v14 = vperm.slane %v4672_v43, 6 }
 0x4ea   : > { %v2108_v28 = vld [vmem:[#allocation1] sm:$0xff]  ;;  %v1898_v23 = vsel %vm1329_vm10, %v1897_v27, %v1896_v51  ;;  %v5352_v51 = vld [vmem:[#allocation80_spill] sm:$0xff]  ;;  %v1989_v27 = vperm.slane %v4681_v61, 4 }
 0x4eb   : > { %2109 = vst [vmem:[#allocation1] ss:$9 sm:$0xff] %v1969_v50  ;;  %2221 = vperm.xlu1 %2773, %v2108_v28   ;;  %v1980_v50 = vperm.slane %v4672_v43, 3  ;;  %v1662_v28 = vperm.slane %v4679_v25, %v4356_v45  ;;  %v1668_v25 = vperm.slane %v4669_v5, %v5347_v48  ;;  %v1987_v5 = vperm.slane %v4681_v61, 2 }
 0x4ec   : > { %2110 = vst [vmem:[#allocation1 + $0x1] ss:$9 sm:$0xff] %v1970_v18 }
 0x4ed   : > { %2111 = vst [vmem:[#allocation1 + $0x2] ss:$9 sm:$0xff] %v1971_v59  ;;  %v1864_v55 = vpop.permute.xlu0 %1863  ;;  %v1664_v59 = vperm.slane %v4648_v0, %v4361_v40  ;;  %v1663_v15 = vsel %vm1321_vm8, %v1662_v28, %v4667_v30  ;;  %v1986_v30 = vperm.slane %v4681_v61, 1  ;;  %v2002_v28 = vperm.slane %v4655_v49, 1 }
 0x4ee   : > { %2112 = vst [vmem:[#allocation1 + $0x3] ss:$9 sm:$0xff] %v1972_v4  ;;  %v1899_v12 = vperm.slane %v1864_v55, %v5347_v48  ;;  %v1984_v4 = vperm.slane %v4672_v43, 7  ;;  %v1990_v55 = vperm.slane %v4681_v61, 5 }
 0x4ef   : > { %2113 = vst [vmem:[#allocation1 + $0x4] ss:$9 sm:$0xff] %v1973_v9  ;;  %v1665_v57 = vsel %vm1325_vm9, %v1664_v59, %v1663_v15  ;;  %v2003_v59 = vperm.slane %v4655_v49, 2  ;;  %v2008_v15 = vperm.slane %v4655_v49, 7 }
 0x4f0   : > { %2114 = vst [vmem:[#allocation1 + $0x5] ss:$9 sm:$0xff] %v1974_v1  ;;  %v1900_v56 = vsel %vm1333_vm11, %v1899_v12, %v1898_v23  ;;  %v1667_v9 = vsel %vm1329_vm10, %v1666_v13, %v1665_v57  ;;  %v1991_v12 = vperm.slane %v4681_v61, 6  ;;  %v2005_v13 = vperm.slane %v4655_v49, 4 }
 0x4f1   : > { %2115 = vst [vmem:[#allocation1 + $0x6] ss:$9 sm:$0xff] %v1975_v26  ;;  %v1902_v36 = vsel %vm1337_vm12, %v1901_v31, %v1900_v56  ;;  %v1669_v34 = vsel %vm1333_vm11, %v1668_v25, %v1667_v9  ;;  %v1985_v26 = vperm.slane %v4681_v61, 0  ;;  %v1992_v31 = vperm.slane %v4681_v61, 7 }
 0x4f2   : > { %2116 = vst [vmem:[#allocation1 + $0x7] ss:$9 sm:$0xff] %v1976_v60  ;;  %v1904_v16 = vsel %vm1341_vm13, %v1903_v35, %v1902_v36  ;;  %v1672_v36 = vperm.slane %v4576_v52, %v5349_v3  ;;  %v2009_v25 = vperm.slane %v4675_v53, 0  ;;  %v2010_v57 = vperm.slane %v4675_v53, 1 }
 0x4f3   : > { %v2011_v9 = vperm.slane %v4675_v53, 2 }
 0x4f5   : > { %v1873_v58 = vpop.permute.xlu0 %1872 }
 0x4f6   : > { %v1905_v24 = vperm.slane %v1873_v58, %v5350_v47 }
 0x4f8   : > { %v1906_v18 = vsel %vm5351_vm14, %v1905_v24, %v1904_v16  ;;  %v1995_v24 = vperm.slane %v4582_v38, 2  ;;  %v1999_v16 = vperm.slane %v4582_v38, 6  ;;  %vm5357_vm14 = vcmask 1048512  }
 0x4f9   : > { %v2117_v42 = vld [vmem:[#allocation1] sm:$0xff] }
 0x4fa   : > { %2118 = vst [vmem:[#allocation1] ss:$9 sm:$0xff] %v1977_v29  ;;  %2224 = vperm.xlu0 %2775, %v2117_v42   ;;  %v1993_v42 = vperm.slane %v4582_v38, 0 }
 0x4fb   : > { %2119 = vst [vmem:[#allocation1 + $0x1] ss:$9 sm:$0xff] %v1978_v17  ;;  %v1676_v17 = vperm.slane %v4677_v37, %v5352_v51  ;;  %v1997_v37 = vperm.slane %v4582_v38, 4 }
 0x4fc   : > { %2120 = vst [vmem:[#allocation1 + $0x2] ss:$9 sm:$0xff] %v1979_v44  ;;  %v1994_v44 = vperm.slane %v4582_v38, 1 }
 0x4fd   : > { %2121 = vst [vmem:[#allocation1 + $0x3] ss:$9 sm:$0xff] %v1980_v50  ;;  %v1876_v0 = vpop.permute.xlu0 %1875  ;;  %v1998_v50 = vperm.slane %v4582_v38, 5 }
 0x4fe   : > { %2122 = vst [vmem:[#allocation1 + $0x4] ss:$9 sm:$0xff] %v1981_v11  ;;  %v1907_v1 = vperm.slane %v1876_v0, %v5352_v51  ;;  %v2000_v11 = vperm.slane %v4582_v38, 7  ;;  %v2006_v38 = vperm.slane %v4655_v49, 5 }
 0x4ff   : > { %2123 = vst [vmem:[#allocation1 + $0x5] ss:$9 sm:$0xff] %v1982_v39 }
 0x500   : > { %2124 = vst [vmem:[#allocation1 + $0x6] ss:$9 sm:$0xff] %v1983_v14  ;;  %v4745_v43 = vsel %vm5353_vm7, %v1907_v1, %v1906_v18  ;;  %v2001_v18 = vperm.slane %v4655_v49, 0  ;;  %v2004_v14 = vperm.slane %v4655_v49, 3  ;;  %v2012_v1 = vperm.slane %v4675_v53, 3 }
 0x501   : > { %2125 = vst [vmem:[#allocation1 + $0x7] ss:$9 sm:$0xff] %v1984_v4  ;;  %v2007_v4 = vperm.slane %v4655_v49, 6  ;;  %v2014_v49 = vperm.slane %v4675_v53, 5 }
 0x505   : > { %v1636_v23 = vpop.permute.xlu0 %1635 }
 0x506   : > { %v1670_v56 = vperm.slane %v1636_v23, %v5348_v63 }
 0x508   : > { %v2126_v60 = vld [vmem:[#allocation1] sm:$0xff]  ;;  %v1671_v29 = vsel %vm1337_vm12, %v1670_v56, %v1669_v34  ;;  %v2013_v34 = vperm.slane %v4675_v53, 4 }
 0x509   : > { %2227 = vperm.xlu2 %2774, %v2126_v60   ;;  %2127 = vst [vmem:[#allocation1] ss:$9 sm:$0xff] %v1985_v26  ;;  %v1673_v35 = vsel %vm1341_vm13, %v1672_v36, %v1671_v29  ;;  %v1648_v26 = vpop.permute.xlu2 %1647  ;;  %v2016_v60 = vperm.slane %v4675_v53, 7  ;;  %v2026_v29 = vperm.slane %v4650_v62, 1 }
 0x50a   : > { %2128 = vst [vmem:[#allocation1 + $0x1] ss:$9 sm:$0xff] %v1986_v30  ;;  %v1675_v61 = vsel %vm5354_vm1, %v1674_v20, %v1673_v35  ;;  %v2015_v30 = vperm.slane %v4675_v53, 6  ;;  %v2025_v53 = vperm.slane %v4650_v62, 0  ;;  %v2027_v35 = vperm.slane %v4650_v62, 2 }
 0x50b   : > { %2129 = vst [vmem:[#allocation1 + $0x2] ss:$9 sm:$0xff] %v1987_v5  ;;  %v4767_v58 = vsel %vm5355_vm15, %v1676_v17, %v1675_v61  ;;  %v2028_v61 = vperm.slane %v4650_v62, 3 }
 0x50c   : > { %2130 = vst [vmem:[#allocation1 + $0x3] ss:$9 sm:$0xff] %v1988_v2 }
 0x50d   : > { %2131 = vst [vmem:[#allocation1 + $0x4] ss:$9 sm:$0xff] %v1989_v27 }
 0x50e   : > { %2132 = vst [vmem:[#allocation1 + $0x5] ss:$9 sm:$0xff] %v1990_v55 }
 0x50f   : > { %2133 = vst [vmem:[#allocation1 + $0x6] ss:$9 sm:$0xff] %v1991_v12 }
 0x510   : > { %2134 = vst [vmem:[#allocation1 + $0x7] ss:$9 sm:$0xff] %v1992_v31 }
 0x511   : > { %v939_v5 = vpop.xlane.xlu2 %938 }
 0x512   : > { %v2017_v2 = vperm.slane %v939_v5, 0  ;;  %v2018_v27 = vperm.slane %v939_v5, 1  ;;  %v2019_v12 = vperm.slane %v939_v5, 2  ;;  %v2020_v31 = vperm.slane %v939_v5, 3 }
 0x513   : > { %v2021_v23 = vperm.slane %v939_v5, 4  ;;  %v2022_v56 = vperm.slane %v939_v5, 5  ;;  %v2023_v36 = vperm.slane %v939_v5, 6  ;;  %v2024_v20 = vperm.slane %v939_v5, 7 }
 0x517   : > { %v2135_v52 = vld [vmem:[#allocation1] sm:$0xff] }
 0x518   : > { %2230 = vperm.xlu1 %2773, %v2135_v52   ;;  %2136 = vst [vmem:[#allocation1] ss:$9 sm:$0xff] %v1993_v42  ;;  %v2029_v42 = vperm.slane %v4650_v62, 4  ;;  %v2031_v52 = vperm.slane %v4650_v62, 6 }
 0x519   : > { %2137 = vst [vmem:[#allocation1 + $0x1] ss:$9 sm:$0xff] %v1994_v44  ;;  %v2030_v44 = vperm.slane %v4650_v62, 5 }
 0x51a   : > { %2138 = vst [vmem:[#allocation1 + $0x2] ss:$9 sm:$0xff] %v1995_v24  ;;  %v2032_v24 = vperm.slane %v4650_v62, 7  ;;  %v2036_v62 = vperm.slane %v4602_v32, 3 }
 0x51b   : > { %2139 = vst [vmem:[#allocation1 + $0x3] ss:$9 sm:$0xff] %v1996_v6  ;;  %v5356_v6 = vld [vmem:[#allocation32_spill] sm:$0xff] }
 0x51c   : > { %2140 = vst [vmem:[#allocation1 + $0x4] ss:$9 sm:$0xff] %v1997_v37  ;;  %v1678_v37 = vperm.slane %v1648_v26, %v5356_v6 }
 0x51d   : > { %2141 = vst [vmem:[#allocation1 + $0x5] ss:$9 sm:$0xff] %v1998_v50 }
 0x51e   : > { %2142 = vst [vmem:[#allocation1 + $0x6] ss:$9 sm:$0xff] %v1999_v16  ;;  %v1679_v50 = vsel %vm5357_vm14, %v1678_v37, %v4767_v58  ;;  %v2033_v16 = vperm.slane %v4602_v32, 0  ;;  %v2038_v58 = vperm.slane %v4602_v32, 5 }
 0x51f   : > { %2143 = vst [vmem:[#allocation1 + $0x7] ss:$9 sm:$0xff] %v2000_v11  ;;  %v2034_v11 = vperm.slane %v4602_v32, 1 }
 0x520   : > { %1680 = vst [vmem:[#allocation4] sm:$0x1] %v1679_v50 }
 0x526   : > { %v2144_v39 = vld [vmem:[#allocation1] sm:$0xff] }
 0x527   : > { %2233 = vperm.xlu0 %2775, %v2144_v39   ;;  %2145 = vst [vmem:[#allocation1] ss:$9 sm:$0xff] %v2001_v18  ;;  %v2037_v39 = vperm.slane %v4602_v32, 4 }
 0x528   : > { %2146 = vst [vmem:[#allocation1 + $0x1] ss:$9 sm:$0xff] %v2002_v28  ;;  %v2035_v28 = vperm.slane %v4602_v32, 2 }
 0x529   : > { %2147 = vst [vmem:[#allocation1 + $0x2] ss:$9 sm:$0xff] %v2003_v59  ;;  %v2039_v59 = vperm.slane %v4602_v32, 6 }
 0x52a   : > { %2148 = vst [vmem:[#allocation1 + $0x3] ss:$9 sm:$0xff] %v2004_v14  ;;  %v2040_v14 = vperm.slane %v4602_v32, 7  ;;  %v2045_v32 = vperm.slane %v4652_v54, 4 }
 0x52b   : > { %2149 = vst [vmem:[#allocation1 + $0x4] ss:$9 sm:$0xff] %v2005_v13  ;;  %v2341_v13 = vld [vmem:[#allocation4] sm:$0x1] }
 0x52c   : > { %2150 = vst [vmem:[#allocation1 + $0x5] ss:$9 sm:$0xff] %v2006_v38  ;;  %v2041_v38 = vperm.slane %v4652_v54, 0 }
 0x52d   : > { %2151 = vst [vmem:[#allocation1 + $0x6] ss:$9 sm:$0xff] %v2007_v4  ;;  %v2042_v4 = vperm.slane %v4652_v54, 1 }
 0x52e   : > { %2152 = vst [vmem:[#allocation1 + $0x7] ss:$9 sm:$0xff] %v2008_v15 }
 0x52f   : > { %2342 = vst [vmem:[%s379_s12] sm:$0x1] %v2341_v13 }
 0x535   : > { %v2153_v0 = vld [vmem:[#allocation1] sm:$0xff] }
 0x536   : > { %2236 = vperm.xlu2 %2774, %v2153_v0   ;;  %2154 = vst [vmem:[#allocation1] ss:$9 sm:$0xff] %v2009_v25  ;;  %v2043_v25 = vperm.slane %v4652_v54, 2  ;;  %v2046_v0 = vperm.slane %v4652_v54, 5 }
 0x537   : > { %2155 = vst [vmem:[#allocation1 + $0x1] ss:$9 sm:$0xff] %v2010_v57  ;;  %v2044_v57 = vperm.slane %v4652_v54, 3 }
 0x538   : > { %2156 = vst [vmem:[#allocation1 + $0x2] ss:$9 sm:$0xff] %v2011_v9  ;;  %v2047_v9 = vperm.slane %v4652_v54, 6 }
 0x539   : > { %2157 = vst [vmem:[#allocation1 + $0x3] ss:$9 sm:$0xff] %v2012_v1  ;;  %v2048_v1 = vperm.slane %v4652_v54, 7 }
 0x53a   : > { %2158 = vst [vmem:[#allocation1 + $0x4] ss:$9 sm:$0xff] %v2013_v34  ;;  %v947_v34 = vpop.xlane.xlu0 %946 }
 0x53b   : > { %2159 = vst [vmem:[#allocation1 + $0x5] ss:$9 sm:$0xff] %v2014_v49  ;;  %v2049_v26 = vperm.slane %v947_v34, 0  ;;  %v2050_v49 = vperm.slane %v947_v34, 1  ;;  %v2052_v5 = vperm.slane %v947_v34, 3  ;;  %v2055_v54 = vperm.slane %v947_v34, 6 }
 0x53c   : > { %2160 = vst [vmem:[#allocation1 + $0x6] ss:$9 sm:$0xff] %v2015_v30  ;;  %v2051_v30 = vperm.slane %v947_v34, 2 }
 0x53d   : > { %2161 = vst [vmem:[#allocation1 + $0x7] ss:$9 sm:$0xff] %v2016_v60 }
 0x544   : > { %v2162_v55 = vld [vmem:[#allocation1] sm:$0xff] }
 0x545   : > { %2239 = vperm.xlu1 %2773, %v2162_v55   ;;  %2163 = vst [vmem:[#allocation1] ss:$9 sm:$0xff] %v2017_v2  ;;  %v2053_v2 = vperm.slane %v947_v34, 4  ;;  %v2056_v55 = vperm.slane %v947_v34, 7 }
 0x546   : > { %2164 = vst [vmem:[#allocation1 + $0x1] ss:$9 sm:$0xff] %v2018_v27  ;;  %v2054_v27 = vperm.slane %v947_v34, 5 }
 0x547   : > { %2165 = vst [vmem:[#allocation1 + $0x2] ss:$9 sm:$0xff] %v2019_v12 }
 0x548   : > { %2166 = vst [vmem:[#allocation1 + $0x3] ss:$9 sm:$0xff] %v2020_v31 }
 0x549   : > { %2167 = vst [vmem:[#allocation1 + $0x4] ss:$9 sm:$0xff] %v2021_v23 }
 0x54a   : > { %2168 = vst [vmem:[#allocation1 + $0x5] ss:$9 sm:$0xff] %v2022_v56 }
 0x54b   : > { %2169 = vst [vmem:[#allocation1 + $0x6] ss:$9 sm:$0xff] %v2023_v36 }
 0x54c   : > { %2170 = vst [vmem:[#allocation1 + $0x7] ss:$9 sm:$0xff] %v2024_v20 }
 0x553   : > { %v2171_v17 = vld [vmem:[#allocation1] sm:$0xff] }
 0x554   : > { %2242 = vperm.xlu0 %2775, %v2171_v17   ;;  %2172 = vst [vmem:[#allocation1] ss:$9 sm:$0xff] %v2025_v53 }
 0x555   : > { %2173 = vst [vmem:[#allocation1 + $0x1] ss:$9 sm:$0xff] %v2026_v29 }
 0x556   : > { %2174 = vst [vmem:[#allocation1 + $0x2] ss:$9 sm:$0xff] %v2027_v35 }
 0x557   : > { %2175 = vst [vmem:[#allocation1 + $0x3] ss:$9 sm:$0xff] %v2028_v61 }
 0x558   : > { %2176 = vst [vmem:[#allocation1 + $0x4] ss:$9 sm:$0xff] %v2029_v42 }
 0x559   : > { %2177 = vst [vmem:[#allocation1 + $0x5] ss:$9 sm:$0xff] %v2030_v44 }
 0x55a   : > { %2178 = vst [vmem:[#allocation1 + $0x6] ss:$9 sm:$0xff] %v2031_v52 }
 0x55b   : > { %2179 = vst [vmem:[#allocation1 + $0x7] ss:$9 sm:$0xff] %v2032_v24 }
 0x562   : > { %v2180_v18 = vld [vmem:[#allocation1] sm:$0xff] }
 0x563   : > { %2245 = vperm.xlu2 %2774, %v2180_v18   ;;  %2181 = vst [vmem:[#allocation1] ss:$9 sm:$0xff] %v2033_v16 }
 0x564   : > { %2182 = vst [vmem:[#allocation1 + $0x1] ss:$9 sm:$0xff] %v2034_v11 }
 0x565   : > { %2183 = vst [vmem:[#allocation1 + $0x2] ss:$9 sm:$0xff] %v2035_v28 }
 0x566   : > { %2184 = vst [vmem:[#allocation1 + $0x3] ss:$9 sm:$0xff] %v2036_v62 }
 0x567   : > { %2185 = vst [vmem:[#allocation1 + $0x4] ss:$9 sm:$0xff] %v2037_v39 }
 0x568   : > { %2186 = vst [vmem:[#allocation1 + $0x5] ss:$9 sm:$0xff] %v2038_v58 }
 0x569   : > { %2187 = vst [vmem:[#allocation1 + $0x6] ss:$9 sm:$0xff] %v2039_v59 }
 0x56a   : > { %2188 = vst [vmem:[#allocation1 + $0x7] ss:$9 sm:$0xff] %v2040_v14 }
 0x571   : > { %v2189_v15 = vld [vmem:[#allocation1] sm:$0xff] }
 0x572   : > { %2248 = vperm.xlu1 %2773, %v2189_v15   ;;  %2190 = vst [vmem:[#allocation1] ss:$9 sm:$0xff] %v2041_v38 }
 0x573   : > { %2191 = vst [vmem:[#allocation1 + $0x1] ss:$9 sm:$0xff] %v2042_v4 }
 0x574   : > { %2192 = vst [vmem:[#allocation1 + $0x2] ss:$9 sm:$0xff] %v2043_v25 }
 0x575   : > { %2193 = vst [vmem:[#allocation1 + $0x3] ss:$9 sm:$0xff] %v2044_v57 }
 0x576   : > { %2194 = vst [vmem:[#allocation1 + $0x4] ss:$9 sm:$0xff] %v2045_v32 }
 0x577   : > { %2195 = vst [vmem:[#allocation1 + $0x5] ss:$9 sm:$0xff] %v2046_v0 }
 0x578   : > { %2196 = vst [vmem:[#allocation1 + $0x6] ss:$9 sm:$0xff] %v2047_v9 }
 0x579   : > { %2197 = vst [vmem:[#allocation1 + $0x7] ss:$9 sm:$0xff] %v2048_v1 }
 0x57a   : > { %1878 = vperm.xlu1 %2773, %v4570_v22  }
 0x580   : > { %v2198_v60 = vld [vmem:[#allocation1] sm:$0xff] }
 0x581   : > { %2251 = vperm.xlu2 %2774, %v2198_v60   ;;  %2199 = vst [vmem:[#allocation1] ss:$9 sm:$0xff] %v2049_v26 }
 0x582   : > { %2200 = vst [vmem:[#allocation1 + $0x1] ss:$9 sm:$0xff] %v2050_v49 }
 0x583   : > { %2201 = vst [vmem:[#allocation1 + $0x2] ss:$9 sm:$0xff] %v2051_v30 }
 0x584   : > { %2202 = vst [vmem:[#allocation1 + $0x3] ss:$9 sm:$0xff] %v2052_v5 }
 0x585   : > { %2203 = vst [vmem:[#allocation1 + $0x4] ss:$9 sm:$0xff] %v2053_v2 }
 0x586   : > { %2204 = vst [vmem:[#allocation1 + $0x5] ss:$9 sm:$0xff] %v2054_v27 }
 0x587   : > { %2205 = vst [vmem:[#allocation1 + $0x6] ss:$9 sm:$0xff] %v2055_v54 }
 0x588   : > { %2206 = vst [vmem:[#allocation1 + $0x7] ss:$9 sm:$0xff] %v2056_v55 }
 0x58f   : > { %v2207_v22 = vld [vmem:[#allocation1] sm:$0xff] }
 0x590   : > { %2254 = vperm.xlu0 %2775, %v2207_v22  }
 0x591   : > { %2903 = shalt.err (!%p2900_p0)
}
 0x592   : > { %2667 = dma.vmem_to_hbm [thread:$0]  (%p3085_p9), %s2374_s15, 16, %s2376_s16, %s2348_s25   ;;  %v2213_v12 = vpop.permute.xlu1 %2212  ;;  %v2210_v31 = vpop.permute.xlu2 %2209  ;;  %v949_v1 = vld [vmem:[#allocation3] sm:$0x1]  ;;  %v2785_v26 = vld [vmem:[#allocation2] sm:$0x1] }
 0x593   : > { %v2216_v56 = vpop.permute.xlu0 %2215  ;;  %v2256_v17 = vperm.slane %v2210_v31, %v3366_v21  ;;  %v2257_v42 = vperm.slane %v2213_v12, %v4120_v8  ;;  %s334_s18 = scalar_lea.vmem [#allocation10], %s3137_s7  ;;  %v2295_v2 = vld [vmem:[#allocation2] sm:$0x1]  ;;  %s5362_s30 = sld [smem:[#allocation82_spill]] }
 0x594   : > { %v2259_v35 = vperm.slane %v2216_v56, %v4139_v46  ;;  %v2294_v5 = vld [vmem:[%s334_s18] sm:$0x1]  ;;  %s373_s9 = scalar_lea.vmem [#allocation11], %s3137_s7 }
 0x595   : > { %v2258_v44 = vsel %vm1297_vm4, %v2257_v42, %v2256_v17  ;;  %vm5358_vm4 = vmmov %vm5354_vm1  ;;  %s2359_s10 = sshll.u32 %s373_s9, 4  ;;  %s2360_s10 = int_to_ptr.vmem [resolvable:$true] %s2359_s10 }
 0x596   : > { %v2260_v52 = vsel %vm1301_vm5, %v2259_v35, %v2258_v44  ;;  %vm5359_vm5 = vmmov %vm5357_vm14 }
 0x599   : > { %s2357_s8 = scalar_lea.hbm %s5362_s30, %s2986_s21  ;;  %s2344_s21 = scalar_lea.sflag [#allocation7], %s3137_s7 }
 0x59a   : > { %v2222_v23 = vpop.permute.xlu1 %2221  ;;  %v2219_v36 = vpop.permute.xlu2 %2218  ;;  %s2361_s11 = sshll.u32 %s2357_s8, 4  ;;  %s2924_s15 = scalar_lea.hbm %s5362_s30, 2  ;;  %s2362_s11 = int_to_ptr.hbm [resolvable:$true] %s2361_s11 }
 0x59b   : > { %v2225_v53 = vpop.permute.xlu0 %2224  ;;  %v2263_v24 = vperm.slane %v2222_v23, %v4271_v41  ;;  %v2261_v50 = vperm.slane %v2219_v36, %v4276_v19  ;;  %s2918_s12 = sshra.s32 %s2362_s11, 4  ;;  %s2919_s12 = int_to_ptr.hbm [resolvable:$true] %s2918_s12 }
 0x59c   : > { %v2265_v16 = vperm.slane %v2225_v53, %v4328_v33  ;;  %s2920_s29 = scalar_lea.hbm %s2919_s12, 1  ;;  %p2925_p4 = scmp.lt.s32.totalorder %s2919_s12, %s5362_s30 }
 0x59d   : > { %v2262_v18 = vsel %vm1305_vm0, %v2261_v50, %v2260_v52  ;;  %vm5360_vm0 = vmmov %vm5353_vm7  ;;  %p2921_p1 = scmp.ne.s32.totalorder %s2919_s12, %s2920_s29  ;;  %p2926_p5 = scmp.lt.s32.totalorder %s2924_s15, %s2920_s29 }
 0x59e   : > { %v2264_v21 = vsel %vm1309_vm2, %v2263_v24, %v2262_v18  ;;  %vm5361_vm2 = vmmov %vm5359_vm5 }
 0x59f   : > { %v2266_v28 = vsel %vm1313_vm3, %v2265_v16, %v2264_v21  ;;  %p2922_p2 = pnand %p2921_p1, %p3085_p9  ;;  %p2927_p6 = por %p2926_p5, %p2925_p4 }
 0x5a1   : > { %p2923_p3 = pneg %p2922_p2 }
 0x5a2   : > { %v2231_v20 = vpop.permute.xlu1 %2230  ;;  %v2228_v29 = vpop.permute.xlu2 %2227 }
 0x5a3   : > { %v2234_v37 = vpop.permute.xlu0 %2233  ;;  %v2269_v8 = vperm.slane %v2231_v20, %v4356_v45  ;;  %v2267_v62 = vperm.slane %v2228_v29, %v4331_v7  ;;  %p2928_p7 = pnand %p2927_p6, %p2923_p3 }
 0x5a4   : > { %v2271_v39 = vperm.slane %v2234_v37, %v4361_v40 }
 0x5a5   : > { %v2268_v41 = vsel %vm1317_vm6, %v2267_v62, %v2266_v28 }
 0x5a6   : > { %v2270_v19 = vsel %vm1321_vm8, %v2269_v8, %v2268_v41 }
 0x5a7   : > { %v2272_v59 = vsel %vm1325_vm9, %v2271_v39, %v2270_v19 }
 0x5aa   : > { %v2237_v11 = vpop.permute.xlu2 %2236 }
 0x5ab   : > { %v2273_v13 = vperm.slane %v2237_v11, %v5346_v10 }
 0x5ad   : > { %v2274_v45 = vsel %vm1329_vm10, %v2273_v13, %v2272_v59 }
 0x5b7   : > { %v2240_v61 = vpop.permute.xlu1 %2239 }
 0x5b8   : > { %v2275_v14 = vperm.slane %v2240_v61, %v5347_v48 }
 0x5ba   : > { %v2276_v7 = vsel %vm1333_vm11, %v2275_v14, %v2274_v45 }
 0x5bd   : > { %v2246_v33 = vpop.permute.xlu2 %2245 }
 0x5be   : > { %v2279_v25 = vperm.slane %v2246_v33, %v5349_v3 }
 0x5c6   : > { %v2243_v58 = vpop.permute.xlu0 %2242 }
 0x5c7   : > { %v2277_v38 = vperm.slane %v2243_v58, %v5348_v63 }
 0x5c9   : > { %v2278_v40 = vsel %vm1337_vm12, %v2277_v38, %v2276_v7 }
 0x5ca   : > { %v2280_v48 = vsel %vm1341_vm13, %v2279_v25, %v2278_v40 }
 0x5db   : > { %v2252_v57 = vpop.permute.xlu2 %2251 }
 0x5dc   : > { %v2283_v63 = vperm.slane %v2252_v57, %v5352_v51  ;;  %v2296_v51 = vadd.f32 %v2295_v2, %v2294_v5 }
 0x5de   : > { %v2297_v55 = vmax.f32 %v2296_v51, 0.0 }
 0x5e0   : > { %vm2308_vm9 = vcmp.eq.f32.partialorder %v2297_v55, inf  ;;  %v2311_v8 = vand.u32 2147483648, %v2297_v55  ;;  %vm2310_vm12 = vcmp.eq.f32.partialorder %v2297_v55, 0.0 }
 0x5e4   : > { %v2249_v46 = vpop.permute.xlu1 %2248 }
 0x5e5   : > { %v2281_v15 = vperm.slane %v2249_v46, %v5350_v47 }
 0x5e7   : > { %v2282_v10 = vsel %vm5358_vm4, %v2281_v15, %v2280_v48 }
 0x5e8   : > { %v2284_v47 = vsel %vm5360_vm0, %v2283_v63, %v2282_v10 }
 0x5ec   : > { %v1879_v4 = vpop.permute.xlu1 %1878 }
 0x5ed   : > { %v1909_v32 = vperm.slane %v1879_v4, %v5356_v6 }
 0x5ef   : > { %v1910_v9 = vsel %vm5359_vm5, %v1909_v32, %v4745_v43 }
 0x5f0   : > { %v1912_v49 = vmax.f32 %v2785_v26, %v1910_v9 }
 0x602   : > { %v2255_v0 = vpop.permute.xlu0 %2254 }
 0x603   : > { %v2285_v34 = vperm.slane %v2255_v0, %v5356_v6 }
 0x605   : > { %v2286_v3 = vsel %vm5361_vm2, %v2285_v34, %v2284_v47 }
 0x606   : > { %v2288_v30 = vmin.f32 %v949_v1, %v2286_v3 }
 0x608   : > { %v2289_v60 = vmin.f32 %v1912_v49, %v2288_v30 }
 0x60a   : > { %2290 = vst [vmem:[#allocation3] sm:$0x1] %v2289_v60 }
 0x611   : > { %v2298_v27 = vld [vmem:[#allocation3] sm:$0x1] }
 0x612   : > { %v2299_v54 = vadd.f32 %v2298_v27, %v2294_v5 }
 0x614   : > { %v2300_v43 = vmax.f32 %v2299_v54, 0.0 }
 0x616   : > { %2779 = vrsqrt.f32 %v2300_v43  ;;  %vm2320_vm3 = vcmp.eq.f32.partialorder %v2300_v43, inf  ;;  %v2323_v35 = vand.u32 2147483648, %v2300_v43  ;;  %vm2322_vm6 = vcmp.eq.f32.partialorder %v2300_v43, 0.0 }
 0x617   : > { %2781 = vrsqrt.f32 %v2297_v55 }
 0x61c   : > { %v2780_v6 = vpop.eup %2779 }
 0x61d   : > { %v2782_v22 = vpop.eup %2781  ;;  %v2314_v12 = vmul.f32 %v2780_v6, %v2300_v43 }
 0x61e   : > { %v2302_v23 = vmul.f32 %v2782_v22, %v2297_v55 }
 0x61f   : > { %v2315_v31 = vmul.f32 %v2780_v6, %v2314_v12 }
 0x620   : > { %v2303_v20 = vmul.f32 %v2782_v22, %v2302_v23 }
 0x621   : > { %v2316_v56 = vmul.f32 0.5, %v2315_v31 }
 0x622   : > { %v2304_v17 = vmul.f32 0.5, %v2303_v20 }
 0x623   : > { %v2317_v36 = vsub.f32 1.5, %v2316_v56 }
 0x624   : > { %v2305_v44 = vsub.f32 1.5, %v2304_v17 }
 0x625   : > { %v2318_v53 = vmul.f32 %v2780_v6, %v2317_v36 }
 0x626   : > { %v2306_v52 = vmul.f32 %v2782_v22, %v2305_v44 }
 0x627   : > { %v2319_v29 = vmul.f32 %v2318_v53, %v2300_v43 }
 0x628   : > { %v2307_v50 = vmul.f32 %v2306_v52, %v2297_v55 }
 0x629   : > { %v2321_v61 = vsel %vm2320_vm3, %v2300_v43, %v2319_v29 }
 0x62a   : > { %v2324_v42 = vsel %vm2322_vm6, %v2323_v35, %v2321_v61  ;;  %v2309_v46 = vsel %vm2308_vm9, %v2297_v55, %v2307_v50 }
 0x62b   : > { %2783 = vrcp.f32 %v2324_v42  ;;  %v2336_v11 = vand.u32 2147483648, %v2324_v42  ;;  %v2334_v21 = vand.u32 2147483647, %v2324_v42  ;;  %vm2330_vm10 = vweird.f32 %v2324_v42 }
 0x62c   : > { %v2312_v41 = vsel %vm2310_vm12, %v2311_v8, %v2309_v46 }
 0x62d   : > { %v2337_v62 = vor.u32 1.1754944e-38, %v2336_v11  ;;  %vm2335_vm13 = vcmp.eq.f32.partialorder %v2334_v21, 8.507059e+37 }
 0x631   : > { %v2784_v24 = vpop.eup %2783 }
 0x632   : > { %v2326_v37 = vmul.f32 %v2784_v24, %v2324_v42  ;;  %vm2331_vm8 = vweird.f32 %v2784_v24 }
 0x633   : > { %vm2332_vm11 = vmor %vm2330_vm10, %vm2331_vm8 }
 0x634   : > { %v2327_v16 = vsub.f32 1.0, %v2326_v37 }
 0x636   : > { %v2328_v18 = vmul.f32 %v2784_v24, %v2327_v16 }
 0x638   : > { %v2329_v28 = vadd.f32 %v2784_v24, %v2328_v18 }
 0x63a   : > { %v2333_v39 = vsel %vm2332_vm11, %v2784_v24, %v2329_v28 }
 0x63b   : > { %v2338_v58 = vsel %vm2335_vm13, %v2337_v62, %v2333_v39 }
 0x63c   : > { %v2339_v19 = vmul.f32 %v2338_v58, %v2312_v41 }
 0x63e   : > { %2340 = vst [vmem:[%s373_s9] sm:$0x1] %v2339_v19 }
 0x63f   : > { %2931 = shalt.err (!%p2928_p7)
}
 0x640   : > { %2666 = dma.vmem_to_hbm [thread:$0]  (%p3085_p9), %s2360_s10, 16, %s2362_s11, %s2344_s21  }
 0x641 PF: > { %s5363_s7 = sld [smem:[#allocation18_spill]]  ;;  %p2681_p8 = pnand %p2542_p12, %p3092_p11 }
 0x642   : > { %s5365_s17 = sld [smem:[#allocation20_spill]] }
 0x643   : > { %p2682_p10 = pneg %p2681_p8 }
 0x647   : > { %s2387_s27 = sand.u32 1, %s5363_s7  }
 0x648   : > { %s2388_s1 = scalar_lea.sflag [#allocation7], %s2387_s27 }
 0x649   : > { %2965 = dma.done.wait (%p2682_p10), %s2388_s1, 16  }
 0x64a   : > { %2967 = vsyncadd (%p2682_p10), %s2388_s1, 4294967280  ;;  %s2397_s20 = scalar_lea.sflag [#allocation13], %s2387_s27 }
 0x64b   : > { %2969 = dma.done.wait (%p2682_p10), %s2397_s20, 16  }
 0x64c   : > { %2971 = vsyncadd (%p2682_p10), %s2397_s20, 4294967280  ;;  %s28_s23 = sadd.s32 1, %s5365_s17   ;;  %s5366_s6 = sld [smem:[#allocation19_spill]] }
 0x64d   : > { %p25_p13 = scmp.ge.s32.totalorder %s28_s23, 4   ;;  %s5367_s20 = sld [smem:[#allocation22_spill]] }
 0x64e   : > { %s5368_s26 = sld [smem:[#allocation21_spill]]  ;;  %s5369_s18 = smov %s2978_s19 }
 0x64f   : > { %s5371_s21 = smov %s2990_s22 }
 0x650   :  { %27 = sbr.rel (!%p25_p13) target bundleno = 13 (0xd), region = 154 }
 0x652   : > { %s5370_s19 = smov %s5366_s6 }
 0x654   : > { %s5372_s22 = smov %s5368_s26 }
 0x655   :  { %2402 = vsyncpa [#allocation6], 1 }
 0x656   :  { %2404 = vsyncpa [#allocation6 + $0x1], 1 }
 0x657   :  { %2405 = vsyncpa [#allocation9], 1 }
 0x658   :  { %2407 = vsyncpa [#allocation9 + $0x1], 1 }
 0x659   :  { %2408 = vsyncpa [#allocation7], 1 }
 0x65a   :  { %2410 = vsyncpa [#allocation7 + $0x1], 1 }
 0x65b   :  { %2411 = vsyncpa [#allocation13], 1 }
 0x65c   :  { %2413 = vsyncpa [#allocation13 + $0x1], 1 }

</bundles_post_ra>
